<compile_context>
chip_gen: v7x
topology: tpu7x:2x2x1
jax: 0.10.0
libtpu: 0.0.40
codegen_flags: <defaults>
</compile_context>

<pallas_src>
import functools
import math

import jax
import jax.numpy as jnp
from jax import lax
from jax.experimental import pallas as pl
from jax.experimental.pallas import tpu as pltpu


def _det_encoder_kernel(enc_in_ref, cx_ref, tx_ref,
                        wi_ref, bi_ref, wc_ref, bc_ref, wt_ref, bt_ref,
                        wk_ref, wq_ref, wvf_ref, wfres_ref,
                        bf_ref, lnw_ref, lnb_ref,
                        out_ref, *, h):
    """Full DeterministicEncoder forward for ONE batch element (grid axis = batch)."""

    def attn_block(layer, k2d, v2d, q2d):
        # k2d/v2d: (Sk, H)   q2d: (Sq, H)
        residual = q2d
        # final_linear applied to the "residual" half of cat([residual, mh]) + bias.
        acc0 = jnp.dot(residual, wfres_ref[layer],
                       preferred_element_type=jnp.float32) + bf_ref[layer]

        def head_body(head, acc):
            idx = layer * h + head          # dynamic leading-dim index into weight stacks
            # Per-head projections.  wq has 1/sqrt(dh) pre-folded; wvf = wv @ wf_mh is
            # pre-folded so the attn@V result is already H lanes wide and final_linear's
            # multi-head half costs nothing extra.
            Kh = jnp.dot(k2d, wk_ref[idx], preferred_element_type=jnp.float32)    # (Sk, dh)
            Qh = jnp.dot(q2d, wq_ref[idx], preferred_element_type=jnp.float32)    # (Sq, dh)
            Vf = jnp.dot(v2d, wvf_ref[idx], preferred_element_type=jnp.float32)   # (Sk, H)
            # Scaled dot-product attention (scale already folded into Qh), softmax in f32.
            s = lax.dot_general(Qh, Kh, (((1,), (1,)), ((), ())),
                                preferred_element_type=jnp.float32)               # (Sq, Sk)
            m = jnp.max(s, axis=-1, keepdims=True)
            e = jnp.exp(s - m)
            attn = e * pl.reciprocal(jnp.sum(e, axis=-1, keepdims=True), approx=True)
            return acc + jnp.dot(attn, Vf, preferred_element_type=jnp.float32)    # (Sq, H)

        acc = lax.fori_loop(0, h, head_body, acc0, unroll=True)
        # residual add + LayerNorm (eps=1e-5, biased variance) — matches nn.LayerNorm.
        x = acc + residual
        mean = jnp.mean(x, axis=-1, keepdims=True)
        var = jnp.mean((x - mean) ** 2, axis=-1, keepdims=True)
        y = (x - mean) * lax.rsqrt(var + 1e-5)
        return y * lnw_ref[layer] + lnb_ref[layer]

    # encoder_input = input_projection(cat([context_x, context_y]))  (concat done in wrapper)
    enc = jnp.dot(enc_in_ref[...], wi_ref[...],
                  preferred_element_type=jnp.float32) + bi_ref[...]
    # Two self-attention blocks.
    enc = attn_block(0, enc, enc, enc)
    enc = attn_block(1, enc, enc, enc)
    # query = target_projection(target_x); keys = context_projection(context_x)
    q = jnp.dot(tx_ref[...], wt_ref[...],
                preferred_element_type=jnp.float32) + bt_ref[...]
    keys = jnp.dot(cx_ref[...], wc_ref[...],
                   preferred_element_type=jnp.float32) + bc_ref[...]
    # Two cross-attention blocks: key=keys, value=enc, query=q.
    q = attn_block(2, keys, enc, q)
    q = attn_block(3, keys, enc, q)

    out_ref[...] = q.astype(out_ref.dtype)


def deterministic_encoder_forward(context_x, context_y, target_x, params, h):
    B, Sc, x_dim = context_x.shape
    St = target_x.shape[1]
    input_dim = x_dim + context_y.shape[-1]
    H = params["wi"].shape[1]

    # Wrapper-side layout plumbing (free): the [context_x, context_y] concat.
    enc_in = jnp.concatenate([context_x, context_y], axis=-1)      # (B, Sc, input_dim)

    def batched(seq, dim):
        # One batch element per grid step; batch dim squeezed out of the kernel view.
        return pl.BlockSpec((None, seq, dim), lambda b: (b, 0, 0))

    def whole(arr):
        # Full (batch-independent) weight array resident in VMEM every step.
        return pl.BlockSpec(arr.shape, lambda b, _n=arr.ndim: (0,) * _n)

    weights = [params[k] for k in ("wi", "bi", "wc", "bc", "wt", "bt",
                                   "wk", "wq", "wvf", "wf_res", "bf", "lnw", "lnb")]

    kernel = functools.partial(_det_encoder_kernel, h=h)
    out = pl.pallas_call(
        kernel,
        out_shape=jax.ShapeDtypeStruct((B, St, H), target_x.dtype),
        grid=(B,),
        in_specs=[batched(Sc, input_dim), batched(Sc, x_dim), batched(St, x_dim)]
                 + [whole(w) for w in weights],
        out_specs=pl.BlockSpec((None, St, H), lambda b: (b, 0, 0)),
        compiler_params=pltpu.CompilerParams(
            dimension_semantics=("parallel",),
            vmem_limit_bytes=48 * 1024 * 1024),
    )(enc_in, context_x, target_x, *weights)
    return out


def init_params(rng, num_hidden, input_dim, y_dim, h):
    """Deterministic init mirroring the torch module (xavier_uniform, relu gain),
    with the review's weight pre-folds applied."""
    H = num_hidden
    dh = H // h
    x_dim = input_dim - y_dim
    gain = math.sqrt(2.0)  # nn.init.calculate_gain('relu')

    def xavier_t(key, in_dim, out_dim):
        # torch stores weight as (out, in); we store transposed (in, out) for x @ W.
        bound = gain * math.sqrt(6.0 / (in_dim + out_dim))
        return jax.random.uniform(key, (in_dim, out_dim), jnp.float32, -bound, bound)

    def linear_bias(key, in_dim, out_dim):
        bound = 1.0 / math.sqrt(in_dim)   # nn.Linear default bias init
        return jax.random.uniform(key, (1, out_dim), jnp.float32, -bound, bound)

    keys = iter(jax.random.split(rng, 40))
    params = {
        "wi": xavier_t(next(keys), input_dim, H), "bi": linear_bias(next(keys), input_dim, H),
        "wc": xavier_t(next(keys), x_dim, H),     "bc": linear_bias(next(keys), x_dim, H),
        "wt": xavier_t(next(keys), x_dim, H),     "bt": linear_bias(next(keys), x_dim, H),
    }

    scale = 1.0 / math.sqrt(dh)
    wk, wq, wvf, wf_res, bf, lnw, lnb = ([] for _ in range(7))
    for _ in range(4):  # [self_attn0, self_attn1, cross_attn0, cross_attn1]
        # (H_in, H_out) -> per-head (h, H_in, dh), head-major over the out columns.
        k_w = xavier_t(next(keys), H, H).reshape(H, h, dh).transpose(1, 0, 2)
        v_w = xavier_t(next(keys), H, H).reshape(H, h, dh).transpose(1, 0, 2)
        q_w = xavier_t(next(keys), H, H).reshape(H, h, dh).transpose(1, 0, 2)
        wf = xavier_t(next(keys), 2 * H, H)           # rows = [residual-part | mh-part]
        wf_mh = wf[H:].reshape(h, dh, H)              # head-major mh rows
        wk.append(k_w)
        wq.append(q_w * scale)                        # fold 1/sqrt(dh) into Q weights
        wvf.append(jnp.einsum('hid,hdo->hio', v_w, wf_mh))   # fold Wv @ Wf_mh -> (h, H, H)
        wf_res.append(wf[:H])
        bf.append(linear_bias(next(keys), 2 * H, H))
        lnw.append(jnp.ones((1, H), jnp.float32))
        lnb.append(jnp.zeros((1, H), jnp.float32))

    # Per-head stacks flattened over (layer, head) for dynamic leading-dim indexing.
    params["wk"] = jnp.concatenate(wk, axis=0)        # (4*h, H, dh)
    params["wq"] = jnp.concatenate(wq, axis=0)        # (4*h, H, dh)
    params["wvf"] = jnp.concatenate(wvf, axis=0)      # (4*h, H, H)
    params["wf_res"] = jnp.stack(wf_res, axis=0)      # (4, H, H)
    params["bf"] = jnp.stack(bf, axis=0)              # (4, 1, H)
    params["lnw"] = jnp.stack(lnw, axis=0)            # (4, 1, H)
    params["lnb"] = jnp.stack(lnb, axis=0)            # (4, 1, H)
    return params


if __name__ == "__main__":
    B, Sc, St = 2, 8, 8          # batch, context length, target length
    H, heads = 32, 4             # num_hidden, heads (dh = 8)
    x_dim, y_dim = 8, 8
    input_dim = x_dim + y_dim

    root = jax.random.PRNGKey(0)
    k_par, k_cx, k_cy, k_tx = jax.random.split(root, 4)
    params = init_params(k_par, H, input_dim, y_dim, heads)
    context_x = jax.random.normal(k_cx, (B, Sc, x_dim), jnp.float32)
    context_y = jax.random.normal(k_cy, (B, Sc, y_dim), jnp.float32)
    target_x = jax.random.normal(k_tx, (B, St, x_dim), jnp.float32)

    out = deterministic_encoder_forward(context_x, context_y, target_x, params, heads)
    jax.block_until_ready(out)

    assert out.shape == (B, St, H)
    print("KERNEL_OK")
</pallas_src>

<mosaic_0001>
module attributes {stable_mosaic.version = 11 : i64} {
  func.func @_det_encoder_kernel(%arg0: i32, %arg1: memref<1x8x16xf32, #tpu.memory_space<vmem>>, %arg2: memref<1x8x8xf32, #tpu.memory_space<vmem>>, %arg3: memref<1x8x8xf32, #tpu.memory_space<vmem>>, %arg4: memref<16x32xf32, #tpu.memory_space<vmem>>, %arg5: memref<1x32xf32, #tpu.memory_space<vmem>>, %arg6: memref<8x32xf32, #tpu.memory_space<vmem>>, %arg7: memref<1x32xf32, #tpu.memory_space<vmem>>, %arg8: memref<8x32xf32, #tpu.memory_space<vmem>>, %arg9: memref<1x32xf32, #tpu.memory_space<vmem>>, %arg10: memref<16x32x8xf32, #tpu.memory_space<vmem>>, %arg11: memref<16x32x8xf32, #tpu.memory_space<vmem>>, %arg12: memref<16x32x32xf32, #tpu.memory_space<vmem>>, %arg13: memref<4x32x32xf32, #tpu.memory_space<vmem>>, %arg14: memref<4x1x32xf32, #tpu.memory_space<vmem>>, %arg15: memref<4x1x32xf32, #tpu.memory_space<vmem>>, %arg16: memref<4x1x32xf32, #tpu.memory_space<vmem>>, %arg17: memref<1x8x32xf32, #tpu.memory_space<vmem>>) attributes {dimension_semantics = [#tpu.dimension_semantics<parallel>], iteration_bounds = array<i64: 2>, scalar_prefetch = 0 : i64, scratch_operands = 0 : i64, tpu.core_type = #tpu.core_type<tc>, window_params = [{transform_indices = @transform_0, window_bounds = array<i64: 1, 8, 16>}, {transform_indices = @transform_1, window_bounds = array<i64: 1, 8, 8>}, {transform_indices = @transform_2, window_bounds = array<i64: 1, 8, 8>}, {pipeline_mode = #tpu.pipeline_mode<synchronous>, transform_indices = @transform_3, window_bounds = array<i64: 16, 32>}, {pipeline_mode = #tpu.pipeline_mode<synchronous>, transform_indices = @transform_4, window_bounds = array<i64: 1, 32>}, {pipeline_mode = #tpu.pipeline_mode<synchronous>, transform_indices = @transform_5, window_bounds = array<i64: 8, 32>}, {pipeline_mode = #tpu.pipeline_mode<synchronous>, transform_indices = @transform_6, window_bounds = array<i64: 1, 32>}, {pipeline_mode = #tpu.pipeline_mode<synchronous>, transform_indices = @transform_7, window_bounds = array<i64: 8, 32>}, {pipeline_mode = #tpu.pipeline_mode<synchronous>, transform_indices = @transform_8, window_bounds = array<i64: 1, 32>}, {pipeline_mode = #tpu.pipeline_mode<synchronous>, transform_indices = @transform_9, window_bounds = array<i64: 16, 32, 8>}, {pipeline_mode = #tpu.pipeline_mode<synchronous>, transform_indices = @transform_10, window_bounds = array<i64: 16, 32, 8>}, {pipeline_mode = #tpu.pipeline_mode<synchronous>, transform_indices = @transform_11, window_bounds = array<i64: 16, 32, 32>}, {pipeline_mode = #tpu.pipeline_mode<synchronous>, transform_indices = @transform_12, window_bounds = array<i64: 4, 32, 32>}, {pipeline_mode = #tpu.pipeline_mode<synchronous>, transform_indices = @transform_13, window_bounds = array<i64: 4, 1, 32>}, {pipeline_mode = #tpu.pipeline_mode<synchronous>, transform_indices = @transform_14, window_bounds = array<i64: 4, 1, 32>}, {pipeline_mode = #tpu.pipeline_mode<synchronous>, transform_indices = @transform_15, window_bounds = array<i64: 4, 1, 32>}, {transform_indices = @transform_16, window_bounds = array<i64: 1, 8, 32>}]} {
    %c0 = arith.constant 0 : index
    %c0_0 = arith.constant 0 : index
    %c0_1 = arith.constant 0 : index
    %0 = vector.load %arg1[%c0, %c0_0, %c0_1] : memref<1x8x16xf32, #tpu.memory_space<vmem>>, vector<1x8x16xf32>
    %1 = vector.shape_cast %0 : vector<1x8x16xf32> to vector<8x16xf32>
    %c0_2 = arith.constant 0 : index
    %c0_3 = arith.constant 0 : index
    %2 = vector.load %arg4[%c0_2, %c0_3] : memref<16x32xf32, #tpu.memory_space<vmem>>, vector<16x32xf32>
    %cst = arith.constant dense<0.000000e+00> : vector<8x32xf32>
    %3 = tpu.matmul %1, %2, %cst {dimension_numbers = #tpu.dot_dimension_numbers<[1], [0], [0], [1], [0, 0, 1, 1], [], []>} : vector<8x16xf32>, vector<16x32xf32>, vector<8x32xf32> -> vector<8x32xf32>
    %c0_4 = arith.constant 0 : index
    %c0_5 = arith.constant 0 : index
    %4 = vector.load %arg5[%c0_4, %c0_5] : memref<1x32xf32, #tpu.memory_space<vmem>>, vector<1x32xf32>
    %5 = vector.broadcast %4 : vector<1x32xf32> to vector<8x32xf32>
    %6 = arith.addf %3, %5 : vector<8x32xf32>
    %c0_6 = arith.constant 0 : index
    %c0_7 = arith.constant 0 : index
    %c0_8 = arith.constant 0 : index
    %7 = vector.load %arg13[%c0_6, %c0_7, %c0_8] : memref<4x32x32xf32, #tpu.memory_space<vmem>>, vector<1x32x32xf32>
    %8 = vector.shape_cast %7 : vector<1x32x32xf32> to vector<32x32xf32>
    %cst_9 = arith.constant dense<0.000000e+00> : vector<8x32xf32>
    %9 = tpu.matmul %6, %8, %cst_9 {dimension_numbers = #tpu.dot_dimension_numbers<[1], [0], [0], [1], [0, 0, 1, 1], [], []>} : vector<8x32xf32>, vector<32x32xf32>, vector<8x32xf32> -> vector<8x32xf32>
    %c0_10 = arith.constant 0 : index
    %c0_11 = arith.constant 0 : index
    %c0_12 = arith.constant 0 : index
    %10 = vector.load %arg14[%c0_10, %c0_11, %c0_12] : memref<4x1x32xf32, #tpu.memory_space<vmem>>, vector<1x1x32xf32>
    %11 = vector.shape_cast %10 : vector<1x1x32xf32> to vector<1x32xf32>
    %12 = vector.broadcast %11 : vector<1x32xf32> to vector<8x32xf32>
    %13 = arith.addf %9, %12 : vector<8x32xf32>
    %c0_i32 = arith.constant 0 : i32
    %c0_i32_13 = arith.constant 0 : i32
    %14 = arith.addi %c0_i32_13, %c0_i32 : i32
    %15 = arith.index_cast %14 : i32 to index
    %c0_14 = arith.constant 0 : index
    %c0_15 = arith.constant 0 : index
    %16 = vector.load %arg10[%15, %c0_14, %c0_15] : memref<16x32x8xf32, #tpu.memory_space<vmem>>, vector<1x32x8xf32>
    %17 = vector.shape_cast %16 : vector<1x32x8xf32> to vector<32x8xf32>
    %cst_16 = arith.constant dense<0.000000e+00> : vector<8x8xf32>
    %18 = tpu.matmul %6, %17, %cst_16 {dimension_numbers = #tpu.dot_dimension_numbers<[1], [0], [0], [1], [0, 0, 1, 1], [], []>} : vector<8x32xf32>, vector<32x8xf32>, vector<8x8xf32> -> vector<8x8xf32>
    %19 = arith.index_cast %14 : i32 to index
    %c0_17 = arith.constant 0 : index
    %c0_18 = arith.constant 0 : index
    %20 = vector.load %arg11[%19, %c0_17, %c0_18] : memref<16x32x8xf32, #tpu.memory_space<vmem>>, vector<1x32x8xf32>
    %21 = vector.shape_cast %20 : vector<1x32x8xf32> to vector<32x8xf32>
    %cst_19 = arith.constant dense<0.000000e+00> : vector<8x8xf32>
    %22 = tpu.matmul %6, %21, %cst_19 {dimension_numbers = #tpu.dot_dimension_numbers<[1], [0], [0], [1], [0, 0, 1, 1], [], []>} : vector<8x32xf32>, vector<32x8xf32>, vector<8x8xf32> -> vector<8x8xf32>
    %23 = arith.index_cast %14 : i32 to index
    %c0_20 = arith.constant 0 : index
    %c0_21 = arith.constant 0 : index
    %24 = vector.load %arg12[%23, %c0_20, %c0_21] : memref<16x32x32xf32, #tpu.memory_space<vmem>>, vector<1x32x32xf32>
    %25 = vector.shape_cast %24 : vector<1x32x32xf32> to vector<32x32xf32>
    %cst_22 = arith.constant dense<0.000000e+00> : vector<8x32xf32>
    %26 = tpu.matmul %6, %25, %cst_22 {dimension_numbers = #tpu.dot_dimension_numbers<[1], [0], [0], [1], [0, 0, 1, 1], [], []>} : vector<8x32xf32>, vector<32x32xf32>, vector<8x32xf32> -> vector<8x32xf32>
    %cst_23 = arith.constant dense<0.000000e+00> : vector<8x8xf32>
    %27 = tpu.matmul %22, %18, %cst_23 {dimension_numbers = #tpu.dot_dimension_numbers<[1], [1], [0], [0], [0, 0, 1, 0], [], []>} : vector<8x8xf32>, vector<8x8xf32>, vector<8x8xf32> -> vector<8x8xf32>
    %cst_24 = arith.constant dense<0xFF800000> : vector<8xf32>
    %28 = vector.multi_reduction <maximumf>, %27, %cst_24 [1] : vector<8x8xf32> to vector<8xf32>
    %29 = vector.shape_cast %28 : vector<8xf32> to vector<8x1xf32>
    %30 = vector.broadcast %29 : vector<8x1xf32> to vector<8x8xf32>
    %31 = arith.subf %27, %30 : vector<8x8xf32>
    %32 = math.exp %31 : vector<8x8xf32>
    %cst_25 = arith.constant dense<0.000000e+00> : vector<8xf32>
    %33 = vector.multi_reduction <add>, %32, %cst_25 [1] : vector<8x8xf32> to vector<8xf32>
    %34 = vector.shape_cast %33 : vector<8xf32> to vector<8x1xf32>
    %35 = tpu.reciprocal %34 {approx = true} : vector<8x1xf32> -> vector<8x1xf32>
    %36 = vector.broadcast %35 : vector<8x1xf32> to vector<8x8xf32>
    %37 = arith.mulf %32, %36 : vector<8x8xf32>
    %cst_26 = arith.constant dense<0.000000e+00> : vector<8x32xf32>
    %38 = tpu.matmul %37, %26, %cst_26 {dimension_numbers = #tpu.dot_dimension_numbers<[1], [0], [0], [1], [0, 0, 1, 1], [], []>} : vector<8x8xf32>, vector<8x32xf32>, vector<8x32xf32> -> vector<8x32xf32>
    %39 = arith.addf %13, %38 : vector<8x32xf32>
    %c1_i32 = arith.constant 1 : i32
    %c0_i32_27 = arith.constant 0 : i32
    %40 = arith.addi %c0_i32_27, %c1_i32 : i32
    %41 = arith.index_cast %40 : i32 to index
    %c0_28 = arith.constant 0 : index
    %c0_29 = arith.constant 0 : index
    %42 = vector.load %arg10[%41, %c0_28, %c0_29] : memref<16x32x8xf32, #tpu.memory_space<vmem>>, vector<1x32x8xf32>
    %43 = vector.shape_cast %42 : vector<1x32x8xf32> to vector<32x8xf32>
    %cst_30 = arith.constant dense<0.000000e+00> : vector<8x8xf32>
    %44 = tpu.matmul %6, %43, %cst_30 {dimension_numbers = #tpu.dot_dimension_numbers<[1], [0], [0], [1], [0, 0, 1, 1], [], []>} : vector<8x32xf32>, vector<32x8xf32>, vector<8x8xf32> -> vector<8x8xf32>
    %45 = arith.index_cast %40 : i32 to index
    %c0_31 = arith.constant 0 : index
    %c0_32 = arith.constant 0 : index
    %46 = vector.load %arg11[%45, %c0_31, %c0_32] : memref<16x32x8xf32, #tpu.memory_space<vmem>>, vector<1x32x8xf32>
    %47 = vector.shape_cast %46 : vector<1x32x8xf32> to vector<32x8xf32>
    %cst_33 = arith.constant dense<0.000000e+00> : vector<8x8xf32>
    %48 = tpu.matmul %6, %47, %cst_33 {dimension_numbers = #tpu.dot_dimension_numbers<[1], [0], [0], [1], [0, 0, 1, 1], [], []>} : vector<8x32xf32>, vector<32x8xf32>, vector<8x8xf32> -> vector<8x8xf32>
    %49 = arith.index_cast %40 : i32 to index
    %c0_34 = arith.constant 0 : index
    %c0_35 = arith.constant 0 : index
    %50 = vector.load %arg12[%49, %c0_34, %c0_35] : memref<16x32x32xf32, #tpu.memory_space<vmem>>, vector<1x32x32xf32>
    %51 = vector.shape_cast %50 : vector<1x32x32xf32> to vector<32x32xf32>
    %cst_36 = arith.constant dense<0.000000e+00> : vector<8x32xf32>
    %52 = tpu.matmul %6, %51, %cst_36 {dimension_numbers = #tpu.dot_dimension_numbers<[1], [0], [0], [1], [0, 0, 1, 1], [], []>} : vector<8x32xf32>, vector<32x32xf32>, vector<8x32xf32> -> vector<8x32xf32>
    %cst_37 = arith.constant dense<0.000000e+00> : vector<8x8xf32>
    %53 = tpu.matmul %48, %44, %cst_37 {dimension_numbers = #tpu.dot_dimension_numbers<[1], [1], [0], [0], [0, 0, 1, 0], [], []>} : vector<8x8xf32>, vector<8x8xf32>, vector<8x8xf32> -> vector<8x8xf32>
    %cst_38 = arith.constant dense<0xFF800000> : vector<8xf32>
    %54 = vector.multi_reduction <maximumf>, %53, %cst_38 [1] : vector<8x8xf32> to vector<8xf32>
    %55 = vector.shape_cast %54 : vector<8xf32> to vector<8x1xf32>
    %56 = vector.broadcast %55 : vector<8x1xf32> to vector<8x8xf32>
    %57 = arith.subf %53, %56 : vector<8x8xf32>
    %58 = math.exp %57 : vector<8x8xf32>
    %cst_39 = arith.constant dense<0.000000e+00> : vector<8xf32>
    %59 = vector.multi_reduction <add>, %58, %cst_39 [1] : vector<8x8xf32> to vector<8xf32>
    %60 = vector.shape_cast %59 : vector<8xf32> to vector<8x1xf32>
    %61 = tpu.reciprocal %60 {approx = true} : vector<8x1xf32> -> vector<8x1xf32>
    %62 = vector.broadcast %61 : vector<8x1xf32> to vector<8x8xf32>
    %63 = arith.mulf %58, %62 : vector<8x8xf32>
    %cst_40 = arith.constant dense<0.000000e+00> : vector<8x32xf32>
    %64 = tpu.matmul %63, %52, %cst_40 {dimension_numbers = #tpu.dot_dimension_numbers<[1], [0], [0], [1], [0, 0, 1, 1], [], []>} : vector<8x8xf32>, vector<8x32xf32>, vector<8x32xf32> -> vector<8x32xf32>
    %65 = arith.addf %39, %64 : vector<8x32xf32>
    %c2_i32 = arith.constant 2 : i32
    %c0_i32_41 = arith.constant 0 : i32
    %66 = arith.addi %c0_i32_41, %c2_i32 : i32
    %67 = arith.index_cast %66 : i32 to index
    %c0_42 = arith.constant 0 : index
    %c0_43 = arith.constant 0 : index
    %68 = vector.load %arg10[%67, %c0_42, %c0_43] : memref<16x32x8xf32, #tpu.memory_space<vmem>>, vector<1x32x8xf32>
    %69 = vector.shape_cast %68 : vector<1x32x8xf32> to vector<32x8xf32>
    %cst_44 = arith.constant dense<0.000000e+00> : vector<8x8xf32>
    %70 = tpu.matmul %6, %69, %cst_44 {dimension_numbers = #tpu.dot_dimension_numbers<[1], [0], [0], [1], [0, 0, 1, 1], [], []>} : vector<8x32xf32>, vector<32x8xf32>, vector<8x8xf32> -> vector<8x8xf32>
    %71 = arith.index_cast %66 : i32 to index
    %c0_45 = arith.constant 0 : index
    %c0_46 = arith.constant 0 : index
    %72 = vector.load %arg11[%71, %c0_45, %c0_46] : memref<16x32x8xf32, #tpu.memory_space<vmem>>, vector<1x32x8xf32>
    %73 = vector.shape_cast %72 : vector<1x32x8xf32> to vector<32x8xf32>
    %cst_47 = arith.constant dense<0.000000e+00> : vector<8x8xf32>
    %74 = tpu.matmul %6, %73, %cst_47 {dimension_numbers = #tpu.dot_dimension_numbers<[1], [0], [0], [1], [0, 0, 1, 1], [], []>} : vector<8x32xf32>, vector<32x8xf32>, vector<8x8xf32> -> vector<8x8xf32>
    %75 = arith.index_cast %66 : i32 to index
    %c0_48 = arith.constant 0 : index
    %c0_49 = arith.constant 0 : index
    %76 = vector.load %arg12[%75, %c0_48, %c0_49] : memref<16x32x32xf32, #tpu.memory_space<vmem>>, vector<1x32x32xf32>
    %77 = vector.shape_cast %76 : vector<1x32x32xf32> to vector<32x32xf32>
    %cst_50 = arith.constant dense<0.000000e+00> : vector<8x32xf32>
    %78 = tpu.matmul %6, %77, %cst_50 {dimension_numbers = #tpu.dot_dimension_numbers<[1], [0], [0], [1], [0, 0, 1, 1], [], []>} : vector<8x32xf32>, vector<32x32xf32>, vector<8x32xf32> -> vector<8x32xf32>
    %cst_51 = arith.constant dense<0.000000e+00> : vector<8x8xf32>
    %79 = tpu.matmul %74, %70, %cst_51 {dimension_numbers = #tpu.dot_dimension_numbers<[1], [1], [0], [0], [0, 0, 1, 0], [], []>} : vector<8x8xf32>, vector<8x8xf32>, vector<8x8xf32> -> vector<8x8xf32>
    %cst_52 = arith.constant dense<0xFF800000> : vector<8xf32>
    %80 = vector.multi_reduction <maximumf>, %79, %cst_52 [1] : vector<8x8xf32> to vector<8xf32>
    %81 = vector.shape_cast %80 : vector<8xf32> to vector<8x1xf32>
    %82 = vector.broadcast %81 : vector<8x1xf32> to vector<8x8xf32>
    %83 = arith.subf %79, %82 : vector<8x8xf32>
    %84 = math.exp %83 : vector<8x8xf32>
    %cst_53 = arith.constant dense<0.000000e+00> : vector<8xf32>
    %85 = vector.multi_reduction <add>, %84, %cst_53 [1] : vector<8x8xf32> to vector<8xf32>
    %86 = vector.shape_cast %85 : vector<8xf32> to vector<8x1xf32>
    %87 = tpu.reciprocal %86 {approx = true} : vector<8x1xf32> -> vector<8x1xf32>
    %88 = vector.broadcast %87 : vector<8x1xf32> to vector<8x8xf32>
    %89 = arith.mulf %84, %88 : vector<8x8xf32>
    %cst_54 = arith.constant dense<0.000000e+00> : vector<8x32xf32>
    %90 = tpu.matmul %89, %78, %cst_54 {dimension_numbers = #tpu.dot_dimension_numbers<[1], [0], [0], [1], [0, 0, 1, 1], [], []>} : vector<8x8xf32>, vector<8x32xf32>, vector<8x32xf32> -> vector<8x32xf32>
    %91 = arith.addf %65, %90 : vector<8x32xf32>
    %c3_i32 = arith.constant 3 : i32
    %c0_i32_55 = arith.constant 0 : i32
    %92 = arith.addi %c0_i32_55, %c3_i32 : i32
    %93 = arith.index_cast %92 : i32 to index
    %c0_56 = arith.constant 0 : index
    %c0_57 = arith.constant 0 : index
    %94 = vector.load %arg10[%93, %c0_56, %c0_57] : memref<16x32x8xf32, #tpu.memory_space<vmem>>, vector<1x32x8xf32>
    %95 = vector.shape_cast %94 : vector<1x32x8xf32> to vector<32x8xf32>
    %cst_58 = arith.constant dense<0.000000e+00> : vector<8x8xf32>
    %96 = tpu.matmul %6, %95, %cst_58 {dimension_numbers = #tpu.dot_dimension_numbers<[1], [0], [0], [1], [0, 0, 1, 1], [], []>} : vector<8x32xf32>, vector<32x8xf32>, vector<8x8xf32> -> vector<8x8xf32>
    %97 = arith.index_cast %92 : i32 to index
    %c0_59 = arith.constant 0 : index
    %c0_60 = arith.constant 0 : index
    %98 = vector.load %arg11[%97, %c0_59, %c0_60] : memref<16x32x8xf32, #tpu.memory_space<vmem>>, vector<1x32x8xf32>
    %99 = vector.shape_cast %98 : vector<1x32x8xf32> to vector<32x8xf32>
    %cst_61 = arith.constant dense<0.000000e+00> : vector<8x8xf32>
    %100 = tpu.matmul %6, %99, %cst_61 {dimension_numbers = #tpu.dot_dimension_numbers<[1], [0], [0], [1], [0, 0, 1, 1], [], []>} : vector<8x32xf32>, vector<32x8xf32>, vector<8x8xf32> -> vector<8x8xf32>
    %101 = arith.index_cast %92 : i32 to index
    %c0_62 = arith.constant 0 : index
    %c0_63 = arith.constant 0 : index
    %102 = vector.load %arg12[%101, %c0_62, %c0_63] : memref<16x32x32xf32, #tpu.memory_space<vmem>>, vector<1x32x32xf32>
    %103 = vector.shape_cast %102 : vector<1x32x32xf32> to vector<32x32xf32>
    %cst_64 = arith.constant dense<0.000000e+00> : vector<8x32xf32>
    %104 = tpu.matmul %6, %103, %cst_64 {dimension_numbers = #tpu.dot_dimension_numbers<[1], [0], [0], [1], [0, 0, 1, 1], [], []>} : vector<8x32xf32>, vector<32x32xf32>, vector<8x32xf32> -> vector<8x32xf32>
    %cst_65 = arith.constant dense<0.000000e+00> : vector<8x8xf32>
    %105 = tpu.matmul %100, %96, %cst_65 {dimension_numbers = #tpu.dot_dimension_numbers<[1], [1], [0], [0], [0, 0, 1, 0], [], []>} : vector<8x8xf32>, vector<8x8xf32>, vector<8x8xf32> -> vector<8x8xf32>
    %cst_66 = arith.constant dense<0xFF800000> : vector<8xf32>
    %106 = vector.multi_reduction <maximumf>, %105, %cst_66 [1] : vector<8x8xf32> to vector<8xf32>
    %107 = vector.shape_cast %106 : vector<8xf32> to vector<8x1xf32>
    %108 = vector.broadcast %107 : vector<8x1xf32> to vector<8x8xf32>
    %109 = arith.subf %105, %108 : vector<8x8xf32>
    %110 = math.exp %109 : vector<8x8xf32>
    %cst_67 = arith.constant dense<0.000000e+00> : vector<8xf32>
    %111 = vector.multi_reduction <add>, %110, %cst_67 [1] : vector<8x8xf32> to vector<8xf32>
    %112 = vector.shape_cast %111 : vector<8xf32> to vector<8x1xf32>
    %113 = tpu.reciprocal %112 {approx = true} : vector<8x1xf32> -> vector<8x1xf32>
    %114 = vector.broadcast %113 : vector<8x1xf32> to vector<8x8xf32>
    %115 = arith.mulf %110, %114 : vector<8x8xf32>
    %cst_68 = arith.constant dense<0.000000e+00> : vector<8x32xf32>
    %116 = tpu.matmul %115, %104, %cst_68 {dimension_numbers = #tpu.dot_dimension_numbers<[1], [0], [0], [1], [0, 0, 1, 1], [], []>} : vector<8x8xf32>, vector<8x32xf32>, vector<8x32xf32> -> vector<8x32xf32>
    %117 = arith.addf %91, %116 : vector<8x32xf32>
    %c4_i32 = arith.constant 4 : i32
    %118 = arith.addf %117, %6 : vector<8x32xf32>
    %cst_69 = arith.constant dense<0.000000e+00> : vector<8xf32>
    %119 = vector.multi_reduction <add>, %118, %cst_69 [1] : vector<8x32xf32> to vector<8xf32>
    %120 = vector.shape_cast %119 : vector<8xf32> to vector<8x1xf32>
    %cst_70 = arith.constant 3.200000e+01 : f32
    %121 = vector.broadcast %cst_70 : f32 to vector<8x1xf32>
    %122 = arith.divf %120, %121 : vector<8x1xf32>
    %123 = vector.broadcast %122 : vector<8x1xf32> to vector<8x32xf32>
    %124 = arith.subf %118, %123 : vector<8x32xf32>
    %125 = arith.mulf %124, %124 : vector<8x32xf32>
    %cst_71 = arith.constant dense<0.000000e+00> : vector<8xf32>
    %126 = vector.multi_reduction <add>, %125, %cst_71 [1] : vector<8x32xf32> to vector<8xf32>
    %127 = vector.shape_cast %126 : vector<8xf32> to vector<8x1xf32>
    %cst_72 = arith.constant 3.200000e+01 : f32
    %128 = vector.broadcast %cst_72 : f32 to vector<8x1xf32>
    %129 = arith.divf %127, %128 : vector<8x1xf32>
    %130 = vector.broadcast %122 : vector<8x1xf32> to vector<8x32xf32>
    %131 = arith.subf %118, %130 : vector<8x32xf32>
    %cst_73 = arith.constant 9.99999974E-6 : f32
    %132 = vector.broadcast %cst_73 : f32 to vector<8x1xf32>
    %133 = arith.addf %129, %132 : vector<8x1xf32>
    %134 = math.rsqrt %133 : vector<8x1xf32>
    %135 = vector.broadcast %134 : vector<8x1xf32> to vector<8x32xf32>
    %136 = arith.mulf %131, %135 : vector<8x32xf32>
    %c0_74 = arith.constant 0 : index
    %c0_75 = arith.constant 0 : index
    %c0_76 = arith.constant 0 : index
    %137 = vector.load %arg15[%c0_74, %c0_75, %c0_76] : memref<4x1x32xf32, #tpu.memory_space<vmem>>, vector<1x1x32xf32>
    %138 = vector.shape_cast %137 : vector<1x1x32xf32> to vector<1x32xf32>
    %139 = vector.broadcast %138 : vector<1x32xf32> to vector<8x32xf32>
    %140 = arith.mulf %136, %139 : vector<8x32xf32>
    %c0_77 = arith.constant 0 : index
    %c0_78 = arith.constant 0 : index
    %c0_79 = arith.constant 0 : index
    %141 = vector.load %arg16[%c0_77, %c0_78, %c0_79] : memref<4x1x32xf32, #tpu.memory_space<vmem>>, vector<1x1x32xf32>
    %142 = vector.shape_cast %141 : vector<1x1x32xf32> to vector<1x32xf32>
    %143 = vector.broadcast %142 : vector<1x32xf32> to vector<8x32xf32>
    %144 = arith.addf %140, %143 : vector<8x32xf32>
    %c1 = arith.constant 1 : index
    %c0_80 = arith.constant 0 : index
    %c0_81 = arith.constant 0 : index
    %145 = vector.load %arg13[%c1, %c0_80, %c0_81] : memref<4x32x32xf32, #tpu.memory_space<vmem>>, vector<1x32x32xf32>
    %146 = vector.shape_cast %145 : vector<1x32x32xf32> to vector<32x32xf32>
    %cst_82 = arith.constant dense<0.000000e+00> : vector<8x32xf32>
    %147 = tpu.matmul %144, %146, %cst_82 {dimension_numbers = #tpu.dot_dimension_numbers<[1], [0], [0], [1], [0, 0, 1, 1], [], []>} : vector<8x32xf32>, vector<32x32xf32>, vector<8x32xf32> -> vector<8x32xf32>
    %c1_83 = arith.constant 1 : index
    %c0_84 = arith.constant 0 : index
    %c0_85 = arith.constant 0 : index
    %148 = vector.load %arg14[%c1_83, %c0_84, %c0_85] : memref<4x1x32xf32, #tpu.memory_space<vmem>>, vector<1x1x32xf32>
    %149 = vector.shape_cast %148 : vector<1x1x32xf32> to vector<1x32xf32>
    %150 = vector.broadcast %149 : vector<1x32xf32> to vector<8x32xf32>
    %151 = arith.addf %147, %150 : vector<8x32xf32>
    %c0_i32_86 = arith.constant 0 : i32
    %c4_i32_87 = arith.constant 4 : i32
    %152 = arith.addi %c4_i32_87, %c0_i32_86 : i32
    %153 = arith.index_cast %152 : i32 to index
    %c0_88 = arith.constant 0 : index
    %c0_89 = arith.constant 0 : index
    %154 = vector.load %arg10[%153, %c0_88, %c0_89] : memref<16x32x8xf32, #tpu.memory_space<vmem>>, vector<1x32x8xf32>
    %155 = vector.shape_cast %154 : vector<1x32x8xf32> to vector<32x8xf32>
    %cst_90 = arith.constant dense<0.000000e+00> : vector<8x8xf32>
    %156 = tpu.matmul %144, %155, %cst_90 {dimension_numbers = #tpu.dot_dimension_numbers<[1], [0], [0], [1], [0, 0, 1, 1], [], []>} : vector<8x32xf32>, vector<32x8xf32>, vector<8x8xf32> -> vector<8x8xf32>
    %157 = arith.index_cast %152 : i32 to index
    %c0_91 = arith.constant 0 : index
    %c0_92 = arith.constant 0 : index
    %158 = vector.load %arg11[%157, %c0_91, %c0_92] : memref<16x32x8xf32, #tpu.memory_space<vmem>>, vector<1x32x8xf32>
    %159 = vector.shape_cast %158 : vector<1x32x8xf32> to vector<32x8xf32>
    %cst_93 = arith.constant dense<0.000000e+00> : vector<8x8xf32>
    %160 = tpu.matmul %144, %159, %cst_93 {dimension_numbers = #tpu.dot_dimension_numbers<[1], [0], [0], [1], [0, 0, 1, 1], [], []>} : vector<8x32xf32>, vector<32x8xf32>, vector<8x8xf32> -> vector<8x8xf32>
    %161 = arith.index_cast %152 : i32 to index
    %c0_94 = arith.constant 0 : index
    %c0_95 = arith.constant 0 : index
    %162 = vector.load %arg12[%161, %c0_94, %c0_95] : memref<16x32x32xf32, #tpu.memory_space<vmem>>, vector<1x32x32xf32>
    %163 = vector.shape_cast %162 : vector<1x32x32xf32> to vector<32x32xf32>
    %cst_96 = arith.constant dense<0.000000e+00> : vector<8x32xf32>
    %164 = tpu.matmul %144, %163, %cst_96 {dimension_numbers = #tpu.dot_dimension_numbers<[1], [0], [0], [1], [0, 0, 1, 1], [], []>} : vector<8x32xf32>, vector<32x32xf32>, vector<8x32xf32> -> vector<8x32xf32>
    %cst_97 = arith.constant dense<0.000000e+00> : vector<8x8xf32>
    %165 = tpu.matmul %160, %156, %cst_97 {dimension_numbers = #tpu.dot_dimension_numbers<[1], [1], [0], [0], [0, 0, 1, 0], [], []>} : vector<8x8xf32>, vector<8x8xf32>, vector<8x8xf32> -> vector<8x8xf32>
    %cst_98 = arith.constant dense<0xFF800000> : vector<8xf32>
    %166 = vector.multi_reduction <maximumf>, %165, %cst_98 [1] : vector<8x8xf32> to vector<8xf32>
    %167 = vector.shape_cast %166 : vector<8xf32> to vector<8x1xf32>
    %168 = vector.broadcast %167 : vector<8x1xf32> to vector<8x8xf32>
    %169 = arith.subf %165, %168 : vector<8x8xf32>
    %170 = math.exp %169 : vector<8x8xf32>
    %cst_99 = arith.constant dense<0.000000e+00> : vector<8xf32>
    %171 = vector.multi_reduction <add>, %170, %cst_99 [1] : vector<8x8xf32> to vector<8xf32>
    %172 = vector.shape_cast %171 : vector<8xf32> to vector<8x1xf32>
    %173 = tpu.reciprocal %172 {approx = true} : vector<8x1xf32> -> vector<8x1xf32>
    %174 = vector.broadcast %173 : vector<8x1xf32> to vector<8x8xf32>
    %175 = arith.mulf %170, %174 : vector<8x8xf32>
    %cst_100 = arith.constant dense<0.000000e+00> : vector<8x32xf32>
    %176 = tpu.matmul %175, %164, %cst_100 {dimension_numbers = #tpu.dot_dimension_numbers<[1], [0], [0], [1], [0, 0, 1, 1], [], []>} : vector<8x8xf32>, vector<8x32xf32>, vector<8x32xf32> -> vector<8x32xf32>
    %177 = arith.addf %151, %176 : vector<8x32xf32>
    %c1_i32_101 = arith.constant 1 : i32
    %c4_i32_102 = arith.constant 4 : i32
    %178 = arith.addi %c4_i32_102, %c1_i32_101 : i32
    %179 = arith.index_cast %178 : i32 to index
    %c0_103 = arith.constant 0 : index
    %c0_104 = arith.constant 0 : index
    %180 = vector.load %arg10[%179, %c0_103, %c0_104] : memref<16x32x8xf32, #tpu.memory_space<vmem>>, vector<1x32x8xf32>
    %181 = vector.shape_cast %180 : vector<1x32x8xf32> to vector<32x8xf32>
    %cst_105 = arith.constant dense<0.000000e+00> : vector<8x8xf32>
    %182 = tpu.matmul %144, %181, %cst_105 {dimension_numbers = #tpu.dot_dimension_numbers<[1], [0], [0], [1], [0, 0, 1, 1], [], []>} : vector<8x32xf32>, vector<32x8xf32>, vector<8x8xf32> -> vector<8x8xf32>
    %183 = arith.index_cast %178 : i32 to index
    %c0_106 = arith.constant 0 : index
    %c0_107 = arith.constant 0 : index
    %184 = vector.load %arg11[%183, %c0_106, %c0_107] : memref<16x32x8xf32, #tpu.memory_space<vmem>>, vector<1x32x8xf32>
    %185 = vector.shape_cast %184 : vector<1x32x8xf32> to vector<32x8xf32>
    %cst_108 = arith.constant dense<0.000000e+00> : vector<8x8xf32>
    %186 = tpu.matmul %144, %185, %cst_108 {dimension_numbers = #tpu.dot_dimension_numbers<[1], [0], [0], [1], [0, 0, 1, 1], [], []>} : vector<8x32xf32>, vector<32x8xf32>, vector<8x8xf32> -> vector<8x8xf32>
    %187 = arith.index_cast %178 : i32 to index
    %c0_109 = arith.constant 0 : index
    %c0_110 = arith.constant 0 : index
    %188 = vector.load %arg12[%187, %c0_109, %c0_110] : memref<16x32x32xf32, #tpu.memory_space<vmem>>, vector<1x32x32xf32>
    %189 = vector.shape_cast %188 : vector<1x32x32xf32> to vector<32x32xf32>
    %cst_111 = arith.constant dense<0.000000e+00> : vector<8x32xf32>
    %190 = tpu.matmul %144, %189, %cst_111 {dimension_numbers = #tpu.dot_dimension_numbers<[1], [0], [0], [1], [0, 0, 1, 1], [], []>} : vector<8x32xf32>, vector<32x32xf32>, vector<8x32xf32> -> vector<8x32xf32>
    %cst_112 = arith.constant dense<0.000000e+00> : vector<8x8xf32>
    %191 = tpu.matmul %186, %182, %cst_112 {dimension_numbers = #tpu.dot_dimension_numbers<[1], [1], [0], [0], [0, 0, 1, 0], [], []>} : vector<8x8xf32>, vector<8x8xf32>, vector<8x8xf32> -> vector<8x8xf32>
    %cst_113 = arith.constant dense<0xFF800000> : vector<8xf32>
    %192 = vector.multi_reduction <maximumf>, %191, %cst_113 [1] : vector<8x8xf32> to vector<8xf32>
    %193 = vector.shape_cast %192 : vector<8xf32> to vector<8x1xf32>
    %194 = vector.broadcast %193 : vector<8x1xf32> to vector<8x8xf32>
    %195 = arith.subf %191, %194 : vector<8x8xf32>
    %196 = math.exp %195 : vector<8x8xf32>
    %cst_114 = arith.constant dense<0.000000e+00> : vector<8xf32>
    %197 = vector.multi_reduction <add>, %196, %cst_114 [1] : vector<8x8xf32> to vector<8xf32>
    %198 = vector.shape_cast %197 : vector<8xf32> to vector<8x1xf32>
    %199 = tpu.reciprocal %198 {approx = true} : vector<8x1xf32> -> vector<8x1xf32>
    %200 = vector.broadcast %199 : vector<8x1xf32> to vector<8x8xf32>
    %201 = arith.mulf %196, %200 : vector<8x8xf32>
    %cst_115 = arith.constant dense<0.000000e+00> : vector<8x32xf32>
    %202 = tpu.matmul %201, %190, %cst_115 {dimension_numbers = #tpu.dot_dimension_numbers<[1], [0], [0], [1], [0, 0, 1, 1], [], []>} : vector<8x8xf32>, vector<8x32xf32>, vector<8x32xf32> -> vector<8x32xf32>
    %203 = arith.addf %177, %202 : vector<8x32xf32>
    %c2_i32_116 = arith.constant 2 : i32
    %c4_i32_117 = arith.constant 4 : i32
    %204 = arith.addi %c4_i32_117, %c2_i32_116 : i32
    %205 = arith.index_cast %204 : i32 to index
    %c0_118 = arith.constant 0 : index
    %c0_119 = arith.constant 0 : index
    %206 = vector.load %arg10[%205, %c0_118, %c0_119] : memref<16x32x8xf32, #tpu.memory_space<vmem>>, vector<1x32x8xf32>
    %207 = vector.shape_cast %206 : vector<1x32x8xf32> to vector<32x8xf32>
    %cst_120 = arith.constant dense<0.000000e+00> : vector<8x8xf32>
    %208 = tpu.matmul %144, %207, %cst_120 {dimension_numbers = #tpu.dot_dimension_numbers<[1], [0], [0], [1], [0, 0, 1, 1], [], []>} : vector<8x32xf32>, vector<32x8xf32>, vector<8x8xf32> -> vector<8x8xf32>
    %209 = arith.index_cast %204 : i32 to index
    %c0_121 = arith.constant 0 : index
    %c0_122 = arith.constant 0 : index
    %210 = vector.load %arg11[%209, %c0_121, %c0_122] : memref<16x32x8xf32, #tpu.memory_space<vmem>>, vector<1x32x8xf32>
    %211 = vector.shape_cast %210 : vector<1x32x8xf32> to vector<32x8xf32>
    %cst_123 = arith.constant dense<0.000000e+00> : vector<8x8xf32>
    %212 = tpu.matmul %144, %211, %cst_123 {dimension_numbers = #tpu.dot_dimension_numbers<[1], [0], [0], [1], [0, 0, 1, 1], [], []>} : vector<8x32xf32>, vector<32x8xf32>, vector<8x8xf32> -> vector<8x8xf32>
    %213 = arith.index_cast %204 : i32 to index
    %c0_124 = arith.constant 0 : index
    %c0_125 = arith.constant 0 : index
    %214 = vector.load %arg12[%213, %c0_124, %c0_125] : memref<16x32x32xf32, #tpu.memory_space<vmem>>, vector<1x32x32xf32>
    %215 = vector.shape_cast %214 : vector<1x32x32xf32> to vector<32x32xf32>
    %cst_126 = arith.constant dense<0.000000e+00> : vector<8x32xf32>
    %216 = tpu.matmul %144, %215, %cst_126 {dimension_numbers = #tpu.dot_dimension_numbers<[1], [0], [0], [1], [0, 0, 1, 1], [], []>} : vector<8x32xf32>, vector<32x32xf32>, vector<8x32xf32> -> vector<8x32xf32>
    %cst_127 = arith.constant dense<0.000000e+00> : vector<8x8xf32>
    %217 = tpu.matmul %212, %208, %cst_127 {dimension_numbers = #tpu.dot_dimension_numbers<[1], [1], [0], [0], [0, 0, 1, 0], [], []>} : vector<8x8xf32>, vector<8x8xf32>, vector<8x8xf32> -> vector<8x8xf32>
    %cst_128 = arith.constant dense<0xFF800000> : vector<8xf32>
    %218 = vector.multi_reduction <maximumf>, %217, %cst_128 [1] : vector<8x8xf32> to vector<8xf32>
    %219 = vector.shape_cast %218 : vector<8xf32> to vector<8x1xf32>
    %220 = vector.broadcast %219 : vector<8x1xf32> to vector<8x8xf32>
    %221 = arith.subf %217, %220 : vector<8x8xf32>
    %222 = math.exp %221 : vector<8x8xf32>
    %cst_129 = arith.constant dense<0.000000e+00> : vector<8xf32>
    %223 = vector.multi_reduction <add>, %222, %cst_129 [1] : vector<8x8xf32> to vector<8xf32>
    %224 = vector.shape_cast %223 : vector<8xf32> to vector<8x1xf32>
    %225 = tpu.reciprocal %224 {approx = true} : vector<8x1xf32> -> vector<8x1xf32>
    %226 = vector.broadcast %225 : vector<8x1xf32> to vector<8x8xf32>
    %227 = arith.mulf %222, %226 : vector<8x8xf32>
    %cst_130 = arith.constant dense<0.000000e+00> : vector<8x32xf32>
    %228 = tpu.matmul %227, %216, %cst_130 {dimension_numbers = #tpu.dot_dimension_numbers<[1], [0], [0], [1], [0, 0, 1, 1], [], []>} : vector<8x8xf32>, vector<8x32xf32>, vector<8x32xf32> -> vector<8x32xf32>
    %229 = arith.addf %203, %228 : vector<8x32xf32>
    %c3_i32_131 = arith.constant 3 : i32
    %c4_i32_132 = arith.constant 4 : i32
    %230 = arith.addi %c4_i32_132, %c3_i32_131 : i32
    %231 = arith.index_cast %230 : i32 to index
    %c0_133 = arith.constant 0 : index
    %c0_134 = arith.constant 0 : index
    %232 = vector.load %arg10[%231, %c0_133, %c0_134] : memref<16x32x8xf32, #tpu.memory_space<vmem>>, vector<1x32x8xf32>
    %233 = vector.shape_cast %232 : vector<1x32x8xf32> to vector<32x8xf32>
    %cst_135 = arith.constant dense<0.000000e+00> : vector<8x8xf32>
    %234 = tpu.matmul %144, %233, %cst_135 {dimension_numbers = #tpu.dot_dimension_numbers<[1], [0], [0], [1], [0, 0, 1, 1], [], []>} : vector<8x32xf32>, vector<32x8xf32>, vector<8x8xf32> -> vector<8x8xf32>
    %235 = arith.index_cast %230 : i32 to index
    %c0_136 = arith.constant 0 : index
    %c0_137 = arith.constant 0 : index
    %236 = vector.load %arg11[%235, %c0_136, %c0_137] : memref<16x32x8xf32, #tpu.memory_space<vmem>>, vector<1x32x8xf32>
    %237 = vector.shape_cast %236 : vector<1x32x8xf32> to vector<32x8xf32>
    %cst_138 = arith.constant dense<0.000000e+00> : vector<8x8xf32>
    %238 = tpu.matmul %144, %237, %cst_138 {dimension_numbers = #tpu.dot_dimension_numbers<[1], [0], [0], [1], [0, 0, 1, 1], [], []>} : vector<8x32xf32>, vector<32x8xf32>, vector<8x8xf32> -> vector<8x8xf32>
    %239 = arith.index_cast %230 : i32 to index
    %c0_139 = arith.constant 0 : index
    %c0_140 = arith.constant 0 : index
    %240 = vector.load %arg12[%239, %c0_139, %c0_140] : memref<16x32x32xf32, #tpu.memory_space<vmem>>, vector<1x32x32xf32>
    %241 = vector.shape_cast %240 : vector<1x32x32xf32> to vector<32x32xf32>
    %cst_141 = arith.constant dense<0.000000e+00> : vector<8x32xf32>
    %242 = tpu.matmul %144, %241, %cst_141 {dimension_numbers = #tpu.dot_dimension_numbers<[1], [0], [0], [1], [0, 0, 1, 1], [], []>} : vector<8x32xf32>, vector<32x32xf32>, vector<8x32xf32> -> vector<8x32xf32>
    %cst_142 = arith.constant dense<0.000000e+00> : vector<8x8xf32>
    %243 = tpu.matmul %238, %234, %cst_142 {dimension_numbers = #tpu.dot_dimension_numbers<[1], [1], [0], [0], [0, 0, 1, 0], [], []>} : vector<8x8xf32>, vector<8x8xf32>, vector<8x8xf32> -> vector<8x8xf32>
    %cst_143 = arith.constant dense<0xFF800000> : vector<8xf32>
    %244 = vector.multi_reduction <maximumf>, %243, %cst_143 [1] : vector<8x8xf32> to vector<8xf32>
    %245 = vector.shape_cast %244 : vector<8xf32> to vector<8x1xf32>
    %246 = vector.broadcast %245 : vector<8x1xf32> to vector<8x8xf32>
    %247 = arith.subf %243, %246 : vector<8x8xf32>
    %248 = math.exp %247 : vector<8x8xf32>
    %cst_144 = arith.constant dense<0.000000e+00> : vector<8xf32>
    %249 = vector.multi_reduction <add>, %248, %cst_144 [1] : vector<8x8xf32> to vector<8xf32>
    %250 = vector.shape_cast %249 : vector<8xf32> to vector<8x1xf32>
    %251 = tpu.reciprocal %250 {approx = true} : vector<8x1xf32> -> vector<8x1xf32>
    %252 = vector.broadcast %251 : vector<8x1xf32> to vector<8x8xf32>
    %253 = arith.mulf %248, %252 : vector<8x8xf32>
    %cst_145 = arith.constant dense<0.000000e+00> : vector<8x32xf32>
    %254 = tpu.matmul %253, %242, %cst_145 {dimension_numbers = #tpu.dot_dimension_numbers<[1], [0], [0], [1], [0, 0, 1, 1], [], []>} : vector<8x8xf32>, vector<8x32xf32>, vector<8x32xf32> -> vector<8x32xf32>
    %255 = arith.addf %229, %254 : vector<8x32xf32>
    %c4_i32_146 = arith.constant 4 : i32
    %256 = arith.addf %255, %144 : vector<8x32xf32>
    %cst_147 = arith.constant dense<0.000000e+00> : vector<8xf32>
    %257 = vector.multi_reduction <add>, %256, %cst_147 [1] : vector<8x32xf32> to vector<8xf32>
    %258 = vector.shape_cast %257 : vector<8xf32> to vector<8x1xf32>
    %cst_148 = arith.constant 3.200000e+01 : f32
    %259 = vector.broadcast %cst_148 : f32 to vector<8x1xf32>
    %260 = arith.divf %258, %259 : vector<8x1xf32>
    %261 = vector.broadcast %260 : vector<8x1xf32> to vector<8x32xf32>
    %262 = arith.subf %256, %261 : vector<8x32xf32>
    %263 = arith.mulf %262, %262 : vector<8x32xf32>
    %cst_149 = arith.constant dense<0.000000e+00> : vector<8xf32>
    %264 = vector.multi_reduction <add>, %263, %cst_149 [1] : vector<8x32xf32> to vector<8xf32>
    %265 = vector.shape_cast %264 : vector<8xf32> to vector<8x1xf32>
    %cst_150 = arith.constant 3.200000e+01 : f32
    %266 = vector.broadcast %cst_150 : f32 to vector<8x1xf32>
    %267 = arith.divf %265, %266 : vector<8x1xf32>
    %268 = vector.broadcast %260 : vector<8x1xf32> to vector<8x32xf32>
    %269 = arith.subf %256, %268 : vector<8x32xf32>
    %cst_151 = arith.constant 9.99999974E-6 : f32
    %270 = vector.broadcast %cst_151 : f32 to vector<8x1xf32>
    %271 = arith.addf %267, %270 : vector<8x1xf32>
    %272 = math.rsqrt %271 : vector<8x1xf32>
    %273 = vector.broadcast %272 : vector<8x1xf32> to vector<8x32xf32>
    %274 = arith.mulf %269, %273 : vector<8x32xf32>
    %c1_152 = arith.constant 1 : index
    %c0_153 = arith.constant 0 : index
    %c0_154 = arith.constant 0 : index
    %275 = vector.load %arg15[%c1_152, %c0_153, %c0_154] : memref<4x1x32xf32, #tpu.memory_space<vmem>>, vector<1x1x32xf32>
    %276 = vector.shape_cast %275 : vector<1x1x32xf32> to vector<1x32xf32>
    %277 = vector.broadcast %276 : vector<1x32xf32> to vector<8x32xf32>
    %278 = arith.mulf %274, %277 : vector<8x32xf32>
    %c1_155 = arith.constant 1 : index
    %c0_156 = arith.constant 0 : index
    %c0_157 = arith.constant 0 : index
    %279 = vector.load %arg16[%c1_155, %c0_156, %c0_157] : memref<4x1x32xf32, #tpu.memory_space<vmem>>, vector<1x1x32xf32>
    %280 = vector.shape_cast %279 : vector<1x1x32xf32> to vector<1x32xf32>
    %281 = vector.broadcast %280 : vector<1x32xf32> to vector<8x32xf32>
    %282 = arith.addf %278, %281 : vector<8x32xf32>
    %c0_158 = arith.constant 0 : index
    %c0_159 = arith.constant 0 : index
    %c0_160 = arith.constant 0 : index
    %283 = vector.load %arg3[%c0_158, %c0_159, %c0_160] : memref<1x8x8xf32, #tpu.memory_space<vmem>>, vector<1x8x8xf32>
    %284 = vector.shape_cast %283 : vector<1x8x8xf32> to vector<8x8xf32>
    %c0_161 = arith.constant 0 : index
    %c0_162 = arith.constant 0 : index
    %285 = vector.load %arg8[%c0_161, %c0_162] : memref<8x32xf32, #tpu.memory_space<vmem>>, vector<8x32xf32>
    %cst_163 = arith.constant dense<0.000000e+00> : vector<8x32xf32>
    %286 = tpu.matmul %284, %285, %cst_163 {dimension_numbers = #tpu.dot_dimension_numbers<[1], [0], [0], [1], [0, 0, 1, 1], [], []>} : vector<8x8xf32>, vector<8x32xf32>, vector<8x32xf32> -> vector<8x32xf32>
    %c0_164 = arith.constant 0 : index
    %c0_165 = arith.constant 0 : index
    %287 = vector.load %arg9[%c0_164, %c0_165] : memref<1x32xf32, #tpu.memory_space<vmem>>, vector<1x32xf32>
    %288 = vector.broadcast %287 : vector<1x32xf32> to vector<8x32xf32>
    %289 = arith.addf %286, %288 : vector<8x32xf32>
    %c0_166 = arith.constant 0 : index
    %c0_167 = arith.constant 0 : index
    %c0_168 = arith.constant 0 : index
    %290 = vector.load %arg2[%c0_166, %c0_167, %c0_168] : memref<1x8x8xf32, #tpu.memory_space<vmem>>, vector<1x8x8xf32>
    %291 = vector.shape_cast %290 : vector<1x8x8xf32> to vector<8x8xf32>
    %c0_169 = arith.constant 0 : index
    %c0_170 = arith.constant 0 : index
    %292 = vector.load %arg6[%c0_169, %c0_170] : memref<8x32xf32, #tpu.memory_space<vmem>>, vector<8x32xf32>
    %cst_171 = arith.constant dense<0.000000e+00> : vector<8x32xf32>
    %293 = tpu.matmul %291, %292, %cst_171 {dimension_numbers = #tpu.dot_dimension_numbers<[1], [0], [0], [1], [0, 0, 1, 1], [], []>} : vector<8x8xf32>, vector<8x32xf32>, vector<8x32xf32> -> vector<8x32xf32>
    %c0_172 = arith.constant 0 : index
    %c0_173 = arith.constant 0 : index
    %294 = vector.load %arg7[%c0_172, %c0_173] : memref<1x32xf32, #tpu.memory_space<vmem>>, vector<1x32xf32>
    %295 = vector.broadcast %294 : vector<1x32xf32> to vector<8x32xf32>
    %296 = arith.addf %293, %295 : vector<8x32xf32>
    %c2 = arith.constant 2 : index
    %c0_174 = arith.constant 0 : index
    %c0_175 = arith.constant 0 : index
    %297 = vector.load %arg13[%c2, %c0_174, %c0_175] : memref<4x32x32xf32, #tpu.memory_space<vmem>>, vector<1x32x32xf32>
    %298 = vector.shape_cast %297 : vector<1x32x32xf32> to vector<32x32xf32>
    %cst_176 = arith.constant dense<0.000000e+00> : vector<8x32xf32>
    %299 = tpu.matmul %289, %298, %cst_176 {dimension_numbers = #tpu.dot_dimension_numbers<[1], [0], [0], [1], [0, 0, 1, 1], [], []>} : vector<8x32xf32>, vector<32x32xf32>, vector<8x32xf32> -> vector<8x32xf32>
    %c2_177 = arith.constant 2 : index
    %c0_178 = arith.constant 0 : index
    %c0_179 = arith.constant 0 : index
    %300 = vector.load %arg14[%c2_177, %c0_178, %c0_179] : memref<4x1x32xf32, #tpu.memory_space<vmem>>, vector<1x1x32xf32>
    %301 = vector.shape_cast %300 : vector<1x1x32xf32> to vector<1x32xf32>
    %302 = vector.broadcast %301 : vector<1x32xf32> to vector<8x32xf32>
    %303 = arith.addf %299, %302 : vector<8x32xf32>
    %c0_i32_180 = arith.constant 0 : i32
    %c8_i32 = arith.constant 8 : i32
    %304 = arith.addi %c8_i32, %c0_i32_180 : i32
    %305 = arith.index_cast %304 : i32 to index
    %c0_181 = arith.constant 0 : index
    %c0_182 = arith.constant 0 : index
    %306 = vector.load %arg10[%305, %c0_181, %c0_182] : memref<16x32x8xf32, #tpu.memory_space<vmem>>, vector<1x32x8xf32>
    %307 = vector.shape_cast %306 : vector<1x32x8xf32> to vector<32x8xf32>
    %cst_183 = arith.constant dense<0.000000e+00> : vector<8x8xf32>
    %308 = tpu.matmul %296, %307, %cst_183 {dimension_numbers = #tpu.dot_dimension_numbers<[1], [0], [0], [1], [0, 0, 1, 1], [], []>} : vector<8x32xf32>, vector<32x8xf32>, vector<8x8xf32> -> vector<8x8xf32>
    %309 = arith.index_cast %304 : i32 to index
    %c0_184 = arith.constant 0 : index
    %c0_185 = arith.constant 0 : index
    %310 = vector.load %arg11[%309, %c0_184, %c0_185] : memref<16x32x8xf32, #tpu.memory_space<vmem>>, vector<1x32x8xf32>
    %311 = vector.shape_cast %310 : vector<1x32x8xf32> to vector<32x8xf32>
    %cst_186 = arith.constant dense<0.000000e+00> : vector<8x8xf32>
    %312 = tpu.matmul %289, %311, %cst_186 {dimension_numbers = #tpu.dot_dimension_numbers<[1], [0], [0], [1], [0, 0, 1, 1], [], []>} : vector<8x32xf32>, vector<32x8xf32>, vector<8x8xf32> -> vector<8x8xf32>
    %313 = arith.index_cast %304 : i32 to index
    %c0_187 = arith.constant 0 : index
    %c0_188 = arith.constant 0 : index
    %314 = vector.load %arg12[%313, %c0_187, %c0_188] : memref<16x32x32xf32, #tpu.memory_space<vmem>>, vector<1x32x32xf32>
    %315 = vector.shape_cast %314 : vector<1x32x32xf32> to vector<32x32xf32>
    %cst_189 = arith.constant dense<0.000000e+00> : vector<8x32xf32>
    %316 = tpu.matmul %282, %315, %cst_189 {dimension_numbers = #tpu.dot_dimension_numbers<[1], [0], [0], [1], [0, 0, 1, 1], [], []>} : vector<8x32xf32>, vector<32x32xf32>, vector<8x32xf32> -> vector<8x32xf32>
    %cst_190 = arith.constant dense<0.000000e+00> : vector<8x8xf32>
    %317 = tpu.matmul %312, %308, %cst_190 {dimension_numbers = #tpu.dot_dimension_numbers<[1], [1], [0], [0], [0, 0, 1, 0], [], []>} : vector<8x8xf32>, vector<8x8xf32>, vector<8x8xf32> -> vector<8x8xf32>
    %cst_191 = arith.constant dense<0xFF800000> : vector<8xf32>
    %318 = vector.multi_reduction <maximumf>, %317, %cst_191 [1] : vector<8x8xf32> to vector<8xf32>
    %319 = vector.shape_cast %318 : vector<8xf32> to vector<8x1xf32>
    %320 = vector.broadcast %319 : vector<8x1xf32> to vector<8x8xf32>
    %321 = arith.subf %317, %320 : vector<8x8xf32>
    %322 = math.exp %321 : vector<8x8xf32>
    %cst_192 = arith.constant dense<0.000000e+00> : vector<8xf32>
    %323 = vector.multi_reduction <add>, %322, %cst_192 [1] : vector<8x8xf32> to vector<8xf32>
    %324 = vector.shape_cast %323 : vector<8xf32> to vector<8x1xf32>
    %325 = tpu.reciprocal %324 {approx = true} : vector<8x1xf32> -> vector<8x1xf32>
    %326 = vector.broadcast %325 : vector<8x1xf32> to vector<8x8xf32>
    %327 = arith.mulf %322, %326 : vector<8x8xf32>
    %cst_193 = arith.constant dense<0.000000e+00> : vector<8x32xf32>
    %328 = tpu.matmul %327, %316, %cst_193 {dimension_numbers = #tpu.dot_dimension_numbers<[1], [0], [0], [1], [0, 0, 1, 1], [], []>} : vector<8x8xf32>, vector<8x32xf32>, vector<8x32xf32> -> vector<8x32xf32>
    %329 = arith.addf %303, %328 : vector<8x32xf32>
    %c1_i32_194 = arith.constant 1 : i32
    %c8_i32_195 = arith.constant 8 : i32
    %330 = arith.addi %c8_i32_195, %c1_i32_194 : i32
    %331 = arith.index_cast %330 : i32 to index
    %c0_196 = arith.constant 0 : index
    %c0_197 = arith.constant 0 : index
    %332 = vector.load %arg10[%331, %c0_196, %c0_197] : memref<16x32x8xf32, #tpu.memory_space<vmem>>, vector<1x32x8xf32>
    %333 = vector.shape_cast %332 : vector<1x32x8xf32> to vector<32x8xf32>
    %cst_198 = arith.constant dense<0.000000e+00> : vector<8x8xf32>
    %334 = tpu.matmul %296, %333, %cst_198 {dimension_numbers = #tpu.dot_dimension_numbers<[1], [0], [0], [1], [0, 0, 1, 1], [], []>} : vector<8x32xf32>, vector<32x8xf32>, vector<8x8xf32> -> vector<8x8xf32>
    %335 = arith.index_cast %330 : i32 to index
    %c0_199 = arith.constant 0 : index
    %c0_200 = arith.constant 0 : index
    %336 = vector.load %arg11[%335, %c0_199, %c0_200] : memref<16x32x8xf32, #tpu.memory_space<vmem>>, vector<1x32x8xf32>
    %337 = vector.shape_cast %336 : vector<1x32x8xf32> to vector<32x8xf32>
    %cst_201 = arith.constant dense<0.000000e+00> : vector<8x8xf32>
    %338 = tpu.matmul %289, %337, %cst_201 {dimension_numbers = #tpu.dot_dimension_numbers<[1], [0], [0], [1], [0, 0, 1, 1], [], []>} : vector<8x32xf32>, vector<32x8xf32>, vector<8x8xf32> -> vector<8x8xf32>
    %339 = arith.index_cast %330 : i32 to index
    %c0_202 = arith.constant 0 : index
    %c0_203 = arith.constant 0 : index
    %340 = vector.load %arg12[%339, %c0_202, %c0_203] : memref<16x32x32xf32, #tpu.memory_space<vmem>>, vector<1x32x32xf32>
    %341 = vector.shape_cast %340 : vector<1x32x32xf32> to vector<32x32xf32>
    %cst_204 = arith.constant dense<0.000000e+00> : vector<8x32xf32>
    %342 = tpu.matmul %282, %341, %cst_204 {dimension_numbers = #tpu.dot_dimension_numbers<[1], [0], [0], [1], [0, 0, 1, 1], [], []>} : vector<8x32xf32>, vector<32x32xf32>, vector<8x32xf32> -> vector<8x32xf32>
    %cst_205 = arith.constant dense<0.000000e+00> : vector<8x8xf32>
    %343 = tpu.matmul %338, %334, %cst_205 {dimension_numbers = #tpu.dot_dimension_numbers<[1], [1], [0], [0], [0, 0, 1, 0], [], []>} : vector<8x8xf32>, vector<8x8xf32>, vector<8x8xf32> -> vector<8x8xf32>
    %cst_206 = arith.constant dense<0xFF800000> : vector<8xf32>
    %344 = vector.multi_reduction <maximumf>, %343, %cst_206 [1] : vector<8x8xf32> to vector<8xf32>
    %345 = vector.shape_cast %344 : vector<8xf32> to vector<8x1xf32>
    %346 = vector.broadcast %345 : vector<8x1xf32> to vector<8x8xf32>
    %347 = arith.subf %343, %346 : vector<8x8xf32>
    %348 = math.exp %347 : vector<8x8xf32>
    %cst_207 = arith.constant dense<0.000000e+00> : vector<8xf32>
    %349 = vector.multi_reduction <add>, %348, %cst_207 [1] : vector<8x8xf32> to vector<8xf32>
    %350 = vector.shape_cast %349 : vector<8xf32> to vector<8x1xf32>
    %351 = tpu.reciprocal %350 {approx = true} : vector<8x1xf32> -> vector<8x1xf32>
    %352 = vector.broadcast %351 : vector<8x1xf32> to vector<8x8xf32>
    %353 = arith.mulf %348, %352 : vector<8x8xf32>
    %cst_208 = arith.constant dense<0.000000e+00> : vector<8x32xf32>
    %354 = tpu.matmul %353, %342, %cst_208 {dimension_numbers = #tpu.dot_dimension_numbers<[1], [0], [0], [1], [0, 0, 1, 1], [], []>} : vector<8x8xf32>, vector<8x32xf32>, vector<8x32xf32> -> vector<8x32xf32>
    %355 = arith.addf %329, %354 : vector<8x32xf32>
    %c2_i32_209 = arith.constant 2 : i32
    %c8_i32_210 = arith.constant 8 : i32
    %356 = arith.addi %c8_i32_210, %c2_i32_209 : i32
    %357 = arith.index_cast %356 : i32 to index
    %c0_211 = arith.constant 0 : index
    %c0_212 = arith.constant 0 : index
    %358 = vector.load %arg10[%357, %c0_211, %c0_212] : memref<16x32x8xf32, #tpu.memory_space<vmem>>, vector<1x32x8xf32>
    %359 = vector.shape_cast %358 : vector<1x32x8xf32> to vector<32x8xf32>
    %cst_213 = arith.constant dense<0.000000e+00> : vector<8x8xf32>
    %360 = tpu.matmul %296, %359, %cst_213 {dimension_numbers = #tpu.dot_dimension_numbers<[1], [0], [0], [1], [0, 0, 1, 1], [], []>} : vector<8x32xf32>, vector<32x8xf32>, vector<8x8xf32> -> vector<8x8xf32>
    %361 = arith.index_cast %356 : i32 to index
    %c0_214 = arith.constant 0 : index
    %c0_215 = arith.constant 0 : index
    %362 = vector.load %arg11[%361, %c0_214, %c0_215] : memref<16x32x8xf32, #tpu.memory_space<vmem>>, vector<1x32x8xf32>
    %363 = vector.shape_cast %362 : vector<1x32x8xf32> to vector<32x8xf32>
    %cst_216 = arith.constant dense<0.000000e+00> : vector<8x8xf32>
    %364 = tpu.matmul %289, %363, %cst_216 {dimension_numbers = #tpu.dot_dimension_numbers<[1], [0], [0], [1], [0, 0, 1, 1], [], []>} : vector<8x32xf32>, vector<32x8xf32>, vector<8x8xf32> -> vector<8x8xf32>
    %365 = arith.index_cast %356 : i32 to index
    %c0_217 = arith.constant 0 : index
    %c0_218 = arith.constant 0 : index
    %366 = vector.load %arg12[%365, %c0_217, %c0_218] : memref<16x32x32xf32, #tpu.memory_space<vmem>>, vector<1x32x32xf32>
    %367 = vector.shape_cast %366 : vector<1x32x32xf32> to vector<32x32xf32>
    %cst_219 = arith.constant dense<0.000000e+00> : vector<8x32xf32>
    %368 = tpu.matmul %282, %367, %cst_219 {dimension_numbers = #tpu.dot_dimension_numbers<[1], [0], [0], [1], [0, 0, 1, 1], [], []>} : vector<8x32xf32>, vector<32x32xf32>, vector<8x32xf32> -> vector<8x32xf32>
    %cst_220 = arith.constant dense<0.000000e+00> : vector<8x8xf32>
    %369 = tpu.matmul %364, %360, %cst_220 {dimension_numbers = #tpu.dot_dimension_numbers<[1], [1], [0], [0], [0, 0, 1, 0], [], []>} : vector<8x8xf32>, vector<8x8xf32>, vector<8x8xf32> -> vector<8x8xf32>
    %cst_221 = arith.constant dense<0xFF800000> : vector<8xf32>
    %370 = vector.multi_reduction <maximumf>, %369, %cst_221 [1] : vector<8x8xf32> to vector<8xf32>
    %371 = vector.shape_cast %370 : vector<8xf32> to vector<8x1xf32>
    %372 = vector.broadcast %371 : vector<8x1xf32> to vector<8x8xf32>
    %373 = arith.subf %369, %372 : vector<8x8xf32>
    %374 = math.exp %373 : vector<8x8xf32>
    %cst_222 = arith.constant dense<0.000000e+00> : vector<8xf32>
    %375 = vector.multi_reduction <add>, %374, %cst_222 [1] : vector<8x8xf32> to vector<8xf32>
    %376 = vector.shape_cast %375 : vector<8xf32> to vector<8x1xf32>
    %377 = tpu.reciprocal %376 {approx = true} : vector<8x1xf32> -> vector<8x1xf32>
    %378 = vector.broadcast %377 : vector<8x1xf32> to vector<8x8xf32>
    %379 = arith.mulf %374, %378 : vector<8x8xf32>
    %cst_223 = arith.constant dense<0.000000e+00> : vector<8x32xf32>
    %380 = tpu.matmul %379, %368, %cst_223 {dimension_numbers = #tpu.dot_dimension_numbers<[1], [0], [0], [1], [0, 0, 1, 1], [], []>} : vector<8x8xf32>, vector<8x32xf32>, vector<8x32xf32> -> vector<8x32xf32>
    %381 = arith.addf %355, %380 : vector<8x32xf32>
    %c3_i32_224 = arith.constant 3 : i32
    %c8_i32_225 = arith.constant 8 : i32
    %382 = arith.addi %c8_i32_225, %c3_i32_224 : i32
    %383 = arith.index_cast %382 : i32 to index
    %c0_226 = arith.constant 0 : index
    %c0_227 = arith.constant 0 : index
    %384 = vector.load %arg10[%383, %c0_226, %c0_227] : memref<16x32x8xf32, #tpu.memory_space<vmem>>, vector<1x32x8xf32>
    %385 = vector.shape_cast %384 : vector<1x32x8xf32> to vector<32x8xf32>
    %cst_228 = arith.constant dense<0.000000e+00> : vector<8x8xf32>
    %386 = tpu.matmul %296, %385, %cst_228 {dimension_numbers = #tpu.dot_dimension_numbers<[1], [0], [0], [1], [0, 0, 1, 1], [], []>} : vector<8x32xf32>, vector<32x8xf32>, vector<8x8xf32> -> vector<8x8xf32>
    %387 = arith.index_cast %382 : i32 to index
    %c0_229 = arith.constant 0 : index
    %c0_230 = arith.constant 0 : index
    %388 = vector.load %arg11[%387, %c0_229, %c0_230] : memref<16x32x8xf32, #tpu.memory_space<vmem>>, vector<1x32x8xf32>
    %389 = vector.shape_cast %388 : vector<1x32x8xf32> to vector<32x8xf32>
    %cst_231 = arith.constant dense<0.000000e+00> : vector<8x8xf32>
    %390 = tpu.matmul %289, %389, %cst_231 {dimension_numbers = #tpu.dot_dimension_numbers<[1], [0], [0], [1], [0, 0, 1, 1], [], []>} : vector<8x32xf32>, vector<32x8xf32>, vector<8x8xf32> -> vector<8x8xf32>
    %391 = arith.index_cast %382 : i32 to index
    %c0_232 = arith.constant 0 : index
    %c0_233 = arith.constant 0 : index
    %392 = vector.load %arg12[%391, %c0_232, %c0_233] : memref<16x32x32xf32, #tpu.memory_space<vmem>>, vector<1x32x32xf32>
    %393 = vector.shape_cast %392 : vector<1x32x32xf32> to vector<32x32xf32>
    %cst_234 = arith.constant dense<0.000000e+00> : vector<8x32xf32>
    %394 = tpu.matmul %282, %393, %cst_234 {dimension_numbers = #tpu.dot_dimension_numbers<[1], [0], [0], [1], [0, 0, 1, 1], [], []>} : vector<8x32xf32>, vector<32x32xf32>, vector<8x32xf32> -> vector<8x32xf32>
    %cst_235 = arith.constant dense<0.000000e+00> : vector<8x8xf32>
    %395 = tpu.matmul %390, %386, %cst_235 {dimension_numbers = #tpu.dot_dimension_numbers<[1], [1], [0], [0], [0, 0, 1, 0], [], []>} : vector<8x8xf32>, vector<8x8xf32>, vector<8x8xf32> -> vector<8x8xf32>
    %cst_236 = arith.constant dense<0xFF800000> : vector<8xf32>
    %396 = vector.multi_reduction <maximumf>, %395, %cst_236 [1] : vector<8x8xf32> to vector<8xf32>
    %397 = vector.shape_cast %396 : vector<8xf32> to vector<8x1xf32>
    %398 = vector.broadcast %397 : vector<8x1xf32> to vector<8x8xf32>
    %399 = arith.subf %395, %398 : vector<8x8xf32>
    %400 = math.exp %399 : vector<8x8xf32>
    %cst_237 = arith.constant dense<0.000000e+00> : vector<8xf32>
    %401 = vector.multi_reduction <add>, %400, %cst_237 [1] : vector<8x8xf32> to vector<8xf32>
    %402 = vector.shape_cast %401 : vector<8xf32> to vector<8x1xf32>
    %403 = tpu.reciprocal %402 {approx = true} : vector<8x1xf32> -> vector<8x1xf32>
    %404 = vector.broadcast %403 : vector<8x1xf32> to vector<8x8xf32>
    %405 = arith.mulf %400, %404 : vector<8x8xf32>
    %cst_238 = arith.constant dense<0.000000e+00> : vector<8x32xf32>
    %406 = tpu.matmul %405, %394, %cst_238 {dimension_numbers = #tpu.dot_dimension_numbers<[1], [0], [0], [1], [0, 0, 1, 1], [], []>} : vector<8x8xf32>, vector<8x32xf32>, vector<8x32xf32> -> vector<8x32xf32>
    %407 = arith.addf %381, %406 : vector<8x32xf32>
    %c4_i32_239 = arith.constant 4 : i32
    %408 = arith.addf %407, %289 : vector<8x32xf32>
    %cst_240 = arith.constant dense<0.000000e+00> : vector<8xf32>
    %409 = vector.multi_reduction <add>, %408, %cst_240 [1] : vector<8x32xf32> to vector<8xf32>
    %410 = vector.shape_cast %409 : vector<8xf32> to vector<8x1xf32>
    %cst_241 = arith.constant 3.200000e+01 : f32
    %411 = vector.broadcast %cst_241 : f32 to vector<8x1xf32>
    %412 = arith.divf %410, %411 : vector<8x1xf32>
    %413 = vector.broadcast %412 : vector<8x1xf32> to vector<8x32xf32>
    %414 = arith.subf %408, %413 : vector<8x32xf32>
    %415 = arith.mulf %414, %414 : vector<8x32xf32>
    %cst_242 = arith.constant dense<0.000000e+00> : vector<8xf32>
    %416 = vector.multi_reduction <add>, %415, %cst_242 [1] : vector<8x32xf32> to vector<8xf32>
    %417 = vector.shape_cast %416 : vector<8xf32> to vector<8x1xf32>
    %cst_243 = arith.constant 3.200000e+01 : f32
    %418 = vector.broadcast %cst_243 : f32 to vector<8x1xf32>
    %419 = arith.divf %417, %418 : vector<8x1xf32>
    %420 = vector.broadcast %412 : vector<8x1xf32> to vector<8x32xf32>
    %421 = arith.subf %408, %420 : vector<8x32xf32>
    %cst_244 = arith.constant 9.99999974E-6 : f32
    %422 = vector.broadcast %cst_244 : f32 to vector<8x1xf32>
    %423 = arith.addf %419, %422 : vector<8x1xf32>
    %424 = math.rsqrt %423 : vector<8x1xf32>
    %425 = vector.broadcast %424 : vector<8x1xf32> to vector<8x32xf32>
    %426 = arith.mulf %421, %425 : vector<8x32xf32>
    %c2_245 = arith.constant 2 : index
    %c0_246 = arith.constant 0 : index
    %c0_247 = arith.constant 0 : index
    %427 = vector.load %arg15[%c2_245, %c0_246, %c0_247] : memref<4x1x32xf32, #tpu.memory_space<vmem>>, vector<1x1x32xf32>
    %428 = vector.shape_cast %427 : vector<1x1x32xf32> to vector<1x32xf32>
    %429 = vector.broadcast %428 : vector<1x32xf32> to vector<8x32xf32>
    %430 = arith.mulf %426, %429 : vector<8x32xf32>
    %c2_248 = arith.constant 2 : index
    %c0_249 = arith.constant 0 : index
    %c0_250 = arith.constant 0 : index
    %431 = vector.load %arg16[%c2_248, %c0_249, %c0_250] : memref<4x1x32xf32, #tpu.memory_space<vmem>>, vector<1x1x32xf32>
    %432 = vector.shape_cast %431 : vector<1x1x32xf32> to vector<1x32xf32>
    %433 = vector.broadcast %432 : vector<1x32xf32> to vector<8x32xf32>
    %434 = arith.addf %430, %433 : vector<8x32xf32>
    %c3 = arith.constant 3 : index
    %c0_251 = arith.constant 0 : index
    %c0_252 = arith.constant 0 : index
    %435 = vector.load %arg13[%c3, %c0_251, %c0_252] : memref<4x32x32xf32, #tpu.memory_space<vmem>>, vector<1x32x32xf32>
    %436 = vector.shape_cast %435 : vector<1x32x32xf32> to vector<32x32xf32>
    %cst_253 = arith.constant dense<0.000000e+00> : vector<8x32xf32>
    %437 = tpu.matmul %434, %436, %cst_253 {dimension_numbers = #tpu.dot_dimension_numbers<[1], [0], [0], [1], [0, 0, 1, 1], [], []>} : vector<8x32xf32>, vector<32x32xf32>, vector<8x32xf32> -> vector<8x32xf32>
    %c3_254 = arith.constant 3 : index
    %c0_255 = arith.constant 0 : index
    %c0_256 = arith.constant 0 : index
    %438 = vector.load %arg14[%c3_254, %c0_255, %c0_256] : memref<4x1x32xf32, #tpu.memory_space<vmem>>, vector<1x1x32xf32>
    %439 = vector.shape_cast %438 : vector<1x1x32xf32> to vector<1x32xf32>
    %440 = vector.broadcast %439 : vector<1x32xf32> to vector<8x32xf32>
    %441 = arith.addf %437, %440 : vector<8x32xf32>
    %c0_i32_257 = arith.constant 0 : i32
    %c12_i32 = arith.constant 12 : i32
    %442 = arith.addi %c12_i32, %c0_i32_257 : i32
    %443 = arith.index_cast %442 : i32 to index
    %c0_258 = arith.constant 0 : index
    %c0_259 = arith.constant 0 : index
    %444 = vector.load %arg10[%443, %c0_258, %c0_259] : memref<16x32x8xf32, #tpu.memory_space<vmem>>, vector<1x32x8xf32>
    %445 = vector.shape_cast %444 : vector<1x32x8xf32> to vector<32x8xf32>
    %cst_260 = arith.constant dense<0.000000e+00> : vector<8x8xf32>
    %446 = tpu.matmul %296, %445, %cst_260 {dimension_numbers = #tpu.dot_dimension_numbers<[1], [0], [0], [1], [0, 0, 1, 1], [], []>} : vector<8x32xf32>, vector<32x8xf32>, vector<8x8xf32> -> vector<8x8xf32>
    %447 = arith.index_cast %442 : i32 to index
    %c0_261 = arith.constant 0 : index
    %c0_262 = arith.constant 0 : index
    %448 = vector.load %arg11[%447, %c0_261, %c0_262] : memref<16x32x8xf32, #tpu.memory_space<vmem>>, vector<1x32x8xf32>
    %449 = vector.shape_cast %448 : vector<1x32x8xf32> to vector<32x8xf32>
    %cst_263 = arith.constant dense<0.000000e+00> : vector<8x8xf32>
    %450 = tpu.matmul %434, %449, %cst_263 {dimension_numbers = #tpu.dot_dimension_numbers<[1], [0], [0], [1], [0, 0, 1, 1], [], []>} : vector<8x32xf32>, vector<32x8xf32>, vector<8x8xf32> -> vector<8x8xf32>
    %451 = arith.index_cast %442 : i32 to index
    %c0_264 = arith.constant 0 : index
    %c0_265 = arith.constant 0 : index
    %452 = vector.load %arg12[%451, %c0_264, %c0_265] : memref<16x32x32xf32, #tpu.memory_space<vmem>>, vector<1x32x32xf32>
    %453 = vector.shape_cast %452 : vector<1x32x32xf32> to vector<32x32xf32>
    %cst_266 = arith.constant dense<0.000000e+00> : vector<8x32xf32>
    %454 = tpu.matmul %282, %453, %cst_266 {dimension_numbers = #tpu.dot_dimension_numbers<[1], [0], [0], [1], [0, 0, 1, 1], [], []>} : vector<8x32xf32>, vector<32x32xf32>, vector<8x32xf32> -> vector<8x32xf32>
    %cst_267 = arith.constant dense<0.000000e+00> : vector<8x8xf32>
    %455 = tpu.matmul %450, %446, %cst_267 {dimension_numbers = #tpu.dot_dimension_numbers<[1], [1], [0], [0], [0, 0, 1, 0], [], []>} : vector<8x8xf32>, vector<8x8xf32>, vector<8x8xf32> -> vector<8x8xf32>
    %cst_268 = arith.constant dense<0xFF800000> : vector<8xf32>
    %456 = vector.multi_reduction <maximumf>, %455, %cst_268 [1] : vector<8x8xf32> to vector<8xf32>
    %457 = vector.shape_cast %456 : vector<8xf32> to vector<8x1xf32>
    %458 = vector.broadcast %457 : vector<8x1xf32> to vector<8x8xf32>
    %459 = arith.subf %455, %458 : vector<8x8xf32>
    %460 = math.exp %459 : vector<8x8xf32>
    %cst_269 = arith.constant dense<0.000000e+00> : vector<8xf32>
    %461 = vector.multi_reduction <add>, %460, %cst_269 [1] : vector<8x8xf32> to vector<8xf32>
    %462 = vector.shape_cast %461 : vector<8xf32> to vector<8x1xf32>
    %463 = tpu.reciprocal %462 {approx = true} : vector<8x1xf32> -> vector<8x1xf32>
    %464 = vector.broadcast %463 : vector<8x1xf32> to vector<8x8xf32>
    %465 = arith.mulf %460, %464 : vector<8x8xf32>
    %cst_270 = arith.constant dense<0.000000e+00> : vector<8x32xf32>
    %466 = tpu.matmul %465, %454, %cst_270 {dimension_numbers = #tpu.dot_dimension_numbers<[1], [0], [0], [1], [0, 0, 1, 1], [], []>} : vector<8x8xf32>, vector<8x32xf32>, vector<8x32xf32> -> vector<8x32xf32>
    %467 = arith.addf %441, %466 : vector<8x32xf32>
    %c1_i32_271 = arith.constant 1 : i32
    %c12_i32_272 = arith.constant 12 : i32
    %468 = arith.addi %c12_i32_272, %c1_i32_271 : i32
    %469 = arith.index_cast %468 : i32 to index
    %c0_273 = arith.constant 0 : index
    %c0_274 = arith.constant 0 : index
    %470 = vector.load %arg10[%469, %c0_273, %c0_274] : memref<16x32x8xf32, #tpu.memory_space<vmem>>, vector<1x32x8xf32>
    %471 = vector.shape_cast %470 : vector<1x32x8xf32> to vector<32x8xf32>
    %cst_275 = arith.constant dense<0.000000e+00> : vector<8x8xf32>
    %472 = tpu.matmul %296, %471, %cst_275 {dimension_numbers = #tpu.dot_dimension_numbers<[1], [0], [0], [1], [0, 0, 1, 1], [], []>} : vector<8x32xf32>, vector<32x8xf32>, vector<8x8xf32> -> vector<8x8xf32>
    %473 = arith.index_cast %468 : i32 to index
    %c0_276 = arith.constant 0 : index
    %c0_277 = arith.constant 0 : index
    %474 = vector.load %arg11[%473, %c0_276, %c0_277] : memref<16x32x8xf32, #tpu.memory_space<vmem>>, vector<1x32x8xf32>
    %475 = vector.shape_cast %474 : vector<1x32x8xf32> to vector<32x8xf32>
    %cst_278 = arith.constant dense<0.000000e+00> : vector<8x8xf32>
    %476 = tpu.matmul %434, %475, %cst_278 {dimension_numbers = #tpu.dot_dimension_numbers<[1], [0], [0], [1], [0, 0, 1, 1], [], []>} : vector<8x32xf32>, vector<32x8xf32>, vector<8x8xf32> -> vector<8x8xf32>
    %477 = arith.index_cast %468 : i32 to index
    %c0_279 = arith.constant 0 : index
    %c0_280 = arith.constant 0 : index
    %478 = vector.load %arg12[%477, %c0_279, %c0_280] : memref<16x32x32xf32, #tpu.memory_space<vmem>>, vector<1x32x32xf32>
    %479 = vector.shape_cast %478 : vector<1x32x32xf32> to vector<32x32xf32>
    %cst_281 = arith.constant dense<0.000000e+00> : vector<8x32xf32>
    %480 = tpu.matmul %282, %479, %cst_281 {dimension_numbers = #tpu.dot_dimension_numbers<[1], [0], [0], [1], [0, 0, 1, 1], [], []>} : vector<8x32xf32>, vector<32x32xf32>, vector<8x32xf32> -> vector<8x32xf32>
    %cst_282 = arith.constant dense<0.000000e+00> : vector<8x8xf32>
    %481 = tpu.matmul %476, %472, %cst_282 {dimension_numbers = #tpu.dot_dimension_numbers<[1], [1], [0], [0], [0, 0, 1, 0], [], []>} : vector<8x8xf32>, vector<8x8xf32>, vector<8x8xf32> -> vector<8x8xf32>
    %cst_283 = arith.constant dense<0xFF800000> : vector<8xf32>
    %482 = vector.multi_reduction <maximumf>, %481, %cst_283 [1] : vector<8x8xf32> to vector<8xf32>
    %483 = vector.shape_cast %482 : vector<8xf32> to vector<8x1xf32>
    %484 = vector.broadcast %483 : vector<8x1xf32> to vector<8x8xf32>
    %485 = arith.subf %481, %484 : vector<8x8xf32>
    %486 = math.exp %485 : vector<8x8xf32>
    %cst_284 = arith.constant dense<0.000000e+00> : vector<8xf32>
    %487 = vector.multi_reduction <add>, %486, %cst_284 [1] : vector<8x8xf32> to vector<8xf32>
    %488 = vector.shape_cast %487 : vector<8xf32> to vector<8x1xf32>
    %489 = tpu.reciprocal %488 {approx = true} : vector<8x1xf32> -> vector<8x1xf32>
    %490 = vector.broadcast %489 : vector<8x1xf32> to vector<8x8xf32>
    %491 = arith.mulf %486, %490 : vector<8x8xf32>
    %cst_285 = arith.constant dense<0.000000e+00> : vector<8x32xf32>
    %492 = tpu.matmul %491, %480, %cst_285 {dimension_numbers = #tpu.dot_dimension_numbers<[1], [0], [0], [1], [0, 0, 1, 1], [], []>} : vector<8x8xf32>, vector<8x32xf32>, vector<8x32xf32> -> vector<8x32xf32>
    %493 = arith.addf %467, %492 : vector<8x32xf32>
    %c2_i32_286 = arith.constant 2 : i32
    %c12_i32_287 = arith.constant 12 : i32
    %494 = arith.addi %c12_i32_287, %c2_i32_286 : i32
    %495 = arith.index_cast %494 : i32 to index
    %c0_288 = arith.constant 0 : index
    %c0_289 = arith.constant 0 : index
    %496 = vector.load %arg10[%495, %c0_288, %c0_289] : memref<16x32x8xf32, #tpu.memory_space<vmem>>, vector<1x32x8xf32>
    %497 = vector.shape_cast %496 : vector<1x32x8xf32> to vector<32x8xf32>
    %cst_290 = arith.constant dense<0.000000e+00> : vector<8x8xf32>
    %498 = tpu.matmul %296, %497, %cst_290 {dimension_numbers = #tpu.dot_dimension_numbers<[1], [0], [0], [1], [0, 0, 1, 1], [], []>} : vector<8x32xf32>, vector<32x8xf32>, vector<8x8xf32> -> vector<8x8xf32>
    %499 = arith.index_cast %494 : i32 to index
    %c0_291 = arith.constant 0 : index
    %c0_292 = arith.constant 0 : index
    %500 = vector.load %arg11[%499, %c0_291, %c0_292] : memref<16x32x8xf32, #tpu.memory_space<vmem>>, vector<1x32x8xf32>
    %501 = vector.shape_cast %500 : vector<1x32x8xf32> to vector<32x8xf32>
    %cst_293 = arith.constant dense<0.000000e+00> : vector<8x8xf32>
    %502 = tpu.matmul %434, %501, %cst_293 {dimension_numbers = #tpu.dot_dimension_numbers<[1], [0], [0], [1], [0, 0, 1, 1], [], []>} : vector<8x32xf32>, vector<32x8xf32>, vector<8x8xf32> -> vector<8x8xf32>
    %503 = arith.index_cast %494 : i32 to index
    %c0_294 = arith.constant 0 : index
    %c0_295 = arith.constant 0 : index
    %504 = vector.load %arg12[%503, %c0_294, %c0_295] : memref<16x32x32xf32, #tpu.memory_space<vmem>>, vector<1x32x32xf32>
    %505 = vector.shape_cast %504 : vector<1x32x32xf32> to vector<32x32xf32>
    %cst_296 = arith.constant dense<0.000000e+00> : vector<8x32xf32>
    %506 = tpu.matmul %282, %505, %cst_296 {dimension_numbers = #tpu.dot_dimension_numbers<[1], [0], [0], [1], [0, 0, 1, 1], [], []>} : vector<8x32xf32>, vector<32x32xf32>, vector<8x32xf32> -> vector<8x32xf32>
    %cst_297 = arith.constant dense<0.000000e+00> : vector<8x8xf32>
    %507 = tpu.matmul %502, %498, %cst_297 {dimension_numbers = #tpu.dot_dimension_numbers<[1], [1], [0], [0], [0, 0, 1, 0], [], []>} : vector<8x8xf32>, vector<8x8xf32>, vector<8x8xf32> -> vector<8x8xf32>
    %cst_298 = arith.constant dense<0xFF800000> : vector<8xf32>
    %508 = vector.multi_reduction <maximumf>, %507, %cst_298 [1] : vector<8x8xf32> to vector<8xf32>
    %509 = vector.shape_cast %508 : vector<8xf32> to vector<8x1xf32>
    %510 = vector.broadcast %509 : vector<8x1xf32> to vector<8x8xf32>
    %511 = arith.subf %507, %510 : vector<8x8xf32>
    %512 = math.exp %511 : vector<8x8xf32>
    %cst_299 = arith.constant dense<0.000000e+00> : vector<8xf32>
    %513 = vector.multi_reduction <add>, %512, %cst_299 [1] : vector<8x8xf32> to vector<8xf32>
    %514 = vector.shape_cast %513 : vector<8xf32> to vector<8x1xf32>
    %515 = tpu.reciprocal %514 {approx = true} : vector<8x1xf32> -> vector<8x1xf32>
    %516 = vector.broadcast %515 : vector<8x1xf32> to vector<8x8xf32>
    %517 = arith.mulf %512, %516 : vector<8x8xf32>
    %cst_300 = arith.constant dense<0.000000e+00> : vector<8x32xf32>
    %518 = tpu.matmul %517, %506, %cst_300 {dimension_numbers = #tpu.dot_dimension_numbers<[1], [0], [0], [1], [0, 0, 1, 1], [], []>} : vector<8x8xf32>, vector<8x32xf32>, vector<8x32xf32> -> vector<8x32xf32>
    %519 = arith.addf %493, %518 : vector<8x32xf32>
    %c3_i32_301 = arith.constant 3 : i32
    %c12_i32_302 = arith.constant 12 : i32
    %520 = arith.addi %c12_i32_302, %c3_i32_301 : i32
    %521 = arith.index_cast %520 : i32 to index
    %c0_303 = arith.constant 0 : index
    %c0_304 = arith.constant 0 : index
    %522 = vector.load %arg10[%521, %c0_303, %c0_304] : memref<16x32x8xf32, #tpu.memory_space<vmem>>, vector<1x32x8xf32>
    %523 = vector.shape_cast %522 : vector<1x32x8xf32> to vector<32x8xf32>
    %cst_305 = arith.constant dense<0.000000e+00> : vector<8x8xf32>
    %524 = tpu.matmul %296, %523, %cst_305 {dimension_numbers = #tpu.dot_dimension_numbers<[1], [0], [0], [1], [0, 0, 1, 1], [], []>} : vector<8x32xf32>, vector<32x8xf32>, vector<8x8xf32> -> vector<8x8xf32>
    %525 = arith.index_cast %520 : i32 to index
    %c0_306 = arith.constant 0 : index
    %c0_307 = arith.constant 0 : index
    %526 = vector.load %arg11[%525, %c0_306, %c0_307] : memref<16x32x8xf32, #tpu.memory_space<vmem>>, vector<1x32x8xf32>
    %527 = vector.shape_cast %526 : vector<1x32x8xf32> to vector<32x8xf32>
    %cst_308 = arith.constant dense<0.000000e+00> : vector<8x8xf32>
    %528 = tpu.matmul %434, %527, %cst_308 {dimension_numbers = #tpu.dot_dimension_numbers<[1], [0], [0], [1], [0, 0, 1, 1], [], []>} : vector<8x32xf32>, vector<32x8xf32>, vector<8x8xf32> -> vector<8x8xf32>
    %529 = arith.index_cast %520 : i32 to index
    %c0_309 = arith.constant 0 : index
    %c0_310 = arith.constant 0 : index
    %530 = vector.load %arg12[%529, %c0_309, %c0_310] : memref<16x32x32xf32, #tpu.memory_space<vmem>>, vector<1x32x32xf32>
    %531 = vector.shape_cast %530 : vector<1x32x32xf32> to vector<32x32xf32>
    %cst_311 = arith.constant dense<0.000000e+00> : vector<8x32xf32>
    %532 = tpu.matmul %282, %531, %cst_311 {dimension_numbers = #tpu.dot_dimension_numbers<[1], [0], [0], [1], [0, 0, 1, 1], [], []>} : vector<8x32xf32>, vector<32x32xf32>, vector<8x32xf32> -> vector<8x32xf32>
    %cst_312 = arith.constant dense<0.000000e+00> : vector<8x8xf32>
    %533 = tpu.matmul %528, %524, %cst_312 {dimension_numbers = #tpu.dot_dimension_numbers<[1], [1], [0], [0], [0, 0, 1, 0], [], []>} : vector<8x8xf32>, vector<8x8xf32>, vector<8x8xf32> -> vector<8x8xf32>
    %cst_313 = arith.constant dense<0xFF800000> : vector<8xf32>
    %534 = vector.multi_reduction <maximumf>, %533, %cst_313 [1] : vector<8x8xf32> to vector<8xf32>
    %535 = vector.shape_cast %534 : vector<8xf32> to vector<8x1xf32>
    %536 = vector.broadcast %535 : vector<8x1xf32> to vector<8x8xf32>
    %537 = arith.subf %533, %536 : vector<8x8xf32>
    %538 = math.exp %537 : vector<8x8xf32>
    %cst_314 = arith.constant dense<0.000000e+00> : vector<8xf32>
    %539 = vector.multi_reduction <add>, %538, %cst_314 [1] : vector<8x8xf32> to vector<8xf32>
    %540 = vector.shape_cast %539 : vector<8xf32> to vector<8x1xf32>
    %541 = tpu.reciprocal %540 {approx = true} : vector<8x1xf32> -> vector<8x1xf32>
    %542 = vector.broadcast %541 : vector<8x1xf32> to vector<8x8xf32>
    %543 = arith.mulf %538, %542 : vector<8x8xf32>
    %cst_315 = arith.constant dense<0.000000e+00> : vector<8x32xf32>
    %544 = tpu.matmul %543, %532, %cst_315 {dimension_numbers = #tpu.dot_dimension_numbers<[1], [0], [0], [1], [0, 0, 1, 1], [], []>} : vector<8x8xf32>, vector<8x32xf32>, vector<8x32xf32> -> vector<8x32xf32>
    %545 = arith.addf %519, %544 : vector<8x32xf32>
    %c4_i32_316 = arith.constant 4 : i32
    %546 = arith.addf %545, %434 : vector<8x32xf32>
    %cst_317 = arith.constant dense<0.000000e+00> : vector<8xf32>
    %547 = vector.multi_reduction <add>, %546, %cst_317 [1] : vector<8x32xf32> to vector<8xf32>
    %548 = vector.shape_cast %547 : vector<8xf32> to vector<8x1xf32>
    %cst_318 = arith.constant 3.200000e+01 : f32
    %549 = vector.broadcast %cst_318 : f32 to vector<8x1xf32>
    %550 = arith.divf %548, %549 : vector<8x1xf32>
    %551 = vector.broadcast %550 : vector<8x1xf32> to vector<8x32xf32>
    %552 = arith.subf %546, %551 : vector<8x32xf32>
    %553 = arith.mulf %552, %552 : vector<8x32xf32>
    %cst_319 = arith.constant dense<0.000000e+00> : vector<8xf32>
    %554 = vector.multi_reduction <add>, %553, %cst_319 [1] : vector<8x32xf32> to vector<8xf32>
    %555 = vector.shape_cast %554 : vector<8xf32> to vector<8x1xf32>
    %cst_320 = arith.constant 3.200000e+01 : f32
    %556 = vector.broadcast %cst_320 : f32 to vector<8x1xf32>
    %557 = arith.divf %555, %556 : vector<8x1xf32>
    %558 = vector.broadcast %550 : vector<8x1xf32> to vector<8x32xf32>
    %559 = arith.subf %546, %558 : vector<8x32xf32>
    %cst_321 = arith.constant 9.99999974E-6 : f32
    %560 = vector.broadcast %cst_321 : f32 to vector<8x1xf32>
    %561 = arith.addf %557, %560 : vector<8x1xf32>
    %562 = math.rsqrt %561 : vector<8x1xf32>
    %563 = vector.broadcast %562 : vector<8x1xf32> to vector<8x32xf32>
    %564 = arith.mulf %559, %563 : vector<8x32xf32>
    %c3_322 = arith.constant 3 : index
    %c0_323 = arith.constant 0 : index
    %c0_324 = arith.constant 0 : index
    %565 = vector.load %arg15[%c3_322, %c0_323, %c0_324] : memref<4x1x32xf32, #tpu.memory_space<vmem>>, vector<1x1x32xf32>
    %566 = vector.shape_cast %565 : vector<1x1x32xf32> to vector<1x32xf32>
    %567 = vector.broadcast %566 : vector<1x32xf32> to vector<8x32xf32>
    %568 = arith.mulf %564, %567 : vector<8x32xf32>
    %c3_325 = arith.constant 3 : index
    %c0_326 = arith.constant 0 : index
    %c0_327 = arith.constant 0 : index
    %569 = vector.load %arg16[%c3_325, %c0_326, %c0_327] : memref<4x1x32xf32, #tpu.memory_space<vmem>>, vector<1x1x32xf32>
    %570 = vector.shape_cast %569 : vector<1x1x32xf32> to vector<1x32xf32>
    %571 = vector.broadcast %570 : vector<1x32xf32> to vector<8x32xf32>
    %572 = arith.addf %568, %571 : vector<8x32xf32>
    %c0_328 = arith.constant 0 : index
    %c0_329 = arith.constant 0 : index
    %c0_330 = arith.constant 0 : index
    %573 = vector.load %arg17[%c0_328, %c0_329, %c0_330] : memref<1x8x32xf32, #tpu.memory_space<vmem>>, vector<1x8x32xf32>
    %574 = vector.shape_cast %573 : vector<1x8x32xf32> to vector<8x32xf32>
    %575 = vector.shape_cast %572 : vector<8x32xf32> to vector<1x8x32xf32>
    tpu.vector_store %arg17[%c0_328, %c0_329, %c0_330], %575 {strides = array<i32>} : memref<1x8x32xf32, #tpu.memory_space<vmem>>, vector<1x8x32xf32>,
    return
  }
  func.func @transform_0(%arg0: i32) -> (i32, i32, i32) {
    %c0_i32 = arith.constant 0 : i32
    %c0_i32_0 = arith.constant 0 : i32
    %c0_i32_1 = arith.constant 0 : i32
    return %arg0, %c0_i32, %c0_i32_0 : i32, i32, i32
  }
  func.func @transform_1(%arg0: i32) -> (i32, i32, i32) {
    %c0_i32 = arith.constant 0 : i32
    %c0_i32_0 = arith.constant 0 : i32
    %c0_i32_1 = arith.constant 0 : i32
    return %arg0, %c0_i32, %c0_i32_0 : i32, i32, i32
  }
  func.func @transform_2(%arg0: i32) -> (i32, i32, i32) {
    %c0_i32 = arith.constant 0 : i32
    %c0_i32_0 = arith.constant 0 : i32
    %c0_i32_1 = arith.constant 0 : i32
    return %arg0, %c0_i32, %c0_i32_0 : i32, i32, i32
  }
  func.func @transform_3(%arg0: i32) -> (i32, i32) {
    %c0_i32 = arith.constant 0 : i32
    %c0_i32_0 = arith.constant 0 : i32
    %c0_i32_1 = arith.constant 0 : i32
    return %c0_i32, %c0_i32_0 : i32, i32
  }
  func.func @transform_4(%arg0: i32) -> (i32, i32) {
    %c0_i32 = arith.constant 0 : i32
    %c0_i32_0 = arith.constant 0 : i32
    %c0_i32_1 = arith.constant 0 : i32
    return %c0_i32, %c0_i32_0 : i32, i32
  }
  func.func @transform_5(%arg0: i32) -> (i32, i32) {
    %c0_i32 = arith.constant 0 : i32
    %c0_i32_0 = arith.constant 0 : i32
    %c0_i32_1 = arith.constant 0 : i32
    return %c0_i32, %c0_i32_0 : i32, i32
  }
  func.func @transform_6(%arg0: i32) -> (i32, i32) {
    %c0_i32 = arith.constant 0 : i32
    %c0_i32_0 = arith.constant 0 : i32
    %c0_i32_1 = arith.constant 0 : i32
    return %c0_i32, %c0_i32_0 : i32, i32
  }
  func.func @transform_7(%arg0: i32) -> (i32, i32) {
    %c0_i32 = arith.constant 0 : i32
    %c0_i32_0 = arith.constant 0 : i32
    %c0_i32_1 = arith.constant 0 : i32
    return %c0_i32, %c0_i32_0 : i32, i32
  }
  func.func @transform_8(%arg0: i32) -> (i32, i32) {
    %c0_i32 = arith.constant 0 : i32
    %c0_i32_0 = arith.constant 0 : i32
    %c0_i32_1 = arith.constant 0 : i32
    return %c0_i32, %c0_i32_0 : i32, i32
  }
  func.func @transform_9(%arg0: i32) -> (i32, i32, i32) {
    %c0_i32 = arith.constant 0 : i32
    %c0_i32_0 = arith.constant 0 : i32
    %c0_i32_1 = arith.constant 0 : i32
    %c0_i32_2 = arith.constant 0 : i32
    return %c0_i32, %c0_i32_0, %c0_i32_1 : i32, i32, i32
  }
  func.func @transform_10(%arg0: i32) -> (i32, i32, i32) {
    %c0_i32 = arith.constant 0 : i32
    %c0_i32_0 = arith.constant 0 : i32
    %c0_i32_1 = arith.constant 0 : i32
    %c0_i32_2 = arith.constant 0 : i32
    return %c0_i32, %c0_i32_0, %c0_i32_1 : i32, i32, i32
  }
  func.func @transform_11(%arg0: i32) -> (i32, i32, i32) {
    %c0_i32 = arith.constant 0 : i32
    %c0_i32_0 = arith.constant 0 : i32
    %c0_i32_1 = arith.constant 0 : i32
    %c0_i32_2 = arith.constant 0 : i32
    return %c0_i32, %c0_i32_0, %c0_i32_1 : i32, i32, i32
  }
  func.func @transform_12(%arg0: i32) -> (i32, i32, i32) {
    %c0_i32 = arith.constant 0 : i32
    %c0_i32_0 = arith.constant 0 : i32
    %c0_i32_1 = arith.constant 0 : i32
    %c0_i32_2 = arith.constant 0 : i32
    return %c0_i32, %c0_i32_0, %c0_i32_1 : i32, i32, i32
  }
  func.func @transform_13(%arg0: i32) -> (i32, i32, i32) {
    %c0_i32 = arith.constant 0 : i32
    %c0_i32_0 = arith.constant 0 : i32
    %c0_i32_1 = arith.constant 0 : i32
    %c0_i32_2 = arith.constant 0 : i32
    return %c0_i32, %c0_i32_0, %c0_i32_1 : i32, i32, i32
  }
  func.func @transform_14(%arg0: i32) -> (i32, i32, i32) {
    %c0_i32 = arith.constant 0 : i32
    %c0_i32_0 = arith.constant 0 : i32
    %c0_i32_1 = arith.constant 0 : i32
    %c0_i32_2 = arith.constant 0 : i32
    return %c0_i32, %c0_i32_0, %c0_i32_1 : i32, i32, i32
  }
  func.func @transform_15(%arg0: i32) -> (i32, i32, i32) {
    %c0_i32 = arith.constant 0 : i32
    %c0_i32_0 = arith.constant 0 : i32
    %c0_i32_1 = arith.constant 0 : i32
    %c0_i32_2 = arith.constant 0 : i32
    return %c0_i32, %c0_i32_0, %c0_i32_1 : i32, i32, i32
  }
  func.func @transform_16(%arg0: i32) -> (i32, i32, i32) {
    %c0_i32 = arith.constant 0 : i32
    %c0_i32_0 = arith.constant 0 : i32
    %c0_i32_1 = arith.constant 0 : i32
    return %arg0, %c0_i32, %c0_i32_0 : i32, i32, i32
  }
}

</mosaic_0001>

<bundles_post_ra>
// kernel: tpu_custom_call.1
= control target key start
LH: loop header
LB: loop body
LE: loop exit
PB: predicated region body
PF: predicated region fallthrough
CT: control target
= control target key end

     0   :  { %s10919_s0 = inlined_call_operand.vmem [shape: f32[2,8,16], index: 0, kind: input, shape index: {}]   ;;  %s10920_s1 = inlined_call_operand.vmem [shape: f32[2,8,8], index: 1, kind: input, shape index: {}]   ;;  %s10921_s2 = inlined_call_operand.vmem [shape: f32[2,8,8], index: 2, kind: input, shape index: {}]   ;;  %s10922_s3 = inlined_call_operand.vmem [shape: f32[16,32], index: 3, kind: input, shape index: {}]   ;;  %s10923_s4 = inlined_call_operand.vmem [shape: f32[1,32], index: 4, kind: input, shape index: {}]   ;;  %s10924_s5 = inlined_call_operand.vmem [shape: f32[8,32], index: 5, kind: input, shape index: {}]   ;;  %s10925_s6 = inlined_call_operand.vmem [shape: f32[1,32], index: 6, kind: input, shape index: {}]   ;;  %s10926_s7 = inlined_call_operand.vmem [shape: f32[8,32], index: 7, kind: input, shape index: {}]   ;;  %s10927_s8 = inlined_call_operand.vmem [shape: f32[1,32], index: 8, kind: input, shape index: {}]   ;;  %s10928_s9 = inlined_call_operand.vmem [shape: f32[16,32,8], index: 9, kind: input, shape index: {}]   ;;  %s10929_s10 = inlined_call_operand.vmem [shape: f32[16,32,8], index: 10, kind: input, shape index: {}]   ;;  %s10930_s11 = inlined_call_operand.vmem [shape: f32[16,32,32], index: 11, kind: input, shape index: {}]   ;;  %s10931_s12 = inlined_call_operand.vmem [shape: f32[4,32,32], index: 12, kind: input, shape index: {}]   ;;  %s10932_s13 = inlined_call_operand.vmem [shape: f32[4,1,32], index: 13, kind: input, shape index: {}]   ;;  %s10933_s14 = inlined_call_operand.vmem [shape: f32[4,1,32], index: 14, kind: input, shape index: {}]   ;;  %s10934_s15 = inlined_call_operand.vmem [shape: f32[4,1,32], index: 15, kind: input, shape index: {}]   ;;  %s10935_s16 = inlined_call_operand.hbm [shape: f32[2,8,32], index: 16, kind: output, shape index: {}]  }
   0x1   :  { %10940 = sst [smem:[#allocation9_spill]] %s10919_s0 }
   0x2   :  { %10941 = sst [smem:[#allocation10_spill]] %s10922_s3 }
   0x3   :  { %10942 = sst [smem:[#allocation11_spill]] %s10923_s4 }
   0x4   :  { %21 = vsyncpa [#allocation3], 0 }
   0x5   :  { %23 = vsyncpa [#allocation3 + $0x1], 0  ;;  %s9540_s21 = smov 0   ;;  %s9542_s22 = smov 0  }
   0x6   :  { %s9544_s23 = smov 0   ;;  %s9546_s24 = smov 0  }
   0x7 LB: > { %10943 = sst [smem:[#allocation5_spill]] %s9445_s23  ;;  %s9561_s25 = sadd.s32 4294967295, %s9449_s24   ;;  %s9449_s24 = sphi %s9546_s24, %s10953_s24   ;;  %s9445_s23 = sphi %s9544_s23, %s10955_s23   ;;  %s9441_s22 = sphi %s9542_s22, %s10957_s22   ;;  %s9437_s21 = sphi %s9540_s21, %s10956_s21  }
   0x8   : > { %s7547_s26 = sadd.s32 4294967294, %s9449_s24   ;;  %s9565_s27 = sadd.s32 1, %s9449_s24  }
   0x9   : > { %10944 = sst [smem:[#allocation6_spill]] %s9565_s27  ;;  %s387_s28 = sadd.s32 1, %s9445_s23 }
   0xa   : > { %s384_s29 = ssub.s32 %s9449_s24, %s9565_s27  ;;  %p397_p0 = scmp.ne.s32.totalorder %s9445_s23, %s9441_s22 }
   0xb   : > { %p385_p1 = scmp.eq.s32.totalorder %s384_s29, 0  ;;  %p398_p2 = scmp.eq.s32.totalorder %s9561_s25, 1 }
   0xc   : > { %p403_p3 = scmp.ne.s32.totalorder %s9441_s22, %s9437_s21  ;;  %p404_p4 = scmp.eq.s32.totalorder %s7547_s26, 1 }
   0xd   : > { %s9576_s30 = scalar_select %p385_p1, %s9445_s23, %s387_s28  }
   0xe   : > { %p9578_p5 = por %p398_p2, %p397_p0  ;;  %p9582_p6 = por %p404_p4, %p403_p3 }
   0xf   : > { %10945 = sst [smem:[#allocation7_spill]] %s9576_s30  ;;  %p7550_p7 = scmp.ge.s32.totalorder %s9449_s24, 1 }
  0x10   : > { %s10947_s17 = scalar_select %p9582_p6, 1, 0 }
  0x11   : > { %p482_p8 = scmp.lt.s32.totalorder %s9449_s24, 3 }
  0x12   : > { %10948 = sst [smem:[#allocation8_spill]] %s10947_s17 }
  0x13   : > { %p483_p9 = pnand %p7550_p7, %p482_p8 }
  0x14   : > { %s10949_s3 = sld [smem:[#allocation10_spill]] (!%p483_p9)  ;;  %p539_p10 = scmp.lt.s32.totalorder (!%p483_p9), %s9561_s25, 1  ;;  %v9451_v2 = vmov (!%p483_p9), 0.0|0.0   ;;  %vm9452_vm0 = vmmov (!%p483_p9), 0   ;;  %v9453_v4 = vmov (!%p483_p9), 0.0   ;;  %v635_v5 = vld [vmem:[%s10931_s12] sm:$0xff] (!%p483_p9) }
  0x15   : > { %486 = sbr.rel (%p483_p9) target bundleno = 13997 (0x36ad), region = 84  ;;  %8958 = vmatprep.subr.bf16.mxu0 (!%p483_p9), %v9451_v2  ;;  %8213 = vmatprep.mubr.msk.f32.mxu0 (!%p483_p9), %vm9452_vm0, %v9453_v4  ;;  %v636_v6 = vld [vmem:[%s10931_s12 + $0x8] sm:$0xff] (!%p483_p9)  ;;  %v720_v7 = vld [vmem:[%s10928_s9] sm:$0xff] (!%p483_p9)  ;;  %v637_v10 = vld [vmem:[%s10931_s12 + $0x10] sm:$0xff] (!%p483_p9)  ;;  %vm561_vm1 = vcmask (!%p483_p9), 130048   ;;  %s10950_s30 = sld [smem:[#allocation9_spill]] (!%p483_p9) }
  0x16   : > { %8961 = vmatprep.subr.bf16.mxu1 (!%p483_p9), %v9451_v2  ;;  %v8962_v8 = vpack.c.bf16 (!%p483_p9), %v636_v6, %v635_v5  ;;  %v721_v9 = vld [vmem:[%s10928_s9 + $0x8] sm:$0xff] (!%p483_p9)  ;;  %v638_v11 = vld [vmem:[%s10931_s12 + $0x18] sm:$0xff] (!%p483_p9)  ;;  %8224 = vmatprep.mubr.msk.f32.mxu1 (!%p483_p9), %vm9452_vm0, %v9453_v4  ;;  %v722_v14 = vld [vmem:[%s10928_s9 + $0x10] sm:$0xff] (!%p483_p9)  ;;  %s10951_s4 = sld [smem:[#allocation11_spill]] (!%p483_p9)  ;;  %vm646_vm2 = vcmask (!%p483_p9), 261120   ;;  %vm942_vm3 = vcmask (!%p483_p9), 64512  }
  0x17   : > { %v8968_v12 = vpack.c.bf16 (!%p483_p9), %v721_v9, %v720_v7  ;;  %v8965_v13 = vpack.c.bf16 (!%p483_p9), %v638_v11, %v637_v10  ;;  %v723_v15 = vld [vmem:[%s10928_s9 + $0x18] sm:$0xff] (!%p483_p9)  ;;  %v794_v18 = vld [vmem:[%s10929_s10] sm:$0xff] (!%p483_p9)  ;;  %v795_v19 = vld [vmem:[%s10929_s10 + $0x8] sm:$0xff] (!%p483_p9)  ;;  %s536_s28 = sand.u32 (!%p483_p9), 1, %s9441_s22  }
  0x18   : > { %8963 = vmatpush3.bf16.msra.mxu1 (!%p483_p9), %v8962_v8  ;;  %v8971_v17 = vpack.c.bf16 (!%p483_p9), %v723_v15, %v722_v14  ;;  %v868_v20 = vld [vmem:[%s10930_s11] sm:$0xff] (!%p483_p9)  ;;  %v869_v21 = vld [vmem:[%s10930_s11 + $0x8] sm:$0xff] (!%p483_p9)  ;;  %v8974_v24 = vpack.c.bf16 (!%p483_p9), %v795_v19, %v794_v18  ;;  %v796_v26 = vld [vmem:[%s10929_s10 + $0x10] sm:$0xff] (!%p483_p9)  ;;  %s7551_s29 = sshll.u32 (!%p483_p9), %s536_s28, 3  ;;  %s7451_s23 = scalar_lea.sflag (!%p483_p9), [#allocation3], %s536_s28 }
  0x19   : > { %8964 = vmatprep.subr.bf16.mxu1 (!%p483_p9), %v9451_v2  ;;  %v8980_v25 = vpack.c.bf16 (!%p483_p9), %v869_v21, %v868_v20  ;;  %v797_v29 = vld [vmem:[%s10929_s10 + $0x18] sm:$0xff] (!%p483_p9)  ;;  %v870_v30 = vld [vmem:[%s10930_s11 + $0x10] sm:$0xff] (!%p483_p9)  ;;  %v7565_v38 = vld [vmem:[%s10928_s9 + $0x20] sm:$0xff] (!%p483_p9) }
  0x1a   : > { %v552_v0 = vld [vmem:[%s10949_s3] sm:$0xff] (!%p483_p9)  ;;  %v553_v1 = vld [vmem:[%s10949_s3 + $0x8] sm:$0xff] (!%p483_p9)  ;;  %v871_v31 = vld [vmem:[%s10930_s11 + $0x18] sm:$0xff] (!%p483_p9)  ;;  %v8977_v32 = vpack.c.bf16 (!%p483_p9), %v797_v29, %v796_v26 }
  0x1b   : > { %v8959_v3 = vpack.c.bf16 (!%p483_p9), %v553_v1, %v552_v0  ;;  %v8983_v33 = vpack.c.bf16 (!%p483_p9), %v871_v31, %v870_v30  ;;  %v7566_v39 = vld [vmem:[%s10928_s9 + $0x28] sm:$0xff] (!%p483_p9)  ;;  %v7567_v41 = vld [vmem:[%s10928_s9 + $0x30] sm:$0xff] (!%p483_p9)  ;;  %v7568_v42 = vld [vmem:[%s10928_s9 + $0x38] sm:$0xff] (!%p483_p9) }
  0x1c   : > { %s540_s3 = scalar_select %p539_p10, %s9561_s25, 1  ;;  %8966 = vmatpush3.bf16.msra.mxu1 %v8965_v13  ;;  %v7555_v22 = vld [vmem:[%s10951_s4] ss:$0 sm:$0xff]  ;;  %v8986_v40 = vpack.c.bf16 %v7566_v39, %v7565_v38  ;;  %v8989_v47 = vpack.c.bf16 %v7568_v42, %v7567_v41  ;;  %v7576_v49 = vld [vmem:[%s10930_s11 + $0x28] sm:$0xff]  ;;  %v7577_v51 = vld [vmem:[%s10930_s11 + $0x30] sm:$0xff] }
  0x1d   : > { %8960 = vmatpush3.bf16.msra.mxu0 %v8959_v3  ;;  %8973 = vmatprep.subr.bf16.mxu1 %v9451_v2  ;;  %v7575_v48 = vld [vmem:[%s10930_s11 + $0x20] sm:$0xff]  ;;  %v7578_v52 = vld [vmem:[%s10930_s11 + $0x38] sm:$0xff]  ;;  %v7584_v55 = vld [vmem:[%s10928_s9 + $0x48] sm:$0xff]  ;;  %s538_s4 = scalar_lea.vmem [#allocation2], %s7551_s29 }
  0x1e   : > { %s9620_s18 = sshll.u32 %s540_s3, 3  ;;  %8967 = vmatprep.subr.bf16.mxu0 %v9451_v2  ;;  %v8998_v50 = vpack.c.bf16 %v7576_v49, %v7575_v48  ;;  %v9001_v53 = vpack.c.bf16 %v7578_v52, %v7577_v51  ;;  %v7583_v54 = vld [vmem:[%s10928_s9 + $0x40] sm:$0xff]  ;;  %v7585_v57 = vld [vmem:[%s10928_s9 + $0x50] sm:$0xff]  ;;  %v7586_v58 = vld [vmem:[%s10928_s9 + $0x58] sm:$0xff]  ;;  %s7464_s19 = sshll.u32 %s538_s4, 4  ;;  %s10878_s19 = int_to_ptr.vmem [resolvable:$true] %s7464_s19 }
  0x1f   : > { %s542_s17 = scalar_lea.vmem %s10950_s30, %s9620_s18  ;;  %v9004_v56 = vpack.c.bf16 %v7584_v55, %v7583_v54  ;;  %v9007_v59 = vpack.c.bf16 %v7586_v58, %v7585_v57  ;;  %v7593_v60 = vld [vmem:[%s10930_s11 + $0x40] sm:$0xff]  ;;  %v7594_v61 = vld [vmem:[%s10930_s11 + $0x48] sm:$0xff]  ;;  %v7595_v63 = vld [vmem:[%s10930_s11 + $0x50] sm:$0xff]  ;;  %s550_s20 = scalar_lea.vmem %s10921_s2, %s9620_s18 }
  0x20   : > { %v551_v16 = vld [vmem:[%s542_s17] sm:$0xff]  ;;  %v9016_v62 = vpack.c.bf16 %v7594_v61, %v7593_v60  ;;  %v7596_v0 = vld [vmem:[%s10930_s11 + $0x58] sm:$0xff]  ;;  %v7602_v5 = vld [vmem:[%s10928_s9 + $0x68] sm:$0xff]  ;;  %s546_s3 = scalar_lea.vmem %s10920_s1, %s9620_s18  ;;  %s7875_s17 = sshll.u32 %s9561_s25, 7 }
  0x21   : > { %8214 = vmatmul.mubr.msk.f32.vlgmr.msra.gmra.mrb[0].mxu0 %vm561_vm1, %v551_v16  ;;  %v9019_v1 = vpack.c.bf16 %v7596_v0, %v7595_v63  ;;  %v7601_v3 = vld [vmem:[%s10928_s9 + $0x60] sm:$0xff]  ;;  %v7603_v7 = vld [vmem:[%s10928_s9 + $0x70] sm:$0xff]  ;;  %v7604_v8 = vld [vmem:[%s10928_s9 + $0x78] sm:$0xff]  ;;  %s9387_s18 = scalar_lea.vmem %s10878_s19, 128  ;;  %s9454_s25 = smov [#allocation2]  }
  0x22   : > { %8969 = vmatpush3.bf16.msra.mxu0 %v8968_v12  ;;  %8235 = vmatprep.mubr.msk.f32.mxu0 %vm9452_vm0, %v9453_v4  ;;  %v9022_v6 = vpack.c.bf16 %v7602_v5, %v7601_v3  ;;  %v9025_v9 = vpack.c.bf16 %v7604_v8, %v7603_v7  ;;  %v7611_v10 = vld [vmem:[%s10930_s11 + $0x60] sm:$0xff]  ;;  %v7612_v11 = vld [vmem:[%s10930_s11 + $0x68] sm:$0xff]  ;;  %v7613_v13 = vld [vmem:[%s10930_s11 + $0x70] sm:$0xff]  ;;  %p9388_p11 = scmp.ne.s32.totalorder %s10878_s19, %s9387_s18  ;;  %s9391_s29 = sshll.u32 %s9454_s25, 4  ;;  %s9392_s29 = int_to_ptr.vmem [resolvable:$false] %s9391_s29 }
  0x23   : > { %8970 = vmatprep.subr.bf16.mxu0 %v9451_v2  ;;  %v9034_v12 = vpack.c.bf16 %v7612_v11, %v7611_v10  ;;  %v7614_v14 = vld [vmem:[%s10930_s11 + $0x78] sm:$0xff]  ;;  %v7570_v39 = vld [vmem:[%s10929_s10 + $0x20] sm:$0xff]  ;;  %v7589_v63 = vld [vmem:[%s10929_s10 + $0x48] sm:$0xff]  ;;  %s9393_s27 = scalar_lea.vmem %s9392_s29, 256  ;;  %p9394_p0 = scmp.lt.s32.totalorder %s10878_s19, %s9392_s29 }
  0x24   : > { %v9037_v15 = vpack.c.bf16 %v7614_v14, %v7613_v13  ;;  %v7590_v5 = vld [vmem:[%s10929_s10 + $0x50] sm:$0xff]  ;;  %p9389_p12 = pnand %p9388_p11, %p9578_p5  ;;  %p9395_p1 = scmp.lt.s32.totalorder %s9393_s27, %s9387_s18 }
  0x26   : > { %8972 = vmatpush3.bf16.msra.mxu0 %v8971_v17  ;;  %p9390_p13 = pneg %p9389_p12  ;;  %p9396_p2 = por %p9395_p1, %p9394_p0 }
  0x27   : > { %8979 = vmatprep.subr.bf16.mxu0 %v9451_v2 }
  0x28   : > { %p9397_p3 = pnand %p9396_p2, %p9390_p13 }
  0xf4   : > { %v631_v23 = vpop.f32.mrb[0].mxu0 }
  0xf5   : > { %v9657_v27 = vadd.f32 %v7555_v22, %v631_v23  ;;  %v8215_v28 = vpop.f32.mrb[1].mxu0 }
  0xf7   : > { %8225 = vmatmul.mubr.msk.f32.vlgmr.msra.gmra.mrb[0].mxu1 %vm646_vm2, %v9657_v27  ;;  %8236 = vmatmul.mubr.msk.f32.vlgmr.msra.gmra.mrb[2].mxu0 %vm646_vm2, %v9657_v27 }
  0xf8   : > { %8975 = vmatpush3.bf16.msra.mxu1 %v8974_v24  ;;  %8981 = vmatpush3.bf16.msra.mxu0 %v8980_v25 }
  0xf9   : > { %8976 = vmatprep.subr.bf16.mxu1 %v9451_v2  ;;  %8982 = vmatprep.subr.bf16.mxu0 %v9451_v2 }
  0xfa   : > { %8246 = vmatprep.mubr.msk.f32.mxu1 %vm9452_vm0, %v9453_v4  ;;  %8257 = vmatprep.mubr.msk.f32.mxu0 %vm9452_vm0, %v9453_v4 }
  0xfc   : > { %8978 = vmatpush3.bf16.msra.mxu1 %v8977_v32  ;;  %8984 = vmatpush3.bf16.msra.mxu0 %v8983_v33 }
  0xfd   : > { %8260 = vmatprep.subr.mxu1 %v9453_v4  ;;  %8265 = vmatprep.subr.mxu0 %v9453_v4 }
  0xff   : > { %8247 = vmatmul.mubr.msk.f32.vlgmr.msra.gmra.mrb[2].mxu1 %vm646_vm2, %v9657_v27  ;;  %8258 = vmatmul.mubr.msk.f32.vlgmr.msra.gmra.mrb[4].mxu0 %vm646_vm2, %v9657_v27 }
 0x100   : > { %8262 = vmatprep.mubr.msk.f32.mxu1 %vm9452_vm0, %v9453_v4  ;;  %8267 = vmatprep.mubr.msk.f32.mxu0 %vm9452_vm0, %v9453_v4 }
 0x1ca   : > { %v9688_v34 = vpop.f32.mrb[0].mxu1  ;;  %v790_v35 = vpop.f32.mrb[2].mxu0 }
 0x1cb   : > { %v8226_v36 = vpop.f32.mrb[1].mxu1  ;;  %v8237_v37 = vpop.f32.mrb[3].mxu0  ;;  %8261 = vmatpush3.xpose.msk.msra.mxu1 %vm942_vm3, %v790_v35 }
 0x1cc   : > { %8985 = vmatprep.subr.bf16.mxu1 %v9451_v2 }
 0x1d2   : > { %v864_v43 = vpop.f32.mrb[2].mxu1  ;;  %v938_v44 = vpop.f32.mrb[4].mxu0 }
 0x1d3   : > { %v8248_v45 = vpop.f32.mrb[3].mxu1  ;;  %v8259_v46 = vpop.f32.mrb[5].mxu0  ;;  %8263 = vmatmul.mubr.msk.f32.vlgmr.msra.gmra.mrb[4].mxu1 %vm942_vm3, %v864_v43  ;;  %8266 = vmatpush3.msra.mxu0 %v938_v44  ;;  %v7572_v44 = vld [vmem:[%s10929_s10 + $0x30] sm:$0xff] }
 0x1d4   : > { %8987 = vmatpush3.bf16.msra.mxu1 %v8986_v40  ;;  %8278 = vmatprep.mubr.msk.f32.mxu1 %vm9452_vm0, %v9453_v4  ;;  %v7571_v40 = vld [vmem:[%s10929_s10 + $0x28] sm:$0xff]  ;;  %v7573_v45 = vld [vmem:[%s10929_s10 + $0x38] sm:$0xff] }
 0x1d5   : > { %8988 = vmatprep.subr.bf16.mxu1 %v9451_v2  ;;  %8991 = vmatprep.subr.bf16.mxu0 %v9451_v2  ;;  %v8992_v42 = vpack.c.bf16 %v7571_v40, %v7570_v39  ;;  %v8995_v46 = vpack.c.bf16 %v7573_v45, %v7572_v44 }
 0x1d8   : > { %8990 = vmatpush3.bf16.msra.mxu1 %v8989_v47  ;;  %v7557_v47 = vld [vmem:[%s10932_s13] ss:$0 sm:$0xff] }
 0x1d9   : > { %8997 = vmatprep.subr.bf16.mxu1 %v9451_v2  ;;  %v717_v48 = vadd.f32 %v7557_v47, %v9688_v34 }
 0x1db   : > { %8279 = vmatmul.mubr.msk.f32.vlgmr.msra.gmra.mrb[6].mxu1 %vm646_vm2, %v9657_v27 }
 0x1dc   : > { %8999 = vmatpush3.bf16.msra.mxu1 %v8998_v50  ;;  %8300 = vmatprep.mubr.msk.f32.mxu1 %vm9452_vm0, %v9453_v4 }
 0x1dd   : > { %9000 = vmatprep.subr.bf16.mxu1 %v9451_v2 }
 0x1e0   : > { %9002 = vmatpush3.bf16.msra.mxu1 %v9001_v53 }
 0x1e1   : > { %9003 = vmatprep.subr.bf16.mxu1 %v9451_v2 }
 0x1e3   : > { %8301 = vmatmul.mubr.msk.f32.vlgmr.msra.gmra.mrb[8].mxu1 %vm646_vm2, %v9657_v27 }
 0x1e4   : > { %9005 = vmatpush3.bf16.msra.mxu1 %v9004_v56  ;;  %8321 = vmatprep.mubr.msk.f32.mxu1 %vm9452_vm0, %v9453_v4 }
 0x1e5   : > { %9006 = vmatprep.subr.bf16.mxu1 %v9451_v2 }
 0x1e8   : > { %9008 = vmatpush3.bf16.msra.mxu1 %v9007_v59 }
 0x1e9   : > { %9015 = vmatprep.subr.bf16.mxu1 %v9451_v2 }
 0x1eb   : > { %8322 = vmatmul.mubr.msk.f32.vlgmr.msra.gmra.mrb[10].mxu1 %vm646_vm2, %v9657_v27 }
 0x1ec   : > { %9017 = vmatpush3.bf16.msra.mxu1 %v9016_v62  ;;  %8343 = vmatprep.mubr.msk.f32.mxu1 %vm9452_vm0, %v9453_v4  ;;  %v7588_v62 = vld [vmem:[%s10929_s10 + $0x40] sm:$0xff] }
 0x1ed   : > { %9018 = vmatprep.subr.bf16.mxu1 %v9451_v2 }
 0x1f0   : > { %9020 = vmatpush3.bf16.msra.mxu1 %v9019_v1  ;;  %v9010_v1 = vpack.c.bf16 %v7589_v63, %v7588_v62  ;;  %v7623_v62 = vld [vmem:[%s10931_s12 + $0x30] sm:$0xff]  ;;  %v7624_v63 = vld [vmem:[%s10931_s12 + $0x38] sm:$0xff] }
 0x1f1   : > { %9021 = vmatprep.subr.bf16.mxu1 %v9451_v2 }
 0x1f3   : > { %8344 = vmatmul.mubr.msk.f32.vlgmr.msra.gmra.mrb[12].mxu1 %vm646_vm2, %v9657_v27 }
 0x1f4   : > { %9023 = vmatpush3.bf16.msra.mxu1 %v9022_v6  ;;  %8364 = vmatprep.mubr.msk.f32.mxu1 %vm9452_vm0, %v9453_v4  ;;  %v7591_v6 = vld [vmem:[%s10929_s10 + $0x58] sm:$0xff] }
 0x1f5   : > { %9024 = vmatprep.subr.bf16.mxu1 %v9451_v2  ;;  %v9013_v7 = vpack.c.bf16 %v7591_v6, %v7590_v5 }
 0x1f8   : > { %9026 = vmatpush3.bf16.msra.mxu1 %v9025_v9 }
 0x1f9   : > { %9033 = vmatprep.subr.bf16.mxu1 %v9451_v2 }
 0x1fb   : > { %8365 = vmatmul.mubr.msk.f32.vlgmr.msra.gmra.mrb[14].mxu1 %vm646_vm2, %v9657_v27 }
 0x1fc   : > { %9035 = vmatpush3.bf16.msra.mxu1 %v9034_v12  ;;  %8386 = vmatprep.mubr.msk.f32.mxu1 %vm9452_vm0, %v9453_v4 }
 0x1fd   : > { %9036 = vmatprep.subr.bf16.mxu1 %v9451_v2 }
 0x200   : > { %9038 = vmatpush3.bf16.msra.mxu1 %v9037_v15 }
 0x201   : > { %9039 = vmatprep.subr.bf16.mxu1 %v9451_v2 }
 0x203   : > { %8387 = vmatmul.mubr.msk.f32.vlgmr.msra.gmra.mrb[16].mxu1 %vm646_vm2, %v9657_v27 }
 0x204   : > { %8407 = vmatprep.mubr.msk.f32.mxu1 %vm9452_vm0, %v9453_v4 }
 0x2a6   : > { %v1015_v16 = vpop.f32.mrb[4].mxu1 }
 0x2a7   : > { %v8264_v17 = vpop.f32.mrb[5].mxu1  ;;  %v1019_v18 = vsel %vm942_vm3, %v1015_v16, -inf }
 0x2a8   : > { %1020 = vmax.xlane.f32.xlu0 %v1019_v18 }
 0x2ae   : > { %v1175_v19 = vpop.f32.mrb[6].mxu1 }
 0x2af   : > { %v8280_v20 = vpop.f32.mrb[7].mxu1 }
 0x2b6   : > { %v1325_v21 = vpop.f32.mrb[8].mxu1 }
 0x2b7   : > { %v8302_v22 = vpop.f32.mrb[9].mxu1 }
 0x2b8   : > { %v7606_v22 = vld [vmem:[%s10929_s10 + $0x60] sm:$0xff] }
 0x2be   : > { %v9805_v23 = vpop.f32.mrb[10].mxu1 }
 0x2bf   : > { %v8323_v24 = vpop.f32.mrb[11].mxu1 }
 0x2c6   : > { %v9807_v25 = vpop.f32.mrb[12].mxu1 }
 0x2c7   : > { %v8345_v26 = vpop.f32.mrb[13].mxu1 }
 0x2ce   : > { %v9809_v28 = vpop.f32.mrb[14].mxu1 }
 0x2cf   : > { %v8366_v29 = vpop.f32.mrb[15].mxu1 }
 0x2d0   : > { %v7608_v29 = vld [vmem:[%s10929_s10 + $0x70] sm:$0xff] }
 0x2d6   : > { %v9811_v30 = vpop.f32.mrb[16].mxu1 }
 0x2d7   : > { %v8388_v31 = vpop.f32.mrb[17].mxu1 }
 0x2d8   : > { %v7609_v31 = vld [vmem:[%s10929_s10 + $0x78] sm:$0xff] }
 0x335   : > { %v1021_v32 = vpop.xlane.xlu0 %1020 }
 0x336   : > { %v1022_v33 = vsub.f32 %v1015_v16, %v1021_v32  ;;  %v9031_v32 = vpack.c.bf16 %v7609_v31, %v7608_v29 }
 0x338   : > { %v1023_v35 = vmul.f32 1.442695, %v1022_v33 }
 0x33a   : > { %9315 = vpow2.f32 %v1023_v35 }
 0x344   : > { %v9316_v36 = vpop.eup %9315 }
 0x345   : > { %v1025_v37 = vsel %vm942_vm3, %v9316_v36, 0.0 }
 0x346   : > { %1026 = vadd.xlane.f32.xlu0 %v1025_v37 }
 0x3d3   : > { %v1027_v38 = vpop.xlane.xlu0 %1026 }
 0x3d4   : > { %9317 = vrcp.f32 %v1027_v38 }
 0x3de   : > { %v9318_v41 = vpop.eup %9317 }
 0x3df   : > { %v1029_v43 = vmul.f32 %v9318_v41, %v9316_v36 }
 0x3e1   : > { %8268 = vmatmul.mubr.msk.f32.vlgmr.msra.gmra.mrb[6].mxu0 %vm942_vm3, %v1029_v43 }
 0x3e2   : > { %8993 = vmatpush3.bf16.msra.mxu0 %v8992_v42  ;;  %8289 = vmatprep.mubr.msk.f32.mxu0 %vm9452_vm0, %v9453_v4 }
 0x3e3   : > { %8994 = vmatprep.subr.bf16.mxu0 %v9451_v2 }
 0x3e6   : > { %8996 = vmatpush3.bf16.msra.mxu0 %v8995_v46 }
 0x3e7   : > { %8303 = vmatprep.subr.mxu0 %v9453_v4 }
 0x3e9   : > { %8290 = vmatmul.mubr.msk.f32.vlgmr.msra.gmra.mrb[8].mxu0 %vm646_vm2, %v9657_v27 }
 0x3ea   : > { %8305 = vmatprep.mubr.msk.f32.mxu0 %vm9452_vm0, %v9453_v4 }
 0x3ef   : > { %8304 = vmatpush3.xpose.msk.msra.mxu0 %vm942_vm3, %v1175_v19 }
 0x3f0   : > { %8308 = vmatprep.subr.mxu0 %v9453_v4 }
 0x4b4   : > { %v1099_v49 = vpop.f32.mrb[6].mxu0 }
 0x4b5   : > { %v1103_v50 = vadd.f32 %v1099_v49, %v717_v48  ;;  %v8269_v51 = vpop.f32.mrb[7].mxu0 }
 0x4bc   : > { %v1250_v52 = vpop.f32.mrb[8].mxu0 }
 0x4bd   : > { %v8291_v53 = vpop.f32.mrb[9].mxu0  ;;  %8306 = vmatmul.mubr.msk.f32.vlgmr.msra.gmra.mrb[10].mxu0 %vm942_vm3, %v1250_v52 }
 0x4be   : > { %8309 = vmatpush3.msra.mxu0 %v1325_v21  ;;  %8310 = vmatprep.mubr.msk.f32.mxu0 %vm9452_vm0, %v9453_v4 }
 0x4bf   : > { %9009 = vmatprep.subr.bf16.mxu0 %v9451_v2 }
 0x590   : > { %v1401_v54 = vpop.f32.mrb[10].mxu0 }
 0x591   : > { %v8307_v55 = vpop.f32.mrb[11].mxu0  ;;  %v1405_v56 = vsel %vm942_vm3, %v1401_v54, -inf }
 0x592   : > { %1406 = vmax.xlane.f32.xlu1 %v1405_v56 }
 0x61f   : > { %v1407_v57 = vpop.xlane.xlu1 %1406 }
 0x620   : > { %v1408_v34 = vsub.f32 %v1401_v54, %v1407_v57 }
 0x622   : > { %v1409_v58 = vmul.f32 1.442695, %v1408_v34  ;;  %v7621_v34 = vld [vmem:[%s10931_s12 + $0x20] sm:$0xff] }
 0x624   : > { %9319 = vpow2.f32 %v1409_v58  ;;  %v7622_v58 = vld [vmem:[%s10931_s12 + $0x28] sm:$0xff] }
 0x62e   : > { %v9320_v59 = vpop.eup %9319 }
 0x62f   : > { %v1411_v60 = vsel %vm942_vm3, %v9320_v59, 0.0 }
 0x630   : > { %1412 = vadd.xlane.f32.xlu1 %v1411_v60  ;;  %v7629_v60 = vld [vmem:[%s10928_s9 + $0x88] sm:$0xff] }
 0x6bd   : > { %v1413_v61 = vpop.xlane.xlu1 %1412 }
 0x6be   : > { %9321 = vrcp.f32 %v1413_v61 }
 0x6c8   : > { %v9322_v0 = vpop.eup %9321 }
 0x6c9   : > { %v1415_v3 = vmul.f32 %v9322_v0, %v9320_v59  ;;  %v9040_v59 = vpack.c.bf16 %v7622_v58, %v7621_v34  ;;  %v7630_v0 = vld [vmem:[%s10928_s9 + $0x90] sm:$0xff]  ;;  %v7677_v58 = vld [vmem:[%s10930_s11 + $0xd8] sm:$0xff] }
 0x6ca   : > { %v7676_v34 = vld [vmem:[%s10930_s11 + $0xd0] sm:$0xff] }
 0x6cb   : > { %8311 = vmatmul.mubr.msk.f32.vlgmr.msra.gmra.mrb[12].mxu0 %vm942_vm3, %v1415_v3  ;;  %9041 = vmatpush3.bf16.msra.mxu1 %v9040_v59  ;;  %v7631_v3 = vld [vmem:[%s10928_s9 + $0x98] sm:$0xff]  ;;  %v7682_v59 = vld [vmem:[%s10928_s9 + $0xe0] sm:$0xff] }
 0x6cc   : > { %9011 = vmatpush3.bf16.msra.mxu0 %v9010_v1  ;;  %8332 = vmatprep.mubr.msk.f32.mxu0 %vm9452_vm0, %v9453_v4  ;;  %v9043_v1 = vpack.c.bf16 %v7624_v63, %v7623_v62  ;;  %v9049_v5 = vpack.c.bf16 %v7631_v3, %v7630_v0  ;;  %v7684_v62 = vld [vmem:[%s10928_s9 + $0xf0] sm:$0xff]  ;;  %v7685_v63 = vld [vmem:[%s10928_s9 + $0xf8] sm:$0xff]  ;;  %v7693_v3 = vld [vmem:[%s10930_s11 + $0xe8] sm:$0xff] }
 0x6cd   : > { %9012 = vmatprep.subr.bf16.mxu0 %v9451_v2  ;;  %9042 = vmatprep.subr.bf16.mxu1 %v9451_v2  ;;  %v9103_v0 = vpack.c.bf16 %v7685_v63, %v7684_v62 }
 0x6cf   : > { %9044 = vmatpush3.bf16.msra.mxu1 %v9043_v1  ;;  %v7692_v1 = vld [vmem:[%s10930_s11 + $0xe0] sm:$0xff] }
 0x6d0   : > { %9014 = vmatpush3.bf16.msra.mxu0 %v9013_v7  ;;  %9051 = vmatprep.subr.bf16.mxu1 %v9451_v2 }
 0x6d1   : > { %8346 = vmatprep.subr.mxu0 %v9453_v4 }
 0x6d3   : > { %8333 = vmatmul.mubr.msk.f32.vlgmr.msra.gmra.mrb[14].mxu0 %vm646_vm2, %v9657_v27 }
 0x6d4   : > { %8348 = vmatprep.mubr.msk.f32.mxu0 %vm9452_vm0, %v9453_v4 }
 0x6d9   : > { %8347 = vmatpush3.xpose.msk.msra.mxu0 %vm942_vm3, %v9805_v23  ;;  %v7607_v23 = vld [vmem:[%s10929_s10 + $0x68] sm:$0xff] }
 0x6da   : > { %8351 = vmatprep.subr.mxu0 %v9453_v4 }
 0x79e   : > { %v1485_v8 = vpop.f32.mrb[12].mxu0 }
 0x79f   : > { %v1489_v9 = vadd.f32 %v1485_v8, %v1103_v50  ;;  %v8312_v10 = vpop.f32.mrb[13].mxu0 }
 0x7a0   : > { %v7619_v10 = vld [vmem:[%s10933_s14] ss:$0 sm:$0xff] }
 0x7a6   : > { %v1636_v11 = vpop.f32.mrb[14].mxu0 }
 0x7a7   : > { %v8334_v12 = vpop.f32.mrb[15].mxu0  ;;  %8349 = vmatmul.mubr.msk.f32.vlgmr.msra.gmra.mrb[16].mxu0 %vm942_vm3, %v1636_v11  ;;  %v7633_v11 = vld [vmem:[%s10929_s10 + $0x80] sm:$0xff] }
 0x7a8   : > { %8352 = vmatpush3.msra.mxu0 %v9807_v25  ;;  %8353 = vmatprep.mubr.msk.f32.mxu0 %vm9452_vm0, %v9453_v4  ;;  %v9028_v25 = vpack.c.bf16 %v7607_v23, %v7606_v22  ;;  %v7636_v22 = vld [vmem:[%s10929_s10 + $0x98] sm:$0xff]  ;;  %v7640_v23 = vld [vmem:[%s10930_s11 + $0x90] sm:$0xff] }
 0x7a9   : > { %9027 = vmatprep.subr.bf16.mxu0 %v9451_v2 }
 0x87a   : > { %v1787_v13 = vpop.f32.mrb[16].mxu0 }
 0x87b   : > { %v8350_v14 = vpop.f32.mrb[17].mxu0  ;;  %v1791_v15 = vsel %vm942_vm3, %v1787_v13, -inf }
 0x87c   : > { %1792 = vmax.xlane.f32.xlu0 %v1791_v15  ;;  %v7638_v14 = vld [vmem:[%s10930_s11 + $0x80] sm:$0xff]  ;;  %v7639_v15 = vld [vmem:[%s10930_s11 + $0x88] sm:$0xff] }
 0x909   : > { %v1793_v16 = vpop.xlane.xlu0 %1792 }
 0x90a   : > { %v1794_v17 = vsub.f32 %v1787_v13, %v1793_v16  ;;  %v7634_v13 = vld [vmem:[%s10929_s10 + $0x88] sm:$0xff]  ;;  %v7620_v16 = vld [vmem:[%s10934_s15] ss:$0 sm:$0xff] }
 0x90c   : > { %v1795_v18 = vmul.f32 1.442695, %v1794_v17 }
 0x90e   : > { %9323 = vpow2.f32 %v1795_v18  ;;  %v9052_v18 = vpack.c.bf16 %v7634_v13, %v7633_v11 }
 0x918   : > { %v9324_v19 = vpop.eup %9323 }
 0x919   : > { %v1797_v20 = vsel %vm942_vm3, %v9324_v19, 0.0 }
 0x91a   : > { %1798 = vadd.xlane.f32.xlu1 %v1797_v20  ;;  %v7635_v20 = vld [vmem:[%s10929_s10 + $0x90] sm:$0xff] }
 0x9a7   : > { %v1799_v21 = vpop.xlane.xlu1 %1798 }
 0x9a8   : > { %9325 = vrcp.f32 %v1799_v21 }
 0x9b2   : > { %v9326_v24 = vpop.eup %9325 }
 0x9b3   : > { %v1801_v26 = vmul.f32 %v9326_v24, %v9324_v19  ;;  %v9058_v19 = vpack.c.bf16 %v7639_v15, %v7638_v14  ;;  %v7641_v24 = vld [vmem:[%s10930_s11 + $0x98] sm:$0xff] }
 0x9b5   : > { %8354 = vmatmul.mubr.msk.f32.vlgmr.msra.gmra.mrb[18].mxu0 %vm942_vm3, %v1801_v26  ;;  %v9061_v26 = vpack.c.bf16 %v7641_v24, %v7640_v23 }
 0x9b6   : > { %9029 = vmatpush3.bf16.msra.mxu0 %v9028_v25  ;;  %8375 = vmatprep.mubr.msk.f32.mxu0 %vm9452_vm0, %v9453_v4  ;;  %v9055_v25 = vpack.c.bf16 %v7636_v22, %v7635_v20 }
 0x9b7   : > { %9030 = vmatprep.subr.bf16.mxu0 %v9451_v2 }
 0x9ba   : > { %9032 = vmatpush3.bf16.msra.mxu0 %v9031_v32 }
 0x9bb   : > { %8389 = vmatprep.subr.mxu0 %v9453_v4 }
 0x9bd   : > { %8376 = vmatmul.mubr.msk.f32.vlgmr.msra.gmra.mrb[20].mxu0 %vm646_vm2, %v9657_v27 }
 0x9be   : > { %8391 = vmatprep.mubr.msk.f32.mxu0 %vm9452_vm0, %v9453_v4 }
 0x9c3   : > { %8390 = vmatpush3.xpose.msk.msra.mxu0 %vm942_vm3, %v9809_v28 }
 0x9c4   : > { %8394 = vmatprep.subr.mxu0 %v9453_v4 }
 0xa88   : > { %v1871_v33 = vpop.f32.mrb[18].mxu0 }
 0xa89   : > { %v1875_v35 = vadd.f32 %v1871_v33, %v1489_v9  ;;  %v8355_v36 = vpop.f32.mrb[19].mxu0 }
 0xa8a   : > { %v7647_v36 = vld [vmem:[%s10928_s9 + $0xa8] sm:$0xff] }
 0xa90   : > { %v2022_v37 = vpop.f32.mrb[20].mxu0 }
 0xa91   : > { %v8377_v38 = vpop.f32.mrb[21].mxu0  ;;  %8392 = vmatmul.mubr.msk.f32.vlgmr.msra.gmra.mrb[22].mxu0 %vm942_vm3, %v2022_v37 }
 0xa92   : > { %8395 = vmatpush3.msra.mxu0 %v9811_v30  ;;  %8396 = vmatprep.mubr.msk.f32.mxu0 %vm9452_vm0, %v9453_v4  ;;  %v7648_v38 = vld [vmem:[%s10928_s9 + $0xb0] sm:$0xff] }
 0xa93   : > { %9045 = vmatprep.subr.bf16.mxu0 %v9451_v2 }
 0xb64   : > { %v2173_v39 = vpop.f32.mrb[22].mxu0 }
 0xb65   : > { %v8393_v40 = vpop.f32.mrb[23].mxu0  ;;  %v2177_v28 = vsel %vm942_vm3, %v2173_v39, -inf }
 0xb66   : > { %2178 = vmax.xlane.f32.xlu0 %v2177_v28 }
 0xbf3   : > { %v2179_v41 = vpop.xlane.xlu0 %2178 }
 0xbf4   : > { %v2180_v42 = vsub.f32 %v2173_v39, %v2179_v41  ;;  %v7649_v39 = vld [vmem:[%s10928_s9 + $0xb8] sm:$0xff] }
 0xbf6   : > { %v2181_v43 = vmul.f32 1.442695, %v2180_v42 }
 0xbf8   : > { %9327 = vpow2.f32 %v2181_v43  ;;  %v9067_v43 = vpack.c.bf16 %v7649_v39, %v7648_v38 }
 0xc02   : > { %v9328_v44 = vpop.eup %9327 }
 0xc03   : > { %v2183_v45 = vsel %vm942_vm3, %v9328_v44, 0.0 }
 0xc04   : > { %2184 = vadd.xlane.f32.xlu1 %v2183_v45  ;;  %v7657_v45 = vld [vmem:[%s10930_s11 + $0xa8] sm:$0xff] }
 0xc91   : > { %v2185_v46 = vpop.xlane.xlu1 %2184 }
 0xc92   : > { %9329 = vrcp.f32 %v2185_v46 }
 0xc9c   : > { %v9330_v30 = vpop.eup %9329 }
 0xc9d   : > { %v2187_v47 = vmul.f32 %v9330_v30, %v9328_v44  ;;  %v7656_v44 = vld [vmem:[%s10930_s11 + $0xa0] sm:$0xff]  ;;  %v7658_v30 = vld [vmem:[%s10930_s11 + $0xb0] sm:$0xff] }
 0xc9e   : > { %v9076_v46 = vpack.c.bf16 %v7657_v45, %v7656_v44 }
 0xc9f   : > { %8397 = vmatmul.mubr.msk.f32.vlgmr.msra.gmra.mrb[24].mxu0 %vm942_vm3, %v2187_v47  ;;  %v7659_v47 = vld [vmem:[%s10930_s11 + $0xb8] sm:$0xff] }
 0xca0   : > { %8418 = vmatprep.mubr.msk.f32.mxu0 %vm9452_vm0, %v9453_v4 }
 0xd72   : > { %v2257_v48 = vpop.f32.mrb[24].mxu0 }
 0xd73   : > { %v2261_v49 = vadd.f32 %v2257_v48, %v1875_v35  ;;  %v8398_v50 = vpop.f32.mrb[25].mxu0  ;;  %v7646_v35 = vld [vmem:[%s10928_s9 + $0xa0] sm:$0xff]  ;;  %v9079_v48 = vpack.c.bf16 %v7659_v47, %v7658_v30 }
 0xd74   : > { %v9064_v37 = vpack.c.bf16 %v7647_v36, %v7646_v35  ;;  %v7665_v50 = vld [vmem:[%s10928_s9 + $0xc8] sm:$0xff]  ;;  %v7651_v36 = vld [vmem:[%s10929_s10 + $0xa0] sm:$0xff] }
 0xd75   : > { %v2262_v51 = vadd.f32 %v2261_v49, %v9657_v27  ;;  %v7628_v27 = vld [vmem:[%s10928_s9 + $0x80] sm:$0xff] }
 0xd76   : > { %v9046_v61 = vpack.c.bf16 %v7629_v60, %v7628_v27  ;;  %v7664_v49 = vld [vmem:[%s10928_s9 + $0xc0] sm:$0xff]  ;;  %v9097_v27 = vpack.c.bf16 %v7677_v58, %v7676_v34  ;;  %v7683_v60 = vld [vmem:[%s10928_s9 + $0xe8] sm:$0xff] }
 0xd77   : > { %v2263_v52 = vsel %vm646_vm2, %v2262_v51, 0.0  ;;  %v7670_v34 = vld [vmem:[%s10929_s10 + $0xc8] sm:$0xff] }
 0xd78   : > { %2264 = vadd.xlane.f32.xlu0 %v2263_v52  ;;  %9047 = vmatpush3.bf16.msra.mxu0 %v9046_v61  ;;  %v7666_v52 = vld [vmem:[%s10928_s9 + $0xd0] sm:$0xff]  ;;  %v9100_v61 = vpack.c.bf16 %v7683_v60, %v7682_v59 }
 0xd79   : > { %9048 = vmatprep.subr.bf16.mxu0 %v9451_v2  ;;  %v7671_v60 = vld [vmem:[%s10929_s10 + $0xd0] sm:$0xff] }
 0xd7c   : > { %9050 = vmatpush3.bf16.msra.mxu0 %v9049_v5  ;;  %v9112_v5 = vpack.c.bf16 %v7693_v3, %v7692_v1 }
 0xd7d   : > { %9057 = vmatprep.subr.bf16.mxu0 %v9451_v2 }
 0xe05   : > { %v2265_v53 = vpop.xlane.xlu0 %2264 }
 0xe06   : > { %v2267_v54 = vmul.f32 0.03125, %v2265_v53  ;;  %v7667_v53 = vld [vmem:[%s10928_s9 + $0xd8] sm:$0xff] }
 0xe08   : > { %v2268_v55 = vsub.f32 %v2262_v51, %v2267_v54  ;;  %v9082_v51 = vpack.c.bf16 %v7665_v50, %v7664_v49  ;;  %v9085_v54 = vpack.c.bf16 %v7667_v53, %v7666_v52 }
 0xe0a   : > { %v2269_v56 = vmul.f32 %v2268_v55, %v2268_v55 }
 0xe0c   : > { %v2270_v57 = vsel %vm646_vm2, %v2269_v56, 0.0  ;;  %v7675_v56 = vld [vmem:[%s10930_s11 + $0xc8] sm:$0xff] }
 0xe0d   : > { %2271 = vadd.xlane.f32.xlu1 %v2270_v57 }
 0xe9a   : > { %v2272_v6 = vpop.xlane.xlu1 %2271 }
 0xe9b   : > { %v2273_v7 = vmul.f32 0.03125, %v2272_v6  ;;  %v7694_v6 = vld [vmem:[%s10930_s11 + $0xf0] sm:$0xff] }
 0xe9d   : > { %v2274_v8 = vadd.f32 1e-05, %v2273_v7  ;;  %v7695_v7 = vld [vmem:[%s10930_s11 + $0xf8] sm:$0xff] }
 0xe9f   : > { %9331 = vrsqrt.f32 %v2274_v8  ;;  %v9115_v8 = vpack.c.bf16 %v7695_v7, %v7694_v6 }
 0xea9   : > { %v9332_v9 = vpop.eup %9331 }
 0xeaa   : > { %v2276_v12 = vmul.f32 %v9332_v9, %v2268_v55  ;;  %v7674_v55 = vld [vmem:[%s10930_s11 + $0xc0] sm:$0xff] }
 0xeab   : > { %v9094_v57 = vpack.c.bf16 %v7675_v56, %v7674_v55 }
 0xeac   : > { %v2284_v17 = vmul.f32 %v7619_v10, %v2276_v12 }
 0xeae   : > { %v9964_v21 = vadd.f32 %v7620_v16, %v2284_v17 }
 0xeb0   : > { %8408 = vmatmul.mubr.msk.f32.vlgmr.msra.gmra.mrb[18].mxu1 %vm646_vm2, %v9964_v21  ;;  %8419 = vmatmul.mubr.msk.f32.vlgmr.msra.gmra.mrb[26].mxu0 %vm646_vm2, %v9964_v21 }
 0xeb1   : > { %9053 = vmatpush3.bf16.msra.mxu1 %v9052_v18  ;;  %9059 = vmatpush3.bf16.msra.mxu0 %v9058_v19 }
 0xeb2   : > { %9054 = vmatprep.subr.bf16.mxu1 %v9451_v2  ;;  %9060 = vmatprep.subr.bf16.mxu0 %v9451_v2 }
 0xeb3   : > { %8429 = vmatprep.mubr.msk.f32.mxu1 %vm9452_vm0, %v9453_v4  ;;  %8440 = vmatprep.mubr.msk.f32.mxu0 %vm9452_vm0, %v9453_v4 }
 0xeb5   : > { %9056 = vmatpush3.bf16.msra.mxu1 %v9055_v25  ;;  %9062 = vmatpush3.bf16.msra.mxu0 %v9061_v26 }
 0xeb6   : > { %8443 = vmatprep.subr.mxu1 %v9453_v4  ;;  %8448 = vmatprep.subr.mxu0 %v9453_v4 }
 0xeb8   : > { %8430 = vmatmul.mubr.msk.f32.vlgmr.msra.gmra.mrb[20].mxu1 %vm646_vm2, %v9964_v21  ;;  %8441 = vmatmul.mubr.msk.f32.vlgmr.msra.gmra.mrb[28].mxu0 %vm646_vm2, %v9964_v21 }
 0xeb9   : > { %8445 = vmatprep.mubr.msk.f32.mxu1 %vm9452_vm0, %v9453_v4  ;;  %8450 = vmatprep.mubr.msk.f32.mxu0 %vm9452_vm0, %v9453_v4 }
 0xf83   : > { %v9995_v29 = vpop.f32.mrb[18].mxu1  ;;  %v2450_v31 = vpop.f32.mrb[26].mxu0 }
 0xf84   : > { %v8409_v32 = vpop.f32.mrb[19].mxu1  ;;  %v8420_v33 = vpop.f32.mrb[27].mxu0  ;;  %8444 = vmatpush3.xpose.msk.msra.mxu1 %vm942_vm3, %v2450_v31 }
 0xf85   : > { %9063 = vmatprep.subr.bf16.mxu1 %v9451_v2 }
 0xf8b   : > { %v2525_v40 = vpop.f32.mrb[20].mxu1  ;;  %v2600_v28 = vpop.f32.mrb[28].mxu0 }
 0xf8c   : > { %v8431_v41 = vpop.f32.mrb[21].mxu1  ;;  %v8442_v42 = vpop.f32.mrb[29].mxu0  ;;  %8446 = vmatmul.mubr.msk.f32.vlgmr.msra.gmra.mrb[22].mxu1 %vm942_vm3, %v2525_v40  ;;  %8449 = vmatpush3.msra.mxu0 %v2600_v28  ;;  %v7653_v28 = vld [vmem:[%s10929_s10 + $0xb0] sm:$0xff] }
 0xf8d   : > { %9065 = vmatpush3.bf16.msra.mxu1 %v9064_v37  ;;  %8461 = vmatprep.mubr.msk.f32.mxu1 %vm9452_vm0, %v9453_v4  ;;  %v7652_v37 = vld [vmem:[%s10929_s10 + $0xa8] sm:$0xff]  ;;  %v7654_v41 = vld [vmem:[%s10929_s10 + $0xb8] sm:$0xff] }
 0xf8e   : > { %9066 = vmatprep.subr.bf16.mxu1 %v9451_v2  ;;  %9069 = vmatprep.subr.bf16.mxu0 %v9451_v2  ;;  %v9070_v39 = vpack.c.bf16 %v7652_v37, %v7651_v36  ;;  %v9073_v42 = vpack.c.bf16 %v7654_v41, %v7653_v28 }
 0xf91   : > { %9068 = vmatpush3.bf16.msra.mxu1 %v9067_v43  ;;  %v7626_v43 = vld [vmem:[%s10932_s13 + $0x1] ss:$0 sm:$0xff] }
 0xf92   : > { %9075 = vmatprep.subr.bf16.mxu1 %v9451_v2  ;;  %v2376_v44 = vadd.f32 %v7626_v43, %v9995_v29  ;;  %v7708_v43 = vld [vmem:[%s10931_s12 + $0x40] sm:$0xff] }
 0xf94   : > { %8462 = vmatmul.mubr.msk.f32.vlgmr.msra.gmra.mrb[24].mxu1 %vm646_vm2, %v9964_v21 }
 0xf95   : > { %9077 = vmatpush3.bf16.msra.mxu1 %v9076_v46  ;;  %8483 = vmatprep.mubr.msk.f32.mxu1 %vm9452_vm0, %v9453_v4 }
 0xf96   : > { %9078 = vmatprep.subr.bf16.mxu1 %v9451_v2 }
 0xf99   : > { %9080 = vmatpush3.bf16.msra.mxu1 %v9079_v48 }
 0xf9a   : > { %9081 = vmatprep.subr.bf16.mxu1 %v9451_v2 }
 0xf9c   : > { %8484 = vmatmul.mubr.msk.f32.vlgmr.msra.gmra.mrb[26].mxu1 %vm646_vm2, %v9964_v21 }
 0xf9d   : > { %9083 = vmatpush3.bf16.msra.mxu1 %v9082_v51  ;;  %8504 = vmatprep.mubr.msk.f32.mxu1 %vm9452_vm0, %v9453_v4 }
 0xf9e   : > { %9084 = vmatprep.subr.bf16.mxu1 %v9451_v2 }
 0xfa1   : > { %9086 = vmatpush3.bf16.msra.mxu1 %v9085_v54 }
 0xfa2   : > { %9093 = vmatprep.subr.bf16.mxu1 %v9451_v2 }
 0xfa4   : > { %8505 = vmatmul.mubr.msk.f32.vlgmr.msra.gmra.mrb[28].mxu1 %vm646_vm2, %v9964_v21 }
 0xfa5   : > { %9095 = vmatpush3.bf16.msra.mxu1 %v9094_v57  ;;  %8526 = vmatprep.mubr.msk.f32.mxu1 %vm9452_vm0, %v9453_v4  ;;  %v7669_v57 = vld [vmem:[%s10929_s10 + $0xc0] sm:$0xff] }
 0xfa6   : > { %9096 = vmatprep.subr.bf16.mxu1 %v9451_v2 }
 0xfa9   : > { %9098 = vmatpush3.bf16.msra.mxu1 %v9097_v27  ;;  %v9088_v27 = vpack.c.bf16 %v7670_v34, %v7669_v57 }
 0xfaa   : > { %9099 = vmatprep.subr.bf16.mxu1 %v9451_v2 }
 0xfac   : > { %8527 = vmatmul.mubr.msk.f32.vlgmr.msra.gmra.mrb[30].mxu1 %vm646_vm2, %v9964_v21 }
 0xfad   : > { %9101 = vmatpush3.bf16.msra.mxu1 %v9100_v61  ;;  %8547 = vmatprep.mubr.msk.f32.mxu1 %vm9452_vm0, %v9453_v4  ;;  %v7672_v61 = vld [vmem:[%s10929_s10 + $0xd8] sm:$0xff] }
 0xfae   : > { %9102 = vmatprep.subr.bf16.mxu1 %v9451_v2  ;;  %v9091_v62 = vpack.c.bf16 %v7672_v61, %v7671_v60  ;;  %v7716_v60 = vld [vmem:[%s10928_s9 + $0x108] sm:$0xff] }
 0xfb1   : > { %9104 = vmatpush3.bf16.msra.mxu1 %v9103_v0 }
 0xfb2   : > { %9111 = vmatprep.subr.bf16.mxu1 %v9451_v2 }
 0xfb4   : > { %8548 = vmatmul.mubr.msk.f32.vlgmr.msra.gmra.mrb[32].mxu1 %vm646_vm2, %v9964_v21 }
 0xfb5   : > { %9113 = vmatpush3.bf16.msra.mxu1 %v9112_v5  ;;  %8569 = vmatprep.mubr.msk.f32.mxu1 %vm9452_vm0, %v9453_v4 }
 0xfb6   : > { %9114 = vmatprep.subr.bf16.mxu1 %v9451_v2 }
 0xfb9   : > { %9116 = vmatpush3.bf16.msra.mxu1 %v9115_v8 }
 0xfba   : > { %8582 = vmatprep.subr.mxu1 %v9453_v4 }
 0xfbc   : > { %8570 = vmatmul.mubr.msk.f32.vlgmr.msra.gmra.mrb[34].mxu1 %vm646_vm2, %v9964_v21 }
 0xfbd   : > { %8584 = vmatprep.mubr.msk.f32.mxu1 %vm9452_vm0, %v9453_v4 }
0x105f   : > { %v2676_v9 = vpop.f32.mrb[22].mxu1 }
0x1060   : > { %v8447_v10 = vpop.f32.mrb[23].mxu1  ;;  %v2680_v11 = vsel %vm942_vm3, %v2676_v9, -inf }
0x1061   : > { %2681 = vmax.xlane.f32.xlu0 %v2680_v11 }
0x1067   : > { %v2836_v12 = vpop.f32.mrb[24].mxu1 }
0x1068   : > { %v8463_v13 = vpop.f32.mrb[25].mxu1 }
0x106f   : > { %v2986_v14 = vpop.f32.mrb[26].mxu1 }
0x1070   : > { %v8485_v15 = vpop.f32.mrb[27].mxu1 }
0x1071   : > { %v7687_v15 = vld [vmem:[%s10929_s10 + $0xe0] sm:$0xff] }
0x1077   : > { %v10112_v16 = vpop.f32.mrb[28].mxu1 }
0x1078   : > { %v8506_v17 = vpop.f32.mrb[29].mxu1 }
0x107f   : > { %v10114_v18 = vpop.f32.mrb[30].mxu1 }
0x1080   : > { %v8528_v19 = vpop.f32.mrb[31].mxu1 }
0x1087   : > { %v10116_v20 = vpop.f32.mrb[32].mxu1 }
0x1088   : > { %v8549_v22 = vpop.f32.mrb[33].mxu1 }
0x1089   : > { %v7689_v22 = vld [vmem:[%s10929_s10 + $0xf0] sm:$0xff] }
0x108f   : > { %v10118_v23 = vpop.f32.mrb[34].mxu1 }
0x1090   : > { %v8571_v24 = vpop.f32.mrb[35].mxu1 }
0x1091   : > { %v7690_v24 = vld [vmem:[%s10929_s10 + $0xf8] sm:$0xff] }
0x10ee   : > { %v2682_v25 = vpop.xlane.xlu0 %2681 }
0x10ef   : > { %v2683_v26 = vsub.f32 %v2676_v9, %v2682_v25  ;;  %v9109_v25 = vpack.c.bf16 %v7690_v24, %v7689_v22  ;;  %v7725_v24 = vld [vmem:[%s10930_s11 + $0x100] sm:$0xff] }
0x10f1   : > { %v2684_v31 = vmul.f32 1.442695, %v2683_v26 }
0x10f3   : > { %9333 = vpow2.f32 %v2684_v31 }
0x10fd   : > { %v9334_v32 = vpop.eup %9333 }
0x10fe   : > { %v2686_v33 = vsel %vm942_vm3, %v9334_v32, 0.0 }
0x10ff   : > { %2687 = vadd.xlane.f32.xlu1 %v2686_v33 }
0x118c   : > { %v2688_v35 = vpop.xlane.xlu1 %2687 }
0x118d   : > { %9335 = vrcp.f32 %v2688_v35 }
0x1197   : > { %v9336_v38 = vpop.eup %9335 }
0x1198   : > { %v2690_v40 = vmul.f32 %v9336_v38, %v9334_v32 }
0x119a   : > { %8451 = vmatmul.mubr.msk.f32.vlgmr.msra.gmra.mrb[30].mxu0 %vm942_vm3, %v2690_v40 }
0x119b   : > { %9071 = vmatpush3.bf16.msra.mxu0 %v9070_v39  ;;  %8472 = vmatprep.mubr.msk.f32.mxu0 %vm9452_vm0, %v9453_v4 }
0x119c   : > { %9072 = vmatprep.subr.bf16.mxu0 %v9451_v2 }
0x119f   : > { %9074 = vmatpush3.bf16.msra.mxu0 %v9073_v42  ;;  %v3955_v42 = vld [vmem:[%s550_s20] sm:$0xff] }
0x11a0   : > { %8486 = vmatprep.subr.mxu0 %v9453_v4 }
0x11a2   : > { %8473 = vmatmul.mubr.msk.f32.vlgmr.msra.gmra.mrb[32].mxu0 %vm646_vm2, %v9964_v21 }
0x11a3   : > { %8488 = vmatprep.mubr.msk.f32.mxu0 %vm9452_vm0, %v9453_v4 }
0x11a8   : > { %8487 = vmatpush3.xpose.msk.msra.mxu0 %vm942_vm3, %v2836_v12 }
0x11a9   : > { %8491 = vmatprep.subr.mxu0 %v9453_v4 }
0x126d   : > { %v2760_v45 = vpop.f32.mrb[30].mxu0 }
0x126e   : > { %v2764_v46 = vadd.f32 %v2760_v45, %v2376_v44  ;;  %v8452_v30 = vpop.f32.mrb[31].mxu0  ;;  %v7709_v44 = vld [vmem:[%s10931_s12 + $0x48] sm:$0xff]  ;;  %v7710_v45 = vld [vmem:[%s10931_s12 + $0x50] sm:$0xff] }
0x126f   : > { %v7711_v30 = vld [vmem:[%s10931_s12 + $0x58] sm:$0xff] }
0x1275   : > { %v2911_v47 = vpop.f32.mrb[32].mxu0 }
0x1276   : > { %v8474_v48 = vpop.f32.mrb[33].mxu0  ;;  %8489 = vmatmul.mubr.msk.f32.vlgmr.msra.gmra.mrb[34].mxu0 %vm942_vm3, %v2911_v47  ;;  %v9121_v47 = vpack.c.bf16 %v7711_v30, %v7710_v45 }
0x1277   : > { %8492 = vmatpush3.msra.mxu0 %v2986_v14  ;;  %8493 = vmatprep.mubr.msk.f32.mxu0 %vm9452_vm0, %v9453_v4 }
0x1278   : > { %9087 = vmatprep.subr.bf16.mxu0 %v9451_v2 }
0x1349   : > { %v3062_v49 = vpop.f32.mrb[34].mxu0 }
0x134a   : > { %v8490_v50 = vpop.f32.mrb[35].mxu0  ;;  %v3066_v51 = vsel %vm942_vm3, %v3062_v49, -inf }
0x134b   : > { %3067 = vmax.xlane.f32.xlu0 %v3066_v51  ;;  %v4038_v51 = vld [vmem:[%s10924_s5] sm:$0xff] }
0x13d8   : > { %v3068_v52 = vpop.xlane.xlu0 %3067 }
0x13d9   : > { %v3069_v29 = vsub.f32 %v3062_v49, %v3068_v52  ;;  %v4037_v52 = vld [vmem:[%s546_s3] sm:$0xff]  ;;  %s10876_s3 = scalar_lea.hbm %s10935_s16, %s7875_s17 }
0x13db   : > { %v3070_v53 = vmul.f32 1.442695, %v3069_v29  ;;  %v7720_v29 = vld [vmem:[%s10929_s10 + $0x100] sm:$0xff] }
0x13dd   : > { %9337 = vpow2.f32 %v3070_v53  ;;  %v7721_v53 = vld [vmem:[%s10929_s10 + $0x108] sm:$0xff] }
0x13e7   : > { %v9338_v54 = vpop.eup %9337 }
0x13e8   : > { %v3072_v55 = vsel %vm942_vm3, %v9338_v54, 0.0 }
0x13e9   : > { %3073 = vadd.xlane.f32.xlu1 %v3072_v55 }
0x1476   : > { %v3074_v56 = vpop.xlane.xlu1 %3073 }
0x1477   : > { %9339 = vrcp.f32 %v3074_v56  ;;  %v9130_v56 = vpack.c.bf16 %v7721_v53, %v7720_v29  ;;  %v7703_v29 = vld [vmem:[%s10934_s15 + $0x1] ss:$0 sm:$0xff] }
0x1481   : > { %v9340_v58 = vpop.eup %9339 }
0x1482   : > { %v3076_v59 = vmul.f32 %v9340_v58, %v9338_v54  ;;  %v7704_v54 = vld [vmem:[%s10927_s8] ss:$0 sm:$0xff]  ;;  %v7722_v58 = vld [vmem:[%s10929_s10 + $0x110] sm:$0xff] }
0x1484   : > { %8494 = vmatmul.mubr.msk.f32.vlgmr.msra.gmra.mrb[36].mxu0 %vm942_vm3, %v3076_v59  ;;  %v7715_v59 = vld [vmem:[%s10928_s9 + $0x100] sm:$0xff] }
0x1485   : > { %9089 = vmatpush3.bf16.msra.mxu0 %v9088_v27  ;;  %8515 = vmatprep.mubr.msk.f32.mxu0 %vm9452_vm0, %v9453_v4  ;;  %v7723_v27 = vld [vmem:[%s10929_s10 + $0x118] sm:$0xff] }
0x1486   : > { %9090 = vmatprep.subr.bf16.mxu0 %v9451_v2  ;;  %v9133_v61 = vpack.c.bf16 %v7723_v27, %v7722_v58  ;;  %v7761_v27 = vld [vmem:[%s10930_s11 + $0x140] sm:$0xff] }
0x1489   : > { %9092 = vmatpush3.bf16.msra.mxu0 %v9091_v62  ;;  %v9124_v62 = vpack.c.bf16 %v7716_v60, %v7715_v59  ;;  %v7762_v59 = vld [vmem:[%s10930_s11 + $0x148] sm:$0xff] }
0x148a   : > { %8529 = vmatprep.subr.mxu0 %v9453_v4  ;;  %v9172_v60 = vpack.c.bf16 %v7762_v59, %v7761_v27 }
0x148c   : > { %8516 = vmatmul.mubr.msk.f32.vlgmr.msra.gmra.mrb[38].mxu0 %vm646_vm2, %v9964_v21 }
0x148d   : > { %8531 = vmatprep.mubr.msk.f32.mxu0 %vm9452_vm0, %v9453_v4 }
0x1492   : > { %8530 = vmatpush3.xpose.msk.msra.mxu0 %vm942_vm3, %v10112_v16  ;;  %v7688_v16 = vld [vmem:[%s10929_s10 + $0xe8] sm:$0xff] }
0x1493   : > { %8534 = vmatprep.subr.mxu0 %v9453_v4 }
0x1557   : > { %v3146_v63 = vpop.f32.mrb[36].mxu0 }
0x1558   : > { %v3150_v0 = vadd.f32 %v3146_v63, %v2764_v46  ;;  %v8495_v1 = vpop.f32.mrb[37].mxu0  ;;  %v9118_v46 = vpack.c.bf16 %v7709_v44, %v7708_v43  ;;  %v7717_v63 = vld [vmem:[%s10928_s9 + $0x110] sm:$0xff]  ;;  %v7746_v44 = vld [vmem:[%s10930_s11 + $0x138] sm:$0xff] }
0x1559   : > { %v7745_v43 = vld [vmem:[%s10930_s11 + $0x130] sm:$0xff] }
0x155a   : > { %v9157_v45 = vpack.c.bf16 %v7746_v44, %v7745_v43  ;;  %v7738_v43 = vld [vmem:[%s10929_s10 + $0x120] sm:$0xff]  ;;  %v7739_v44 = vld [vmem:[%s10929_s10 + $0x128] sm:$0xff] }
0x155f   : > { %v3297_v3 = vpop.f32.mrb[38].mxu0 }
0x1560   : > { %v8517_v5 = vpop.f32.mrb[39].mxu0  ;;  %8532 = vmatmul.mubr.msk.f32.vlgmr.msra.gmra.mrb[40].mxu0 %vm942_vm3, %v3297_v3 }
0x1561   : > { %8535 = vmatpush3.msra.mxu0 %v10114_v18  ;;  %8536 = vmatprep.mubr.msk.f32.mxu0 %vm9452_vm0, %v9453_v4  ;;  %v9106_v18 = vpack.c.bf16 %v7688_v16, %v7687_v15 }
0x1562   : > { %9105 = vmatprep.subr.bf16.mxu0 %v9451_v2 }
0x1633   : > { %v3448_v6 = vpop.f32.mrb[40].mxu0 }
0x1634   : > { %v8533_v7 = vpop.f32.mrb[41].mxu0  ;;  %v3452_v8 = vsel %vm942_vm3, %v3448_v6, -inf }
0x1635   : > { %3453 = vmax.xlane.f32.xlu0 %v3452_v8  ;;  %v7706_v7 = vld [vmem:[%s10925_s6] ss:$0 sm:$0xff] }
0x16c2   : > { %v3454_v9 = vpop.xlane.xlu0 %3453 }
0x16c3   : > { %v3455_v10 = vsub.f32 %v3448_v6, %v3454_v9 }
0x16c5   : > { %v3456_v11 = vmul.f32 1.442695, %v3455_v10 }
0x16c7   : > { %9341 = vpow2.f32 %v3456_v11 }
0x16d1   : > { %v9342_v12 = vpop.eup %9341 }
0x16d2   : > { %v3458_v13 = vsel %vm942_vm3, %v9342_v12, 0.0 }
0x16d3   : > { %3459 = vadd.xlane.f32.xlu1 %v3458_v13 }
0x1760   : > { %v3460_v14 = vpop.xlane.xlu1 %3459 }
0x1761   : > { %9343 = vrcp.f32 %v3460_v14 }
0x176b   : > { %v9344_v17 = vpop.eup %9343 }
0x176c   : > { %v3462_v19 = vmul.f32 %v9344_v17, %v9342_v12 }
0x176e   : > { %8537 = vmatmul.mubr.msk.f32.vlgmr.msra.gmra.mrb[42].mxu0 %vm942_vm3, %v3462_v19 }
0x176f   : > { %9107 = vmatpush3.bf16.msra.mxu0 %v9106_v18  ;;  %8558 = vmatprep.mubr.msk.f32.mxu0 %vm9452_vm0, %v9453_v4 }
0x1770   : > { %9108 = vmatprep.subr.bf16.mxu0 %v9451_v2 }
0x1773   : > { %9110 = vmatpush3.bf16.msra.mxu0 %v9109_v25  ;;  %v7726_v25 = vld [vmem:[%s10930_s11 + $0x108] sm:$0xff] }
0x1774   : > { %8572 = vmatprep.subr.mxu0 %v9453_v4 }
0x1776   : > { %8559 = vmatmul.mubr.msk.f32.vlgmr.msra.gmra.mrb[44].mxu0 %vm646_vm2, %v9964_v21 }
0x1777   : > { %8574 = vmatprep.mubr.msk.f32.mxu0 %vm9452_vm0, %v9453_v4 }
0x177c   : > { %8573 = vmatpush3.xpose.msk.msra.mxu0 %vm942_vm3, %v10116_v20 }
0x177d   : > { %8577 = vmatprep.subr.mxu0 %v9453_v4 }
0x1841   : > { %v3532_v26 = vpop.f32.mrb[42].mxu0 }
0x1842   : > { %v10209_v31 = vadd.f32 %v3532_v26, %v3150_v0  ;;  %v8538_v32 = vpop.f32.mrb[43].mxu0  ;;  %v7718_v0 = vld [vmem:[%s10928_s9 + $0x118] sm:$0xff]  ;;  %v9136_v26 = vpack.c.bf16 %v7726_v25, %v7725_v24 }
0x1843   : > { %v9127_v1 = vpack.c.bf16 %v7718_v0, %v7717_v63  ;;  %v7728_v32 = vld [vmem:[%s10930_s11 + $0x118] sm:$0xff]  ;;  %v7769_v0 = vld [vmem:[%s10928_s9 + $0x160] sm:$0xff] }
0x1849   : > { %v3683_v33 = vpop.f32.mrb[44].mxu0 }
0x184a   : > { %v8560_v35 = vpop.f32.mrb[45].mxu0  ;;  %8575 = vmatmul.mubr.msk.f32.vlgmr.msra.gmra.mrb[46].mxu0 %vm942_vm3, %v3683_v33 }
0x184b   : > { %8578 = vmatpush3.msra.mxu0 %v10118_v23  ;;  %8579 = vmatprep.mubr.msk.f32.mxu0 %vm9452_vm0, %v9453_v4  ;;  %v3956_v23 = vld [vmem:[%s10926_s7] sm:$0xff] }
0x184c   : > { %8587 = vmatprep.subr.mxu0 %v9453_v4  ;;  %8583 = vmatpush3.msra.mxu1 %v3956_v23  ;;  %v7733_v35 = vld [vmem:[%s10928_s9 + $0x120] sm:$0xff]  ;;  %v7744_v23 = vld [vmem:[%s10930_s11 + $0x128] sm:$0xff] }
0x184d   : > { %8585 = vmatmul.mubr.msk.f32.vlgmr.msra.gmra.mrb[36].mxu1 %vm942_vm3, %v3955_v42  ;;  %9117 = vmatprep.subr.bf16.mxu1 %v9451_v2 }
0x184e   : > { %8600 = vmatprep.mubr.msk.f32.mxu1 %vm9452_vm0, %v9453_v4  ;;  %9119 = vmatpush3.bf16.msra.mxu1 %v9118_v46 }
0x184f   : > { %9120 = vmatprep.subr.bf16.mxu1 %v9451_v2 }
0x1852   : > { %9122 = vmatpush3.bf16.msra.mxu1 %v9121_v47 }
0x1853   : > { %9129 = vmatprep.subr.bf16.mxu1 %v9451_v2 }
0x191d   : > { %v3834_v36 = vpop.f32.mrb[46].mxu0 }
0x191e   : > { %v8576_v20 = vpop.f32.mrb[47].mxu0  ;;  %v3838_v37 = vsel %vm942_vm3, %v3834_v36, -inf }
0x191f   : > { %3839 = vmax.xlane.f32.xlu0 %v3838_v37 }
0x1920   : > { %v4033_v55 = vpop.f32.mrb[36].mxu1 }
0x1921   : > { %v10266_v57 = vadd.f32 %v7704_v54, %v4033_v55  ;;  %v8586_v34 = vpop.f32.mrb[37].mxu1 }
0x1922   : > { %v7754_v34 = vld [vmem:[%s10928_s9 + $0x158] sm:$0xff] }
0x1923   : > { %8601 = vmatmul.mubr.msk.f32.vlgmr.msra.gmra.mrb[38].mxu1 %vm646_vm2, %v10266_v57 }
0x1924   : > { %9131 = vmatpush3.bf16.msra.mxu1 %v9130_v56  ;;  %8622 = vmatprep.mubr.msk.f32.mxu1 %vm9452_vm0, %v9453_v4  ;;  %v7753_v56 = vld [vmem:[%s10928_s9 + $0x150] sm:$0xff] }
0x1925   : > { %9132 = vmatprep.subr.bf16.mxu1 %v9451_v2  ;;  %v9163_v58 = vpack.c.bf16 %v7754_v34, %v7753_v56 }
0x1928   : > { %9134 = vmatpush3.bf16.msra.mxu1 %v9133_v61  ;;  %v7763_v61 = vld [vmem:[%s10930_s11 + $0x150] sm:$0xff] }
0x1929   : > { %8636 = vmatprep.subr.mxu1 %v9453_v4 }
0x192b   : > { %8623 = vmatmul.mubr.msk.f32.vlgmr.msra.gmra.mrb[40].mxu1 %vm646_vm2, %v10266_v57 }
0x192c   : > { %8638 = vmatprep.mubr.msk.f32.mxu1 %vm9452_vm0, %v9453_v4 }
0x19ac   : > { %v3840_v38 = vpop.xlane.xlu0 %3839 }
0x19ad   : > { %v3841_v39 = vsub.f32 %v3834_v36, %v3840_v38  ;;  %v7734_v36 = vld [vmem:[%s10928_s9 + $0x128] sm:$0xff] }
0x19ae   : > { %v9142_v38 = vpack.c.bf16 %v7734_v36, %v7733_v35 }
0x19af   : > { %v3842_v40 = vmul.f32 1.442695, %v3841_v39  ;;  %v7735_v39 = vld [vmem:[%s10928_s9 + $0x130] sm:$0xff] }
0x19b1   : > { %9345 = vpow2.f32 %v3842_v40  ;;  %v7736_v40 = vld [vmem:[%s10928_s9 + $0x138] sm:$0xff] }
0x19bb   : > { %v9346_v28 = vpop.eup %9345 }
0x19bc   : > { %v3844_v41 = vsel %vm942_vm3, %v9346_v28, 0.0 }
0x19bd   : > { %3845 = vadd.xlane.f32.xlu1 %v3844_v41  ;;  %v7743_v41 = vld [vmem:[%s10930_s11 + $0x120] sm:$0xff] }
0x19be   : > { %v9154_v42 = vpack.c.bf16 %v7744_v23, %v7743_v41 }
0x19f6   : > { %v10310_v13 = vpop.f32.mrb[38].mxu1 }
0x19f7   : > { %v8602_v14 = vpop.f32.mrb[39].mxu1 }
0x19f8   : > { %v7782_v14 = vld [vmem:[%s10930_s11 + $0x178] sm:$0xff] }
0x19fe   : > { %v4354_v15 = vpop.f32.mrb[40].mxu1 }
0x19ff   : > { %v8624_v16 = vpop.f32.mrb[41].mxu1 }
0x1a4a   : > { %v3846_v48 = vpop.xlane.xlu1 %3845 }
0x1a4b   : > { %9347 = vrcp.f32 %v3846_v48 }
0x1a55   : > { %v9348_v49 = vpop.eup %9347 }
0x1a56   : > { %v3848_v50 = vmul.f32 %v9348_v49, %v9346_v28  ;;  %v9145_v28 = vpack.c.bf16 %v7736_v40, %v7735_v39  ;;  %v7701_v49 = vld [vmem:[%s10933_s14 + $0x1] ss:$0 sm:$0xff] }
0x1a58   : > { %8580 = vmatmul.mubr.msk.f32.vlgmr.msra.gmra.mrb[48].mxu0 %vm942_vm3, %v3848_v50 }
0x1a59   : > { %8588 = vmatpush3.msra.mxu0 %v4038_v51  ;;  %8589 = vmatprep.mubr.msk.f32.mxu0 %vm9452_vm0, %v9453_v4  ;;  %v7751_v51 = vld [vmem:[%s10928_s9 + $0x140] sm:$0xff] }
0x1a5a   : > { %9123 = vmatprep.subr.bf16.mxu0 %v9451_v2 }
0x1a5c   : > { %8590 = vmatmul.mubr.msk.f32.vlgmr.msra.gmra.mrb[50].mxu0 %vm942_vm3, %v4037_v52  ;;  %v7752_v52 = vld [vmem:[%s10928_s9 + $0x148] sm:$0xff] }
0x1a5d   : > { %8611 = vmatprep.mubr.msk.f32.mxu0 %vm9452_vm0, %v9453_v4  ;;  %9125 = vmatpush3.bf16.msra.mxu0 %v9124_v62  ;;  %v9160_v54 = vpack.c.bf16 %v7752_v52, %v7751_v51  ;;  %v7764_v62 = vld [vmem:[%s10930_s11 + $0x158] sm:$0xff] }
0x1a5e   : > { %9126 = vmatprep.subr.bf16.mxu0 %v9451_v2  ;;  %v9175_v63 = vpack.c.bf16 %v7764_v62, %v7763_v61 }
0x1a61   : > { %9128 = vmatpush3.bf16.msra.mxu0 %v9127_v1  ;;  %v7770_v1 = vld [vmem:[%s10928_s9 + $0x168] sm:$0xff] }
0x1a62   : > { %9135 = vmatprep.subr.bf16.mxu0 %v9451_v2 }
0x1b2b   : > { %v3918_v3 = vpop.f32.mrb[48].mxu0 }
0x1b2c   : > { %v3922_v5 = vadd.f32 %v3918_v3, %v10209_v31  ;;  %v8581_v6 = vpop.f32.mrb[49].mxu0  ;;  %v7727_v31 = vld [vmem:[%s10930_s11 + $0x110] sm:$0xff]  ;;  %v9178_v3 = vpack.c.bf16 %v7770_v1, %v7769_v0  ;;  %v7756_v0 = vld [vmem:[%s10929_s10 + $0x140] sm:$0xff]  ;;  %v7757_v1 = vld [vmem:[%s10929_s10 + $0x148] sm:$0xff] }
0x1b2d   : > { %v9139_v33 = vpack.c.bf16 %v7728_v32, %v7727_v31  ;;  %v7772_v6 = vld [vmem:[%s10928_s9 + $0x178] sm:$0xff] }
0x1b2e   : > { %v3923_v8 = vadd.f32 %v3922_v5, %v9964_v21  ;;  %v7771_v5 = vld [vmem:[%s10928_s9 + $0x170] sm:$0xff] }
0x1b2f   : > { %v4115_v9 = vpop.f32.mrb[50].mxu0 }
0x1b30   : > { %v10303_v10 = vadd.f32 %v7706_v7, %v4115_v9  ;;  %v8591_v11 = vpop.f32.mrb[51].mxu0  ;;  %v3924_v12 = vsel %vm646_vm2, %v3923_v8, 0.0  ;;  %v9181_v7 = vpack.c.bf16 %v7772_v6, %v7771_v5  ;;  %v7780_v9 = vld [vmem:[%s10930_s11 + $0x168] sm:$0xff]  ;;  %v9166_v5 = vpack.c.bf16 %v7757_v1, %v7756_v0 }
0x1b31   : > { %3925 = vadd.xlane.f32.xlu0 %v3924_v12  ;;  %v7781_v12 = vld [vmem:[%s10930_s11 + $0x170] sm:$0xff] }
0x1b32   : > { %8612 = vmatmul.mubr.msk.f32.vlgmr.msra.gmra.mrb[52].mxu0 %vm646_vm2, %v10303_v10 }
0x1b33   : > { %8633 = vmatprep.mubr.msk.f32.mxu0 %vm9452_vm0, %v9453_v4  ;;  %9137 = vmatpush3.bf16.msra.mxu0 %v9136_v26 }
0x1b34   : > { %9138 = vmatprep.subr.bf16.mxu0 %v9451_v2 }
0x1b37   : > { %9140 = vmatpush3.bf16.msra.mxu0 %v9139_v33 }
0x1b38   : > { %8641 = vmatprep.subr.mxu0 %v9453_v4 }
0x1bbe   : > { %v3926_v17 = vpop.xlane.xlu0 %3925 }
0x1bbf   : > { %v3927_v21 = vmul.f32 0.03125, %v3926_v17 }
0x1bc1   : > { %v3928_v18 = vsub.f32 %v3923_v8, %v3927_v21  ;;  %v7779_v8 = vld [vmem:[%s10930_s11 + $0x160] sm:$0xff] }
0x1bc2   : > { %v9190_v11 = vpack.c.bf16 %v7780_v9, %v7779_v8  ;;  %v7759_v8 = vld [vmem:[%s10929_s10 + $0x158] sm:$0xff] }
0x1bc3   : > { %v3929_v19 = vmul.f32 %v3928_v18, %v3928_v18 }
0x1bc5   : > { %v3930_v22 = vsel %vm646_vm2, %v3929_v19, 0.0 }
0x1bc6   : > { %3931 = vadd.xlane.f32.xlu1 %v3930_v22 }
0x1c05   : > { %v4279_v20 = vpop.f32.mrb[52].mxu0 }
0x1c06   : > { %v8613_v37 = vpop.f32.mrb[53].mxu0  ;;  %8637 = vmatpush3.xpose.msk.msra.mxu1 %vm942_vm3, %v4279_v20 }
0x1c07   : > { %9141 = vmatprep.subr.bf16.mxu1 %v9451_v2 }
0x1c09   : > { %8639 = vmatmul.mubr.msk.f32.vlgmr.msra.gmra.mrb[42].mxu1 %vm942_vm3, %v4354_v15  ;;  %v9193_v15 = vpack.c.bf16 %v7782_v14, %v7781_v12 }
0x1c0a   : > { %9143 = vmatpush3.bf16.msra.mxu1 %v9142_v38  ;;  %8654 = vmatprep.mubr.msk.f32.mxu1 %vm9452_vm0, %v9453_v4 }
0x1c0b   : > { %9144 = vmatprep.subr.bf16.mxu1 %v9451_v2 }
0x1c0e   : > { %9146 = vmatpush3.bf16.msra.mxu1 %v9145_v28 }
0x1c0f   : > { %9153 = vmatprep.subr.bf16.mxu1 %v9451_v2 }
0x1c11   : > { %8655 = vmatmul.mubr.msk.f32.vlgmr.msra.gmra.mrb[44].mxu1 %vm646_vm2, %v10303_v10 }
0x1c12   : > { %9155 = vmatpush3.bf16.msra.mxu1 %v9154_v42  ;;  %8676 = vmatprep.mubr.msk.f32.mxu1 %vm9452_vm0, %v9453_v4 }
0x1c13   : > { %9156 = vmatprep.subr.bf16.mxu1 %v9451_v2 }
0x1c16   : > { %9158 = vmatpush3.bf16.msra.mxu1 %v9157_v45 }
0x1c17   : > { %9159 = vmatprep.subr.bf16.mxu1 %v9451_v2 }
0x1c53   : > { %v3932_v46 = vpop.xlane.xlu1 %3931 }
0x1c54   : > { %v3933_v30 = vmul.f32 0.03125, %v3932_v46  ;;  %v9148_v46 = vpack.c.bf16 %v7739_v44, %v7738_v43 }
0x1c56   : > { %v3934_v47 = vadd.f32 1e-05, %v3933_v30 }
0x1c58   : > { %9349 = vrsqrt.f32 %v3934_v47  ;;  %v7740_v47 = vld [vmem:[%s10929_s10 + $0x130] sm:$0xff] }
0x1c62   : > { %v9350_v48 = vpop.eup %9349 }
0x1c63   : > { %v3936_v50 = vmul.f32 %v9350_v48, %v3928_v18  ;;  %v7741_v48 = vld [vmem:[%s10929_s10 + $0x138] sm:$0xff] }
0x1c65   : > { %v3945_v53 = vmul.f32 %v7701_v49, %v3936_v50  ;;  %v9151_v49 = vpack.c.bf16 %v7741_v48, %v7740_v47  ;;  %v7713_v50 = vld [vmem:[%s10932_s13 + $0x2] ss:$0 sm:$0xff] }
0x1c66   : > { %v4202_v51 = vadd.f32 %v7713_v50, %v10310_v13 }
0x1c67   : > { %v10376_v55 = vadd.f32 %v7703_v29, %v3945_v53 }
0x1c69   : > { %8634 = vmatmul.mubr.msk.f32.vlgmr.msra.gmra.mrb[54].mxu0 %vm646_vm2, %v10376_v55  ;;  %8677 = vmatmul.mubr.msk.f32.vlgmr.msra.gmra.mrb[46].mxu1 %vm646_vm2, %v10376_v55 }
0x1c6a   : > { %9161 = vmatpush3.bf16.msra.mxu1 %v9160_v54  ;;  %8697 = vmatprep.mubr.msk.f32.mxu1 %vm9452_vm0, %v9453_v4 }
0x1c6b   : > { %9162 = vmatprep.subr.bf16.mxu1 %v9451_v2  ;;  %8643 = vmatprep.mubr.msk.f32.mxu0 %vm9452_vm0, %v9453_v4 }
0x1c6e   : > { %9164 = vmatpush3.bf16.msra.mxu1 %v9163_v58 }
0x1c6f   : > { %9171 = vmatprep.subr.bf16.mxu1 %v9451_v2 }
0x1c71   : > { %8698 = vmatmul.mubr.msk.f32.vlgmr.msra.gmra.mrb[48].mxu1 %vm646_vm2, %v10303_v10 }
0x1c72   : > { %9173 = vmatpush3.bf16.msra.mxu1 %v9172_v60  ;;  %8719 = vmatprep.mubr.msk.f32.mxu1 %vm9452_vm0, %v9453_v4 }
0x1c73   : > { %9174 = vmatprep.subr.bf16.mxu1 %v9451_v2 }
0x1c76   : > { %9176 = vmatpush3.bf16.msra.mxu1 %v9175_v63 }
0x1c77   : > { %9177 = vmatprep.subr.bf16.mxu1 %v9451_v2 }
0x1c79   : > { %8720 = vmatmul.mubr.msk.f32.vlgmr.msra.gmra.mrb[50].mxu1 %vm646_vm2, %v10376_v55 }
0x1c7a   : > { %9179 = vmatpush3.bf16.msra.mxu1 %v9178_v3  ;;  %8740 = vmatprep.mubr.msk.f32.mxu1 %vm9452_vm0, %v9453_v4 }
0x1c7b   : > { %9180 = vmatprep.subr.bf16.mxu1 %v9451_v2 }
0x1c7e   : > { %9182 = vmatpush3.bf16.msra.mxu1 %v9181_v7  ;;  %v7758_v7 = vld [vmem:[%s10929_s10 + $0x150] sm:$0xff] }
0x1c7f   : > { %9189 = vmatprep.subr.bf16.mxu1 %v9451_v2  ;;  %v9169_v9 = vpack.c.bf16 %v7759_v8, %v7758_v7 }
0x1c81   : > { %8741 = vmatmul.mubr.msk.f32.vlgmr.msra.gmra.mrb[52].mxu1 %vm646_vm2, %v10303_v10 }
0x1c82   : > { %9191 = vmatpush3.bf16.msra.mxu1 %v9190_v11  ;;  %8762 = vmatprep.mubr.msk.f32.mxu1 %vm9452_vm0, %v9453_v4 }
0x1c83   : > { %9192 = vmatprep.subr.bf16.mxu1 %v9451_v2 }
0x1c86   : > { %9194 = vmatpush3.bf16.msra.mxu1 %v9193_v15 }
0x1c87   : > { %9195 = vmatprep.subr.bf16.mxu1 %v9451_v2 }
0x1c89   : > { %8763 = vmatmul.mubr.msk.f32.vlgmr.msra.gmra.mrb[54].mxu1 %vm646_vm2, %v10376_v55 }
0x1c8a   : > { %8783 = vmatprep.mubr.msk.f32.mxu1 %vm9452_vm0, %v9453_v4 }
0x1cdc   : > { %v4508_v16 = vpop.f32.mrb[42].mxu1 }
0x1cdd   : > { %v8640_v17 = vpop.f32.mrb[43].mxu1  ;;  %v4512_v21 = vsel %vm942_vm3, %v4508_v16, -inf }
0x1cde   : > { %4513 = vmax.xlane.f32.xlu0 %v4512_v21 }
0x1ce4   : > { %v4668_v18 = vpop.f32.mrb[44].mxu1 }
0x1ce5   : > { %v8656_v19 = vpop.f32.mrb[45].mxu1 }
0x1d3c   : > { %v4432_v22 = vpop.f32.mrb[54].mxu0  ;;  %v4818_v24 = vpop.f32.mrb[46].mxu1 }
0x1d3d   : > { %v8635_v25 = vpop.f32.mrb[55].mxu0  ;;  %8642 = vmatpush3.msra.mxu0 %v4432_v22  ;;  %v8678_v26 = vpop.f32.mrb[47].mxu1 }
0x1d3e   : > { %9147 = vmatprep.subr.bf16.mxu0 %v9451_v2 }
0x1d44   : > { %v10454_v31 = vpop.f32.mrb[48].mxu1 }
0x1d45   : > { %v8699_v32 = vpop.f32.mrb[49].mxu1 }
0x1d46   : > { %v7774_v32 = vld [vmem:[%s10929_s10 + $0x160] sm:$0xff] }
0x1d4c   : > { %v10456_v33 = vpop.f32.mrb[50].mxu1 }
0x1d4d   : > { %v8721_v35 = vpop.f32.mrb[51].mxu1 }
0x1d54   : > { %v10458_v36 = vpop.f32.mrb[52].mxu1 }
0x1d55   : > { %v8742_v20 = vpop.f32.mrb[53].mxu1 }
0x1d5c   : > { %v10460_v37 = vpop.f32.mrb[54].mxu1 }
0x1d5d   : > { %v8764_v38 = vpop.f32.mrb[55].mxu1 }
0x1d6b   : > { %v4514_v39 = vpop.xlane.xlu0 %4513 }
0x1d6c   : > { %v4515_v40 = vsub.f32 %v4508_v16, %v4514_v39  ;;  %v7776_v39 = vld [vmem:[%s10929_s10 + $0x170] sm:$0xff] }
0x1d6e   : > { %v4516_v28 = vmul.f32 1.442695, %v4515_v40  ;;  %v7777_v40 = vld [vmem:[%s10929_s10 + $0x178] sm:$0xff] }
0x1d70   : > { %9351 = vpow2.f32 %v4516_v28  ;;  %v9187_v28 = vpack.c.bf16 %v7777_v40, %v7776_v39 }
0x1d7a   : > { %v9352_v41 = vpop.eup %9351 }
0x1d7b   : > { %v4518_v23 = vsel %vm942_vm3, %v9352_v41, 0.0 }
0x1d7c   : > { %4519 = vadd.xlane.f32.xlu1 %v4518_v23 }
0x1e09   : > { %v4520_v42 = vpop.xlane.xlu1 %4519 }
0x1e0a   : > { %9353 = vrcp.f32 %v4520_v42 }
0x1e14   : > { %v9354_v45 = vpop.eup %9353 }
0x1e15   : > { %v4522_v30 = vmul.f32 %v9354_v45, %v9352_v41 }
0x1e17   : > { %8644 = vmatmul.mubr.msk.f32.vlgmr.msra.gmra.mrb[56].mxu0 %vm942_vm3, %v4522_v30 }
0x1e18   : > { %9149 = vmatpush3.bf16.msra.mxu0 %v9148_v46  ;;  %8665 = vmatprep.mubr.msk.f32.mxu0 %vm9452_vm0, %v9453_v4 }
0x1e19   : > { %9150 = vmatprep.subr.bf16.mxu0 %v9451_v2 }
0x1e1c   : > { %9152 = vmatpush3.bf16.msra.mxu0 %v9151_v49 }
0x1e1d   : > { %8679 = vmatprep.subr.mxu0 %v9453_v4 }
0x1e1f   : > { %8666 = vmatmul.mubr.msk.f32.vlgmr.msra.gmra.mrb[58].mxu0 %vm646_vm2, %v10266_v57 }
0x1e20   : > { %8681 = vmatprep.mubr.msk.f32.mxu0 %vm9452_vm0, %v9453_v4 }
0x1e25   : > { %8680 = vmatpush3.xpose.msk.msra.mxu0 %vm942_vm3, %v4668_v18 }
0x1e26   : > { %8684 = vmatprep.subr.mxu0 %v9453_v4 }
0x1eea   : > { %v4592_v52 = vpop.f32.mrb[56].mxu0 }
0x1eeb   : > { %v4596_v29 = vadd.f32 %v4592_v52, %v4202_v51  ;;  %v8645_v53 = vpop.f32.mrb[57].mxu0  ;;  %v7799_v52 = vld [vmem:[%s10928_s9 + $0x188] sm:$0xff] }
0x1ef2   : > { %v4743_v54 = vpop.f32.mrb[58].mxu0 }
0x1ef3   : > { %v8667_v56 = vpop.f32.mrb[59].mxu0  ;;  %8682 = vmatmul.mubr.msk.f32.vlgmr.msra.gmra.mrb[60].mxu0 %vm942_vm3, %v4743_v54 }
0x1ef4   : > { %8685 = vmatpush3.msra.mxu0 %v4818_v24  ;;  %8686 = vmatprep.mubr.msk.f32.mxu0 %vm9452_vm0, %v9453_v4  ;;  %v7800_v56 = vld [vmem:[%s10928_s9 + $0x190] sm:$0xff] }
0x1ef5   : > { %9165 = vmatprep.subr.bf16.mxu0 %v9451_v2 }
0x1fc6   : > { %v4894_v34 = vpop.f32.mrb[60].mxu0 }
0x1fc7   : > { %v8683_v58 = vpop.f32.mrb[61].mxu0  ;;  %v4898_v27 = vsel %vm942_vm3, %v4894_v34, -inf }
0x1fc8   : > { %4899 = vmax.xlane.f32.xlu0 %v4898_v27  ;;  %v7808_v27 = vld [vmem:[%s10930_s11 + $0x180] sm:$0xff] }
0x2055   : > { %v4900_v59 = vpop.xlane.xlu0 %4899 }
0x2056   : > { %v4901_v13 = vsub.f32 %v4894_v34, %v4900_v59  ;;  %v7801_v34 = vld [vmem:[%s10928_s9 + $0x198] sm:$0xff]  ;;  %v7809_v59 = vld [vmem:[%s10930_s11 + $0x188] sm:$0xff] }
0x2057   : > { %v9205_v58 = vpack.c.bf16 %v7801_v34, %v7800_v56  ;;  %v7834_v56 = vld [vmem:[%s10928_s9 + $0x1c0] sm:$0xff]  ;;  %v7835_v34 = vld [vmem:[%s10928_s9 + $0x1c8] sm:$0xff] }
0x2058   : > { %v4902_v60 = vmul.f32 1.442695, %v4901_v13  ;;  %v9214_v13 = vpack.c.bf16 %v7809_v59, %v7808_v27  ;;  %v7836_v27 = vld [vmem:[%s10928_s9 + $0x1d0] sm:$0xff]  ;;  %v7837_v59 = vld [vmem:[%s10928_s9 + $0x1d8] sm:$0xff] }
0x205a   : > { %9355 = vpow2.f32 %v4902_v60  ;;  %v7810_v60 = vld [vmem:[%s10930_s11 + $0x190] sm:$0xff] }
0x2064   : > { %v9356_v61 = vpop.eup %9355 }
0x2065   : > { %v4904_v62 = vsel %vm942_vm3, %v9356_v61, 0.0 }
0x2066   : > { %4905 = vadd.xlane.f32.xlu1 %v4904_v62 }
0x20f3   : > { %v4906_v63 = vpop.xlane.xlu1 %4905 }
0x20f4   : > { %9357 = vrcp.f32 %v4906_v63 }
0x20fe   : > { %v9358_v3 = vpop.eup %9357 }
0x20ff   : > { %v4908_v6 = vmul.f32 %v9358_v3, %v9356_v61  ;;  %v7811_v61 = vld [vmem:[%s10930_s11 + $0x198] sm:$0xff] }
0x2100   : > { %v9217_v62 = vpack.c.bf16 %v7811_v61, %v7810_v60  ;;  %v7844_v60 = vld [vmem:[%s10930_s11 + $0x1c0] sm:$0xff]  ;;  %v7845_v61 = vld [vmem:[%s10930_s11 + $0x1c8] sm:$0xff] }
0x2101   : > { %8687 = vmatmul.mubr.msk.f32.vlgmr.msra.gmra.mrb[62].mxu0 %vm942_vm3, %v4908_v6 }
0x2102   : > { %9167 = vmatpush3.bf16.msra.mxu0 %v9166_v5  ;;  %8708 = vmatprep.mubr.msk.f32.mxu0 %vm9452_vm0, %v9453_v4 }
0x2103   : > { %9168 = vmatprep.subr.bf16.mxu0 %v9451_v2 }
0x2106   : > { %9170 = vmatpush3.bf16.msra.mxu0 %v9169_v9 }
0x2107   : > { %8722 = vmatprep.subr.mxu0 %v9453_v4 }
0x2109   : > { %8709 = vmatmul.mubr.msk.f32.vlgmr.msra.gmra.mrb[64].mxu0 %vm646_vm2, %v10266_v57 }
0x210a   : > { %8724 = vmatprep.mubr.msk.f32.mxu0 %vm9452_vm0, %v9453_v4 }
0x210f   : > { %8723 = vmatpush3.xpose.msk.msra.mxu0 %vm942_vm3, %v10454_v31 }
0x2110   : > { %8727 = vmatprep.subr.mxu0 %v9453_v4 }
0x21d4   : > { %v4978_v11 = vpop.f32.mrb[62].mxu0 }
0x21d5   : > { %v4982_v12 = vadd.f32 %v4978_v11, %v4596_v29  ;;  %v8688_v14 = vpop.f32.mrb[63].mxu0 }
0x21dc   : > { %v5129_v15 = vpop.f32.mrb[64].mxu0 }
0x21dd   : > { %v8710_v16 = vpop.f32.mrb[65].mxu0  ;;  %8725 = vmatmul.mubr.msk.f32.vlgmr.msra.gmra.mrb[66].mxu0 %vm942_vm3, %v5129_v15 }
0x21de   : > { %8728 = vmatpush3.msra.mxu0 %v10456_v33  ;;  %8729 = vmatprep.mubr.msk.f32.mxu0 %vm9452_vm0, %v9453_v4  ;;  %v7775_v33 = vld [vmem:[%s10929_s10 + $0x168] sm:$0xff] }
0x21df   : > { %9183 = vmatprep.subr.bf16.mxu0 %v9451_v2  ;;  %v9184_v20 = vpack.c.bf16 %v7775_v33, %v7774_v32  ;;  %v7788_v32 = vld [vmem:[%s10933_s14 + $0x2] ss:$0 sm:$0xff] }
0x22b0   : > { %v5280_v17 = vpop.f32.mrb[66].mxu0 }
0x22b1   : > { %v8726_v21 = vpop.f32.mrb[67].mxu0  ;;  %v5284_v18 = vsel %vm942_vm3, %v5280_v17, -inf }
0x22b2   : > { %5285 = vmax.xlane.f32.xlu0 %v5284_v18  ;;  %v7793_v18 = vld [vmem:[%s10931_s12 + $0x70] sm:$0xff] }
0x233f   : > { %v5286_v19 = vpop.xlane.xlu0 %5285 }
0x2340   : > { %v5287_v22 = vsub.f32 %v5280_v17, %v5286_v19  ;;  %v7792_v17 = vld [vmem:[%s10931_s12 + $0x68] sm:$0xff]  ;;  %v7794_v19 = vld [vmem:[%s10931_s12 + $0x78] sm:$0xff] }
0x2342   : > { %v5288_v24 = vmul.f32 1.442695, %v5287_v22  ;;  %v9199_v22 = vpack.c.bf16 %v7794_v19, %v7793_v18 }
0x2344   : > { %9359 = vpow2.f32 %v5288_v24 }
0x234e   : > { %v9360_v25 = vpop.eup %9359 }
0x234f   : > { %v5290_v26 = vsel %vm942_vm3, %v9360_v25, 0.0 }
0x2350   : > { %5291 = vadd.xlane.f32.xlu1 %v5290_v26 }
0x23dd   : > { %v5292_v31 = vpop.xlane.xlu1 %5291 }
0x23de   : > { %9361 = vrcp.f32 %v5292_v31 }
0x23e8   : > { %v9362_v35 = vpop.eup %9361 }
0x23e9   : > { %v5294_v38 = vmul.f32 %v9362_v35, %v9360_v25  ;;  %v7803_v35 = vld [vmem:[%s10929_s10 + $0x180] sm:$0xff] }
0x23eb   : > { %8730 = vmatmul.mubr.msk.f32.vlgmr.msra.gmra.mrb[68].mxu0 %vm942_vm3, %v5294_v38  ;;  %v7790_v38 = vld [vmem:[%s10934_s15 + $0x2] ss:$0 sm:$0xff] }
0x23ec   : > { %9185 = vmatpush3.bf16.msra.mxu0 %v9184_v20  ;;  %8751 = vmatprep.mubr.msk.f32.mxu0 %vm9452_vm0, %v9453_v4  ;;  %v7804_v20 = vld [vmem:[%s10929_s10 + $0x188] sm:$0xff] }
0x23ed   : > { %9186 = vmatprep.subr.bf16.mxu0 %v9451_v2  ;;  %v9208_v40 = vpack.c.bf16 %v7804_v20, %v7803_v35 }
0x23f0   : > { %9188 = vmatpush3.bf16.msra.mxu0 %v9187_v28 }
0x23f1   : > { %8765 = vmatprep.subr.mxu0 %v9453_v4 }
0x23f3   : > { %8752 = vmatmul.mubr.msk.f32.vlgmr.msra.gmra.mrb[70].mxu0 %vm646_vm2, %v10266_v57 }
0x23f4   : > { %8767 = vmatprep.mubr.msk.f32.mxu0 %vm9452_vm0, %v9453_v4 }
0x23f9   : > { %8766 = vmatpush3.xpose.msk.msra.mxu0 %vm942_vm3, %v10458_v36 }
0x23fa   : > { %8770 = vmatprep.subr.mxu0 %v9453_v4 }
0x24be   : > { %v5364_v41 = vpop.f32.mrb[68].mxu0 }
0x24bf   : > { %v5368_v23 = vadd.f32 %v5364_v41, %v4982_v12  ;;  %v8731_v42 = vpop.f32.mrb[69].mxu0  ;;  %v7805_v41 = vld [vmem:[%s10929_s10 + $0x190] sm:$0xff] }
0x24c6   : > { %v5515_v43 = vpop.f32.mrb[70].mxu0 }
0x24c7   : > { %v8753_v44 = vpop.f32.mrb[71].mxu0  ;;  %8768 = vmatmul.mubr.msk.f32.vlgmr.msra.gmra.mrb[72].mxu0 %vm942_vm3, %v5515_v43 }
0x24c8   : > { %8771 = vmatpush3.msra.mxu0 %v10460_v37  ;;  %8772 = vmatprep.mubr.msk.f32.mxu0 %vm9452_vm0, %v9453_v4  ;;  %v7798_v37 = vld [vmem:[%s10928_s9 + $0x180] sm:$0xff] }
0x24c9   : > { %9201 = vmatprep.subr.bf16.mxu0 %v9451_v2  ;;  %v9202_v53 = vpack.c.bf16 %v7799_v52, %v7798_v37  ;;  %v7827_v37 = vld [vmem:[%s10930_s11 + $0x1a8] sm:$0xff] }
0x259a   : > { %v5666_v45 = vpop.f32.mrb[72].mxu0 }
0x259b   : > { %v8769_v46 = vpop.f32.mrb[73].mxu0  ;;  %v5670_v36 = vsel %vm942_vm3, %v5666_v45, -inf }
0x259c   : > { %5671 = vmax.xlane.f32.xlu0 %v5670_v36  ;;  %v7817_v46 = vld [vmem:[%s10928_s9 + $0x1a8] sm:$0xff] }
0x2629   : > { %v5672_v30 = vpop.xlane.xlu0 %5671 }
0x262a   : > { %v5673_v47 = vsub.f32 %v5666_v45, %v5672_v30  ;;  %v7816_v45 = vld [vmem:[%s10928_s9 + $0x1a0] sm:$0xff]  ;;  %v7818_v30 = vld [vmem:[%s10928_s9 + $0x1b0] sm:$0xff] }
0x262b   : > { %v9220_v36 = vpack.c.bf16 %v7817_v46, %v7816_v45  ;;  %v7822_v45 = vld [vmem:[%s10929_s10 + $0x1a8] sm:$0xff] }
0x262c   : > { %v5674_v48 = vmul.f32 1.442695, %v5673_v47  ;;  %v7819_v47 = vld [vmem:[%s10928_s9 + $0x1b8] sm:$0xff] }
0x262e   : > { %9363 = vpow2.f32 %v5674_v48 }
0x2638   : > { %v9364_v49 = vpop.eup %9363 }
0x2639   : > { %v5676_v50 = vsel %vm942_vm3, %v9364_v49, 0.0 }
0x263a   : > { %5677 = vadd.xlane.f32.xlu1 %v5676_v50  ;;  %v9223_v50 = vpack.c.bf16 %v7819_v47, %v7818_v30  ;;  %v7823_v47 = vld [vmem:[%s10929_s10 + $0x1b0] sm:$0xff] }
0x26c7   : > { %v5678_v51 = vpop.xlane.xlu1 %5677 }
0x26c8   : > { %9365 = vrcp.f32 %v5678_v51  ;;  %v7826_v51 = vld [vmem:[%s10930_s11 + $0x1a0] sm:$0xff] }
0x26c9   : > { %v9232_v52 = vpack.c.bf16 %v7827_v37, %v7826_v51 }
0x26d2   : > { %v9366_v29 = vpop.eup %9365 }
0x26d3   : > { %v5680_v54 = vmul.f32 %v9366_v29, %v9364_v49  ;;  %v7828_v29 = vld [vmem:[%s10930_s11 + $0x1b0] sm:$0xff] }
0x26d5   : > { %8773 = vmatmul.mubr.msk.f32.vlgmr.msra.gmra.mrb[74].mxu0 %vm942_vm3, %v5680_v54 }
0x26d6   : > { %9203 = vmatpush3.bf16.msra.mxu0 %v9202_v53  ;;  %8794 = vmatprep.mubr.msk.f32.mxu0 %vm9452_vm0, %v9453_v4  ;;  %v7829_v53 = vld [vmem:[%s10930_s11 + $0x1b8] sm:$0xff] }
0x26d7   : > { %9204 = vmatprep.subr.bf16.mxu0 %v9451_v2  ;;  %v9235_v54 = vpack.c.bf16 %v7829_v53, %v7828_v29 }
0x26da   : > { %9206 = vmatpush3.bf16.msra.mxu0 %v9205_v58  ;;  %v9238_v58 = vpack.c.bf16 %v7835_v34, %v7834_v56 }
0x26db   : > { %9213 = vmatprep.subr.bf16.mxu0 %v9451_v2 }
0x26dd   : > { %8795 = vmatmul.mubr.msk.f32.vlgmr.msra.gmra.mrb[76].mxu0 %vm646_vm2, %v10303_v10 }
0x26de   : > { %9215 = vmatpush3.bf16.msra.mxu0 %v9214_v13  ;;  %8816 = vmatprep.mubr.msk.f32.mxu0 %vm9452_vm0, %v9453_v4  ;;  %v9241_v13 = vpack.c.bf16 %v7837_v59, %v7836_v27 }
0x26df   : > { %9216 = vmatprep.subr.bf16.mxu0 %v9451_v2 }
0x26e2   : > { %9218 = vmatpush3.bf16.msra.mxu0 %v9217_v62  ;;  %v9250_v62 = vpack.c.bf16 %v7845_v61, %v7844_v60 }
0x26e3   : > { %8824 = vmatprep.subr.mxu0 %v9453_v4 }
0x26e5   : > { %8817 = vmatmul.mubr.msk.f32.vlgmr.msra.gmra.mrb[78].mxu0 %vm646_vm2, %v10376_v55 }
0x26e6   : > { %8826 = vmatprep.mubr.msk.f32.mxu0 %vm9452_vm0, %v9453_v4 }
0x27a8   : > { %v5750_v63 = vpop.f32.mrb[74].mxu0 }
0x27a9   : > { %v5754_v0 = vadd.f32 %v5750_v63, %v5368_v23  ;;  %v8774_v1 = vpop.f32.mrb[75].mxu0  ;;  %v7806_v23 = vld [vmem:[%s10929_s10 + $0x198] sm:$0xff]  ;;  %v7846_v63 = vld [vmem:[%s10930_s11 + $0x1d0] sm:$0xff] }
0x27aa   : > { %v9211_v42 = vpack.c.bf16 %v7806_v23, %v7805_v41 }
0x27ab   : > { %v5755_v3 = vadd.f32 %v5754_v0, %v10266_v57  ;;  %v7791_v57 = vld [vmem:[%s10931_s12 + $0x60] sm:$0xff]  ;;  %v7847_v0 = vld [vmem:[%s10930_s11 + $0x1d8] sm:$0xff] }
0x27ac   : > { %v9196_v21 = vpack.c.bf16 %v7792_v17, %v7791_v57  ;;  %v9253_v1 = vpack.c.bf16 %v7847_v0, %v7846_v63  ;;  %v7840_v63 = vld [vmem:[%s10929_s10 + $0x1c8] sm:$0xff] }
0x27ad   : > { %v5756_v5 = vsel %vm646_vm2, %v5755_v3, 0.0 }
0x27ae   : > { %5757 = vadd.xlane.f32.xlu0 %v5756_v5  ;;  %9197 = vmatpush3.bf16.msra.mxu1 %v9196_v21  ;;  %v7853_v5 = vld [vmem:[%s10928_s9 + $0x1e8] sm:$0xff] }
0x27af   : > { %9198 = vmatprep.subr.bf16.mxu1 %v9451_v2 }
0x27b0   : > { %v5944_v6 = vpop.f32.mrb[76].mxu0 }
0x27b1   : > { %v8796_v7 = vpop.f32.mrb[77].mxu0 }
0x27b2   : > { %9200 = vmatpush3.bf16.msra.mxu1 %v9199_v22  ;;  %v7854_v7 = vld [vmem:[%s10928_s9 + $0x1f0] sm:$0xff] }
0x27b3   : > { %9207 = vmatprep.subr.bf16.mxu1 %v9451_v2 }
0x27b8   : > { %v6094_v8 = vpop.f32.mrb[78].mxu0 }
0x27b9   : > { %v8818_v9 = vpop.f32.mrb[79].mxu0  ;;  %8825 = vmatpush3.msra.mxu0 %v6094_v8  ;;  %v7855_v8 = vld [vmem:[%s10928_s9 + $0x1f8] sm:$0xff] }
0x27ba   : > { %9225 = vmatprep.subr.bf16.mxu0 %v9451_v2  ;;  %v9259_v9 = vpack.c.bf16 %v7855_v8, %v7854_v7 }
0x283b   : > { %v5758_v11 = vpop.xlane.xlu0 %5757 }
0x283c   : > { %v5759_v12 = vmul.f32 0.03125, %v5758_v11  ;;  %v7862_v11 = vld [vmem:[%s10930_s11 + $0x1e0] sm:$0xff] }
0x283e   : > { %v5760_v14 = vsub.f32 %v5755_v3, %v5759_v12  ;;  %v7852_v3 = vld [vmem:[%s10928_s9 + $0x1e0] sm:$0xff]  ;;  %v7863_v12 = vld [vmem:[%s10930_s11 + $0x1e8] sm:$0xff] }
0x2840   : > { %v5761_v15 = vmul.f32 %v5760_v14, %v5760_v14 }
0x2842   : > { %v5762_v16 = vsel %vm646_vm2, %v5761_v15, 0.0  ;;  %v7864_v15 = vld [vmem:[%s10930_s11 + $0x1f0] sm:$0xff] }
0x2843   : > { %5763 = vadd.xlane.f32.xlu1 %v5762_v16  ;;  %v7865_v16 = vld [vmem:[%s10930_s11 + $0x1f8] sm:$0xff] }
0x2844   : > { %v9271_v57 = vpack.c.bf16 %v7865_v16, %v7864_v15 }
0x28d0   : > { %v5764_v24 = vpop.xlane.xlu1 %5763 }
0x28d1   : > { %v5765_v25 = vmul.f32 0.03125, %v5764_v24 }
0x28d3   : > { %v5766_v26 = vadd.f32 1e-05, %v5765_v25 }
0x28d5   : > { %9367 = vrsqrt.f32 %v5766_v26 }
0x28df   : > { %v9368_v31 = vpop.eup %9367 }
0x28e0   : > { %v5768_v33 = vmul.f32 %v9368_v31, %v5760_v14  ;;  %v9268_v14 = vpack.c.bf16 %v7863_v12, %v7862_v11 }
0x28e2   : > { %v5777_v39 = vmul.f32 %v7788_v32, %v5768_v33 }
0x28e4   : > { %v10627_v28 = vadd.f32 %v7790_v38, %v5777_v39 }
0x28e6   : > { %8784 = vmatmul.mubr.msk.f32.vlgmr.msra.gmra.mrb[56].mxu1 %vm646_vm2, %v10627_v28 }
0x28e7   : > { %9209 = vmatpush3.bf16.msra.mxu1 %v9208_v40  ;;  %8805 = vmatprep.mubr.msk.f32.mxu1 %vm9452_vm0, %v9453_v4 }
0x28e8   : > { %9210 = vmatprep.subr.bf16.mxu1 %v9451_v2 }
0x28eb   : > { %9212 = vmatpush3.bf16.msra.mxu1 %v9211_v42 }
0x28ec   : > { %8819 = vmatprep.subr.mxu1 %v9453_v4 }
0x28ee   : > { %8806 = vmatmul.mubr.msk.f32.vlgmr.msra.gmra.mrb[58].mxu1 %vm646_vm2, %v10627_v28 }
0x28ef   : > { %8821 = vmatprep.mubr.msk.f32.mxu1 %vm9452_vm0, %v9453_v4 }
0x28f4   : > { %8820 = vmatpush3.xpose.msk.msra.mxu1 %vm942_vm3, %v5944_v6  ;;  %v9256_v6 = vpack.c.bf16 %v7853_v5, %v7852_v3  ;;  %v7841_v5 = vld [vmem:[%s10929_s10 + $0x1d0] sm:$0xff] }
0x28f5   : > { %9219 = vmatprep.subr.bf16.mxu1 %v9451_v2 }
0x29b9   : > { %v10647_v43 = vpop.f32.mrb[56].mxu1 }
0x29ba   : > { %v8785_v44 = vpop.f32.mrb[57].mxu1 }
0x29bb   : > { %v7821_v44 = vld [vmem:[%s10929_s10 + $0x1a0] sm:$0xff] }
0x29c1   : > { %v6019_v48 = vpop.f32.mrb[58].mxu1 }
0x29c2   : > { %v8807_v49 = vpop.f32.mrb[59].mxu1  ;;  %8822 = vmatmul.mubr.msk.f32.vlgmr.msra.gmra.mrb[60].mxu1 %vm942_vm3, %v6019_v48  ;;  %v7824_v48 = vld [vmem:[%s10929_s10 + $0x1b8] sm:$0xff] }
0x29c3   : > { %9221 = vmatpush3.bf16.msra.mxu1 %v9220_v36  ;;  %8837 = vmatprep.mubr.msk.f32.mxu1 %vm9452_vm0, %v9453_v4  ;;  %v9226_v36 = vpack.c.bf16 %v7822_v45, %v7821_v44  ;;  %v9229_v49 = vpack.c.bf16 %v7824_v48, %v7823_v47 }
0x29c4   : > { %9222 = vmatprep.subr.bf16.mxu1 %v9451_v2 }
0x29c7   : > { %9224 = vmatpush3.bf16.msra.mxu1 %v9223_v50  ;;  %v7796_v50 = vld [vmem:[%s10932_s13 + $0x3] ss:$0 sm:$0xff] }
0x29c8   : > { %9231 = vmatprep.subr.bf16.mxu1 %v9451_v2  ;;  %v5870_v51 = vadd.f32 %v7796_v50, %v10647_v43 }
0x29ca   : > { %8838 = vmatmul.mubr.msk.f32.vlgmr.msra.gmra.mrb[62].mxu1 %vm646_vm2, %v10303_v10 }
0x29cb   : > { %9233 = vmatpush3.bf16.msra.mxu1 %v9232_v52  ;;  %8859 = vmatprep.mubr.msk.f32.mxu1 %vm9452_vm0, %v9453_v4 }
0x29cc   : > { %9234 = vmatprep.subr.bf16.mxu1 %v9451_v2 }
0x29cf   : > { %9236 = vmatpush3.bf16.msra.mxu1 %v9235_v54 }
0x29d0   : > { %9237 = vmatprep.subr.bf16.mxu1 %v9451_v2 }
0x29d2   : > { %8860 = vmatmul.mubr.msk.f32.vlgmr.msra.gmra.mrb[64].mxu1 %vm646_vm2, %v10376_v55 }
0x29d3   : > { %9239 = vmatpush3.bf16.msra.mxu1 %v9238_v58  ;;  %8880 = vmatprep.mubr.msk.f32.mxu1 %vm9452_vm0, %v9453_v4 }
0x29d4   : > { %9240 = vmatprep.subr.bf16.mxu1 %v9451_v2 }
0x29d7   : > { %9242 = vmatpush3.bf16.msra.mxu1 %v9241_v13 }
0x29d8   : > { %9249 = vmatprep.subr.bf16.mxu1 %v9451_v2 }
0x29da   : > { %8881 = vmatmul.mubr.msk.f32.vlgmr.msra.gmra.mrb[66].mxu1 %vm646_vm2, %v10303_v10 }
0x29db   : > { %9251 = vmatpush3.bf16.msra.mxu1 %v9250_v62  ;;  %8902 = vmatprep.mubr.msk.f32.mxu1 %vm9452_vm0, %v9453_v4  ;;  %v7839_v62 = vld [vmem:[%s10929_s10 + $0x1c0] sm:$0xff] }
0x29dc   : > { %9252 = vmatprep.subr.bf16.mxu1 %v9451_v2 }
0x29df   : > { %9254 = vmatpush3.bf16.msra.mxu1 %v9253_v1  ;;  %v9244_v1 = vpack.c.bf16 %v7840_v63, %v7839_v62 }
0x29e0   : > { %9255 = vmatprep.subr.bf16.mxu1 %v9451_v2 }
0x29e2   : > { %8903 = vmatmul.mubr.msk.f32.vlgmr.msra.gmra.mrb[68].mxu1 %vm646_vm2, %v10376_v55 }
0x29e3   : > { %9257 = vmatpush3.bf16.msra.mxu1 %v9256_v6  ;;  %8923 = vmatprep.mubr.msk.f32.mxu1 %vm9452_vm0, %v9453_v4  ;;  %v7842_v6 = vld [vmem:[%s10929_s10 + $0x1d8] sm:$0xff] }
0x29e4   : > { %9258 = vmatprep.subr.bf16.mxu1 %v9451_v2  ;;  %v9247_v7 = vpack.c.bf16 %v7842_v6, %v7841_v5 }
0x29e7   : > { %9260 = vmatpush3.bf16.msra.mxu1 %v9259_v9 }
0x29e8   : > { %9267 = vmatprep.subr.bf16.mxu1 %v9451_v2 }
0x29ea   : > { %8924 = vmatmul.mubr.msk.f32.vlgmr.msra.gmra.mrb[70].mxu1 %vm646_vm2, %v10303_v10 }
0x29eb   : > { %9269 = vmatpush3.bf16.msra.mxu1 %v9268_v14  ;;  %8945 = vmatprep.mubr.msk.f32.mxu1 %vm9452_vm0, %v9453_v4 }
0x29ec   : > { %9270 = vmatprep.subr.bf16.mxu1 %v9451_v2 }
0x29ef   : > { %9272 = vmatpush3.bf16.msra.mxu1 %v9271_v57 }
0x29f2   : > { %8946 = vmatmul.mubr.msk.f32.vlgmr.msra.gmra.mrb[72].mxu1 %vm646_vm2, %v10376_v55 }
0x2a95   : > { %v6170_v17 = vpop.f32.mrb[60].mxu1 }
0x2a96   : > { %v8823_v21 = vpop.f32.mrb[61].mxu1  ;;  %v6174_v18 = vsel %vm942_vm3, %v6170_v17, -inf }
0x2a97   : > { %6175 = vmax.xlane.f32.xlu0 %v6174_v18 }
0x2a9d   : > { %v6330_v19 = vpop.f32.mrb[62].mxu1 }
0x2a9e   : > { %v8839_v22 = vpop.f32.mrb[63].mxu1 }
0x2aa5   : > { %v6480_v24 = vpop.f32.mrb[64].mxu1 }
0x2aa6   : > { %v8861_v10 = vpop.f32.mrb[65].mxu1 }
0x2aa7   : > { %v7857_v10 = vld [vmem:[%s10929_s10 + $0x1e0] sm:$0xff] }
0x2aad   : > { %v10758_v25 = vpop.f32.mrb[66].mxu1 }
0x2aae   : > { %v8882_v26 = vpop.f32.mrb[67].mxu1 }
0x2ab5   : > { %v10760_v31 = vpop.f32.mrb[68].mxu1 }
0x2ab6   : > { %v8904_v32 = vpop.f32.mrb[69].mxu1 }
0x2abd   : > { %v10762_v33 = vpop.f32.mrb[70].mxu1 }
0x2abe   : > { %v8925_v35 = vpop.f32.mrb[71].mxu1 }
0x2abf   : > { %v7859_v35 = vld [vmem:[%s10929_s10 + $0x1f0] sm:$0xff] }
0x2ac5   : > { %v10764_v20 = vpop.f32.mrb[72].mxu1 }
0x2ac6   : > { %v8947_v55 = vpop.f32.mrb[73].mxu1 }
0x2ac7   : > { %v7860_v55 = vld [vmem:[%s10929_s10 + $0x1f8] sm:$0xff] }
0x2b24   : > { %v6176_v38 = vpop.xlane.xlu0 %6175 }
0x2b25   : > { %v6177_v39 = vsub.f32 %v6170_v17, %v6176_v38  ;;  %v9265_v38 = vpack.c.bf16 %v7860_v55, %v7859_v35 }
0x2b27   : > { %v6178_v40 = vmul.f32 1.442695, %v6177_v39 }
0x2b29   : > { %9369 = vpow2.f32 %v6178_v40 }
0x2b33   : > { %v9370_v41 = vpop.eup %9369 }
0x2b34   : > { %v6180_v23 = vsel %vm942_vm3, %v9370_v41, 0.0 }
0x2b35   : > { %6181 = vadd.xlane.f32.xlu1 %v6180_v23 }
0x2bc2   : > { %v6182_v42 = vpop.xlane.xlu1 %6181 }
0x2bc3   : > { %9371 = vrcp.f32 %v6182_v42 }
0x2bcd   : > { %v9372_v46 = vpop.eup %9371 }
0x2bce   : > { %v6184_v30 = vmul.f32 %v9372_v46, %v9370_v41 }
0x2bd0   : > { %8827 = vmatmul.mubr.msk.f32.vlgmr.msra.gmra.mrb[80].mxu0 %vm942_vm3, %v6184_v30 }
0x2bd1   : > { %9227 = vmatpush3.bf16.msra.mxu0 %v9226_v36  ;;  %8848 = vmatprep.mubr.msk.f32.mxu0 %vm9452_vm0, %v9453_v4 }
0x2bd2   : > { %9228 = vmatprep.subr.bf16.mxu0 %v9451_v2 }
0x2bd5   : > { %9230 = vmatpush3.bf16.msra.mxu0 %v9229_v49 }
0x2bd6   : > { %8862 = vmatprep.subr.mxu0 %v9453_v4 }
0x2bd8   : > { %8849 = vmatmul.mubr.msk.f32.vlgmr.msra.gmra.mrb[82].mxu0 %vm646_vm2, %v10627_v28 }
0x2bd9   : > { %8864 = vmatprep.mubr.msk.f32.mxu0 %vm9452_vm0, %v9453_v4 }
0x2bde   : > { %8863 = vmatpush3.xpose.msk.msra.mxu0 %vm942_vm3, %v6330_v19 }
0x2bdf   : > { %8867 = vmatprep.subr.mxu0 %v9453_v4 }
0x2ca3   : > { %v6254_v37 = vpop.f32.mrb[80].mxu0 }
0x2ca4   : > { %v6258_v52 = vadd.f32 %v6254_v37, %v5870_v51  ;;  %v8828_v29 = vpop.f32.mrb[81].mxu0 }
0x2cab   : > { %v6405_v53 = vpop.f32.mrb[82].mxu0 }
0x2cac   : > { %v8850_v54 = vpop.f32.mrb[83].mxu0  ;;  %8865 = vmatmul.mubr.msk.f32.vlgmr.msra.gmra.mrb[84].mxu0 %vm942_vm3, %v6405_v53 }
0x2cad   : > { %8868 = vmatpush3.msra.mxu0 %v6480_v24  ;;  %8869 = vmatprep.mubr.msk.f32.mxu0 %vm9452_vm0, %v9453_v4 }
0x2cae   : > { %9243 = vmatprep.subr.bf16.mxu0 %v9451_v2 }
0x2d7f   : > { %v6556_v56 = vpop.f32.mrb[84].mxu0 }
0x2d80   : > { %v8866_v34 = vpop.f32.mrb[85].mxu0  ;;  %v6560_v58 = vsel %vm942_vm3, %v6556_v56, -inf }
0x2d81   : > { %6561 = vmax.xlane.f32.xlu0 %v6560_v58 }
0x2e0e   : > { %v6562_v27 = vpop.xlane.xlu0 %6561 }
0x2e0f   : > { %v6563_v43 = vsub.f32 %v6556_v56, %v6562_v27 }
0x2e11   : > { %v6564_v59 = vmul.f32 1.442695, %v6563_v43 }
0x2e13   : > { %9373 = vpow2.f32 %v6564_v59 }
0x2e1d   : > { %v9374_v13 = vpop.eup %9373 }
0x2e1e   : > { %v6566_v60 = vsel %vm942_vm3, %v9374_v13, 0.0 }
0x2e1f   : > { %6567 = vadd.xlane.f32.xlu1 %v6566_v60  ;;  %v7873_v60 = vld [vmem:[%s10934_s15 + $0x3] ss:$0 sm:$0xff] }
0x2eac   : > { %v6568_v61 = vpop.xlane.xlu1 %6567 }
0x2ead   : > { %9375 = vrcp.f32 %v6568_v61 }
0x2eb7   : > { %v9376_v0 = vpop.eup %9375 }
0x2eb8   : > { %v6570_v3 = vmul.f32 %v9376_v0, %v9374_v13 }
0x2eba   : > { %8870 = vmatmul.mubr.msk.f32.vlgmr.msra.gmra.mrb[86].mxu0 %vm942_vm3, %v6570_v3 }
0x2ebb   : > { %9245 = vmatpush3.bf16.msra.mxu0 %v9244_v1  ;;  %8891 = vmatprep.mubr.msk.f32.mxu0 %vm9452_vm0, %v9453_v4 }
0x2ebc   : > { %9246 = vmatprep.subr.bf16.mxu0 %v9451_v2 }
0x2ebf   : > { %9248 = vmatpush3.bf16.msra.mxu0 %v9247_v7 }
0x2ec0   : > { %8905 = vmatprep.subr.mxu0 %v9453_v4 }
0x2ec2   : > { %8892 = vmatmul.mubr.msk.f32.vlgmr.msra.gmra.mrb[88].mxu0 %vm646_vm2, %v10627_v28 }
0x2ec3   : > { %8907 = vmatprep.mubr.msk.f32.mxu0 %vm9452_vm0, %v9453_v4 }
0x2ec8   : > { %8906 = vmatpush3.xpose.msk.msra.mxu0 %vm942_vm3, %v10758_v25  ;;  %v7858_v25 = vld [vmem:[%s10929_s10 + $0x1e8] sm:$0xff] }
0x2ec9   : > { %8910 = vmatprep.subr.mxu0 %v9453_v4 }
0x2f8d   : > { %v6640_v8 = vpop.f32.mrb[86].mxu0 }
0x2f8e   : > { %v6644_v9 = vadd.f32 %v6640_v8, %v6258_v52  ;;  %v8871_v11 = vpop.f32.mrb[87].mxu0 }
0x2f95   : > { %v6791_v12 = vpop.f32.mrb[88].mxu0 }
0x2f96   : > { %v8893_v14 = vpop.f32.mrb[89].mxu0  ;;  %8908 = vmatmul.mubr.msk.f32.vlgmr.msra.gmra.mrb[90].mxu0 %vm942_vm3, %v6791_v12 }
0x2f97   : > { %8911 = vmatpush3.msra.mxu0 %v10760_v31  ;;  %8912 = vmatprep.mubr.msk.f32.mxu0 %vm9452_vm0, %v9453_v4  ;;  %v9262_v31 = vpack.c.bf16 %v7858_v25, %v7857_v10 }
0x2f98   : > { %9261 = vmatprep.subr.bf16.mxu0 %v9451_v2 }
0x3069   : > { %v6942_v15 = vpop.f32.mrb[90].mxu0 }
0x306a   : > { %v8909_v16 = vpop.f32.mrb[91].mxu0  ;;  %v6946_v57 = vsel %vm942_vm3, %v6942_v15, -inf }
0x306b   : > { %6947 = vmax.xlane.f32.xlu0 %v6946_v57 }
0x30f8   : > { %v6948_v17 = vpop.xlane.xlu0 %6947 }
0x30f9   : > { %v6949_v21 = vsub.f32 %v6942_v15, %v6948_v17 }
0x30fb   : > { %v6950_v18 = vmul.f32 1.442695, %v6949_v21 }
0x30fd   : > { %9377 = vpow2.f32 %v6950_v18 }
0x3107   : > { %v9378_v19 = vpop.eup %9377 }
0x3108   : > { %v6952_v22 = vsel %vm942_vm3, %v9378_v19, 0.0 }
0x3109   : > { %6953 = vadd.xlane.f32.xlu1 %v6952_v22 }
0x3196   : > { %v6954_v24 = vpop.xlane.xlu1 %6953 }
0x3197   : > { %9379 = vrcp.f32 %v6954_v24 }
0x31a1   : > { %v9380_v26 = vpop.eup %9379 }
0x31a2   : > { %v6956_v32 = vmul.f32 %v9380_v26, %v9378_v19 }
0x31a4   : > { %8913 = vmatmul.mubr.msk.f32.vlgmr.msra.gmra.mrb[92].mxu0 %vm942_vm3, %v6956_v32 }
0x31a5   : > { %9263 = vmatpush3.bf16.msra.mxu0 %v9262_v31  ;;  %8934 = vmatprep.mubr.msk.f32.mxu0 %vm9452_vm0, %v9453_v4 }
0x31a6   : > { %9264 = vmatprep.subr.bf16.mxu0 %v9451_v2 }
0x31a9   : > { %9266 = vmatpush3.bf16.msra.mxu0 %v9265_v38 }
0x31aa   : > { %8948 = vmatprep.subr.mxu0 %v9453_v4 }
0x31ac   : > { %8935 = vmatmul.mubr.msk.f32.vlgmr.msra.gmra.mrb[94].mxu0 %vm646_vm2, %v10627_v28 }
0x31ad   : > { %8950 = vmatprep.mubr.msk.f32.mxu0 %vm9452_vm0, %v9453_v4 }
0x31b2   : > { %8949 = vmatpush3.xpose.msk.msra.mxu0 %vm942_vm3, %v10762_v33 }
0x31b3   : > { %8953 = vmatprep.subr.mxu0 %v9453_v4 }
0x3277   : > { %v7026_v39 = vpop.f32.mrb[92].mxu0 }
0x3278   : > { %v7030_v40 = vadd.f32 %v7026_v39, %v6644_v9  ;;  %v8914_v41 = vpop.f32.mrb[93].mxu0 }
0x327f   : > { %v7177_v23 = vpop.f32.mrb[94].mxu0 }
0x3280   : > { %v8936_v42 = vpop.f32.mrb[95].mxu0  ;;  %8951 = vmatmul.mubr.msk.f32.vlgmr.msra.gmra.mrb[96].mxu0 %vm942_vm3, %v7177_v23 }
0x3281   : > { %8954 = vmatpush3.msra.mxu0 %v10764_v20  ;;  %8955 = vmatprep.mubr.msk.f32.mxu0 %vm9452_vm0, %v9453_v4 }
0x3353   : > { %v7328_v2 = vpop.f32.mrb[96].mxu0 }
0x3354   : > { %v8952_v44 = vpop.f32.mrb[97].mxu0  ;;  %v7332_v45 = vsel %vm942_vm3, %v7328_v2, -inf }
0x3355   : > { %7333 = vmax.xlane.f32.xlu0 %v7332_v45 }
0x33e2   : > { %v7334_v33 = vpop.xlane.xlu0 %7333 }
0x33e3   : > { %v7335_v46 = vsub.f32 %v7328_v2, %v7334_v33 }
0x33e5   : > { %v7336_v36 = vmul.f32 1.442695, %v7335_v46 }
0x33e7   : > { %9381 = vpow2.f32 %v7336_v36 }
0x33f1   : > { %v9382_v30 = vpop.eup %9381 }
0x33f2   : > { %v7338_v47 = vsel %vm942_vm3, %v9382_v30, 0.0 }
0x33f3   : > { %7339 = vadd.xlane.f32.xlu1 %v7338_v47 }
0x3480   : > { %v7340_v48 = vpop.xlane.xlu1 %7339 }
0x3481   : > { %9383 = vrcp.f32 %v7340_v48 }
0x348b   : > { %v9384_v49 = vpop.eup %9383 }
0x348c   : > { %v7342_v20 = vmul.f32 %v9384_v49, %v9382_v30 }
0x348e   : > { %8956 = vmatmul.mubr.msk.f32.vlgmr.msra.gmra.mrb[98].mxu0 %vm942_vm3, %v7342_v20 }
0x3561   : > { %v7412_v4 = vpop.f32.mrb[98].mxu0 }
0x3562   : > { %v7416_v50 = vadd.f32 %v7412_v4, %v7030_v40  ;;  %v8957_v51 = vpop.f32.mrb[99].mxu0 }
0x3564   : > { %v7417_v37 = vadd.f32 %v7416_v50, %v10627_v28  ;;  %v7871_v28 = vld [vmem:[%s10933_s14 + $0x3] ss:$0 sm:$0xff] }
0x3566   : > { %v7418_v52 = vsel %vm646_vm2, %v7417_v37, 0.0 }
0x3567   : > { %7419 = vadd.xlane.f32.xlu0 %v7418_v52 }
0x35f4   : > { %v7420_v29 = vpop.xlane.xlu0 %7419 }
0x35f5   : > { %v7421_v53 = vmul.f32 0.03125, %v7420_v29 }
0x35f7   : > { %v7422_v54 = vsub.f32 %v7417_v37, %v7421_v53 }
0x35f9   : > { %v7423_v56 = vmul.f32 %v7422_v54, %v7422_v54 }
0x35fb   : > { %v7424_v34 = vsel %vm646_vm2, %v7423_v56, 0.0 }
0x35fc   : > { %7425 = vadd.xlane.f32.xlu1 %v7424_v34 }
0x3689   : > { %v7426_v58 = vpop.xlane.xlu1 %7425 }
0x368a   : > { %v7427_v27 = vmul.f32 0.03125, %v7426_v58 }
0x368c   : > { %v7428_v43 = vadd.f32 1e-05, %v7427_v27 }
0x368e   : > { %9385 = vrsqrt.f32 %v7428_v43 }
0x3698   : > { %v9386_v59 = vpop.eup %9385 }
0x3699   : > { %v7430_v13 = vmul.f32 %v9386_v59, %v7422_v54 }
0x369b   : > { %v7439_v61 = vmul.f32 %v7871_v28, %v7430_v13 }
0x369d   : > { %v7448_v62 = vadd.f32 %v7873_v60, %v7439_v61 }
0x369f   : > { %7449 = vst.msk [vmem:[%s538_s4] sm:$0xff] %vm646_vm2, %v7448_v62 }
0x36a0   : > { %9400 = shalt.err (!%p9397_p3)
}
0x36a1   : > { %s9401_s28 = scalar_lea.hbm %s10876_s3, 128  ;;  %s9405_s4 = scalar_lea.hbm %s10935_s16, 256 }
0x36a2   : > { %p9402_p4 = scmp.ne.s32.totalorder %s10876_s3, %s9401_s28  ;;  %p9406_p9 = scmp.lt.u32.totalorder %s10876_s3, %s10935_s16 }
0x36a3   : > { %p9407_p10 = scmp.lt.u32.totalorder %s9405_s4, %s9401_s28  ;;  %p9409_p12 = scmp.lt.u32.totalorder %s9401_s28, %s10876_s3 }
0x36a4   : > { %p9403_p7 = pnand %p9402_p4, %p9578_p5 }
0x36a5   : > { %p9408_p11 = por %p9407_p10, %p9406_p9 }
0x36a6   : > { %p9404_p8 = pneg %p9403_p7 }
0x36a7   : > { %p9410_p13 = por %p9409_p12, %p9408_p11 }
0x36a9   : > { %p9411_p0 = pnand %p9410_p13, %p9404_p8 }
0x36ab   : > { %9414 = shalt.err (!%p9411_p0)
}
0x36ac   : > { %9273 = dma.vmem_to_hbm [thread:$0]  (%p9578_p5), %s10878_s19, 128, %s10876_s3, %s7451_s23  }
0x36ad PF: > { %p9279_p1 = scmp.ge.s32.totalorder %s9449_s24, 2  ;;  %s7476_s25 = sand.u32 1, %s9437_s21  }
0x36ae   : > { %s7477_s29 = scalar_lea.sflag [#allocation3], %s7476_s25 }
0x36af   : > { %p9276_p2 = pnand %p9279_p1, %p9582_p6 }
0x36b1   : > { %9432 = dma.done.wait (!%p9276_p2), %s7477_s29, 128  }
0x36b2   : > { %9434 = vsyncadd (!%p9276_p2), %s7477_s29, 4294967168  ;;  %s10953_s24 = sld [smem:[#allocation6_spill]]  ;;  %s10954_s27 = sld [smem:[#allocation5_spill]] }
0x36b3   : > { %s10955_s23 = sld [smem:[#allocation7_spill]]  ;;  %s10956_s21 = smov %s9441_s22 }
0x36b8   : > { %p26_p3 = scmp.ge.s32.totalorder %s10953_s24, 4   ;;  %s10957_s22 = smov %s10954_s27 }
0x36ba   :  { %28 = sbr.rel (!%p26_p3) target bundleno = 7 (0x7), region = 182 }
0x36c1   :  { %7482 = vsyncpa [#allocation3], 1 }
0x36c2   :  { %7484 = vsyncpa [#allocation3 + $0x1], 1 }

</bundles_post_ra>
